<compile_context>
chip_gen: v5e
topology: v5e:2x2
jax: 0.10.0
libtpu: 0.0.40
codegen_flags: <defaults>
</compile_context>

<pallas_src>
import functools

import jax
import jax.numpy as jnp
from jax import lax
from jax.experimental import pallas as pl
from jax.experimental.pallas import tpu as pltpu


# ----------------------------------------------------------------------------
# helpers
# ----------------------------------------------------------------------------
def _ln(x, g, b, eps=1e-5):
    m = jnp.mean(x, axis=-1, keepdims=True)
    v = jnp.mean((x - m) ** 2, axis=-1, keepdims=True)
    return (x - m) * lax.rsqrt(v + eps) * g + b


def _recip(x):
    # EUP vrcp on TPU (approx); exact reciprocal under interpret lowering.
    return pl.reciprocal(x, approx=True)


# ----------------------------------------------------------------------------
# Fully fused per-batch kernel:
#   dVAE (gumbel-softmax) + backbone conv/LN/pos/LN + k,v projection
#   + slot attention iterations + attention entropy.
# ----------------------------------------------------------------------------
def _fused_body(refs, *, tau, num_iter, slot_dim):
    (img_ref, gum_ref, patches_ref, pos_ref,
     enc_wT_ref, enc_b_ref, dec_wT_ref, dec_b_ref,
     conv_w_ref, conv_b_ref, ln1_g_ref, ln1_b_ref, ln2_g_ref, ln2_b_ref,
     wkv_ref, wq_ref, ln_s_g_ref, ln_s_b_ref, ln_u_g_ref, ln_u_b_ref,
     w1_ref, b1_ref, w2_ref, b2_ref, mu_ref) = refs

    # ---------------- dVAE (channel-major, lane-dense over N) ----------------
    x_img = img_ref[0]                                            # (C, N) f32
    logits = jnp.dot(enc_wT_ref[...], x_img.astype(jnp.bfloat16),
                     preferred_element_type=jnp.float32) + enc_b_ref[...]
    y = (logits + gum_ref[0]) * (1.0 / tau)                       # (V, N)
    y = y - jnp.max(y, axis=0, keepdims=True)
    e = jnp.exp(y)
    z = e * _recip(jnp.sum(e, axis=0, keepdims=True))             # softmax(V)
    recon = jnp.dot(dec_wT_ref[...], z.astype(jnp.bfloat16),
                    preferred_element_type=jnp.float32) + dec_b_ref[...]
    sq = jnp.sum((x_img - recon) ** 2)                            # scalar

    # -------- backbone conv GEMM + bias/ReLU + LN + pos + input LN + kv ------
    p = patches_ref[0]                                            # (N, 9C) bf16
    f = jnp.dot(p, conv_w_ref[...], preferred_element_type=jnp.float32)
    f = jnp.maximum(f + conv_b_ref[...], 0.0)                     # bias + ReLU
    f = _ln(f, ln1_g_ref[...], ln1_b_ref[...])                    # norm_backbone
    xf = f + pos_ref[...]                                         # pos embedding
    xf = _ln(xf, ln2_g_ref[...], ln2_b_ref[...])                  # input LN
    kv = jnp.dot(xf.astype(jnp.bfloat16), wkv_ref[...],
                 preferred_element_type=jnp.float32)              # (N, 2D) f32
    k = kv[:, 0:slot_dim].astype(jnp.bfloat16)                    # (N, D)
    v = kv[:, slot_dim:2 * slot_dim].astype(jnp.bfloat16)         # (N, D)
    scale = float(slot_dim) ** -0.5

    # ---------------- slot attention ----------------
    # TODO(synk): GRU slot update omitted (SlotAttention source not provided);
    # residual MLP update only.
    slots = mu_ref[...]                                           # (S, D)
    attn = None
    for _ in range(num_iter):
        sn = _ln(slots, ln_s_g_ref[...], ln_s_b_ref[...])
        q = jnp.dot(sn.astype(jnp.bfloat16), wq_ref[...],
                    preferred_element_type=jnp.float32) * scale   # (S, D)
        lg = lax.dot_general(q.astype(jnp.bfloat16), k,
                             (((1,), (1,)), ((), ())),
                             preferred_element_type=jnp.float32)  # (S, N)
        lg = lg - jnp.max(lg, axis=0, keepdims=True)
        ea = jnp.exp(lg)
        attn = ea * _recip(jnp.sum(ea, axis=0, keepdims=True))    # softmax(S)
        attn_w = attn + 1e-8
        attn_w = attn_w * _recip(jnp.sum(attn_w, axis=1, keepdims=True))
        updates = jnp.dot(attn_w.astype(jnp.bfloat16), v,
                          preferred_element_type=jnp.float32)     # (S, D)
        h = _ln(updates, ln_u_g_ref[...], ln_u_b_ref[...])
        h = jnp.maximum(
            jnp.dot(h.astype(jnp.bfloat16), w1_ref[...],
                    preferred_element_type=jnp.float32) + b1_ref[...], 0.0)
        h = jnp.dot(h.astype(jnp.bfloat16), w2_ref[...],
                    preferred_element_type=jnp.float32) + b2_ref[...]
        slots = updates + h

    # fused attention entropy: mean_{s,f} entr(clamp(attn)) for this batch elem
    a = jnp.clip(attn, 1e-20, 1.0)
    ent = jnp.mean(-a * jnp.log(a))
    return slots, attn, ent, sq, recon


def _fused_kernel(*refs, tau, num_iter, slot_dim, emit_recon):
    n_out = 5 if emit_recon else 4
    in_refs, out_refs = refs[:-n_out], refs[-n_out:]
    slots, attn, ent, sq, recon = _fused_body(
        in_refs, tau=tau, num_iter=num_iter, slot_dim=slot_dim)
    slots_ref, attn_ref, ent_ref, mse_ref = out_refs[:4]
    slots_ref[0] = slots
    attn_ref[0] = attn
    ent_ref[...] = jnp.full((1, 1, 1), ent, jnp.float32)
    mse_ref[...] = jnp.full((1, 1, 1), sq, jnp.float32)
    if emit_recon:
        out_refs[4][0] = recon


def fused_forward(img_cn, gum_dvae, patches, pp, *, tau, num_iter, emit_recon):
    B, C, N = img_cn.shape
    V = pp["enc_wT"].shape[0]
    K9, F = pp["conv_w"].shape
    S, D = pp["mu"].shape
    M = pp["w1"].shape[1]
    assert num_iter >= 1

    cst = lambda b: (0, 0)
    wspec = lambda shape: pl.BlockSpec(shape, cst)

    in_specs = [
        pl.BlockSpec((1, C, N), lambda b: (b, 0, 0)),     # image (C, N)
        pl.BlockSpec((1, V, N), lambda b: (b, 0, 0)),     # gumbel noise
        pl.BlockSpec((1, N, K9), lambda b: (b, 0, 0)),    # 3x3 patches
        wspec((N, F)),                                    # pos embedding
        wspec((V, C)), wspec((V, 1)), wspec((C, V)), wspec((C, 1)),
        wspec((K9, F)), wspec((1, F)), wspec((1, F)), wspec((1, F)),
        wspec((1, F)), wspec((1, F)),
        wspec((F, 2 * D)),
        wspec((D, D)), wspec((1, D)), wspec((1, D)), wspec((1, D)), wspec((1, D)),
        wspec((D, M)), wspec((1, M)), wspec((M, D)), wspec((1, D)),
        wspec((S, D)),
    ]
    out_shape = [
        jax.ShapeDtypeStruct((B, S, D), jnp.float32),     # slots
        jax.ShapeDtypeStruct((B, S, N), jnp.float32),     # attn (lane-dense N)
        jax.ShapeDtypeStruct((B, 1, 1), jnp.float32),     # per-batch entropy
        jax.ShapeDtypeStruct((B, 1, 1), jnp.float32),     # per-batch sq error
    ]
    out_specs = [
        pl.BlockSpec((1, S, D), lambda b: (b, 0, 0)),
        pl.BlockSpec((1, S, N), lambda b: (b, 0, 0)),
        pl.BlockSpec((1, 1, 1), lambda b: (b, 0, 0)),
        pl.BlockSpec((1, 1, 1), lambda b: (b, 0, 0)),
    ]
    if emit_recon:
        out_shape.append(jax.ShapeDtypeStruct((B, C, N), jnp.float32))
        out_specs.append(pl.BlockSpec((1, C, N), lambda b: (b, 0, 0)))

    kernel = functools.partial(_fused_kernel, tau=tau, num_iter=num_iter,
                               slot_dim=D, emit_recon=emit_recon)
    return pl.pallas_call(
        kernel,
        out_shape=tuple(out_shape),
        grid=(B,),
        in_specs=in_specs,
        out_specs=tuple(out_specs),
        compiler_params=pltpu.CompilerParams(dimension_semantics=("parallel",)),
    )(img_cn, gum_dvae, patches, pp["pos"],
      pp["enc_wT"], pp["enc_b"], pp["dec_wT"], pp["dec_b"],
      pp["conv_w"], pp["conv_b"], pp["ln_bb_g"], pp["ln_bb_b"],
      pp["ln_in_g"], pp["ln_in_b"], pp["wkv"],
      pp["wq"], pp["ln_s_g"], pp["ln_s_b"], pp["ln_u_g"], pp["ln_u_b"],
      pp["w1"], pp["b1"], pp["w2"], pp["b2"], pp["mu"])


# ----------------------------------------------------------------------------
# PerpetualOrthogonalProjectionLoss — fused single kernel; eye / block / label
# masks built in-kernel via iota, gumbel noise passed from the host.
# ----------------------------------------------------------------------------
def _ortho_loss_kernel(feat_ref, cen_ref, gum_ref, out_ref, *,
                       batch, num_slots, slot_ortho_w, ortho_w):
    BS = batch * num_slots
    S = num_slots
    feats = feat_ref[...]                                             # (BS, D)
    cen = cen_ref[...]                                                # (S, D)
    gum = gum_ref[...]                                                # (BS, BS)

    row = lax.broadcasted_iota(jnp.int32, (BS, BS), 0)
    col = lax.broadcasted_iota(jnp.int32, (BS, BS), 1)
    eye = (row == col).astype(jnp.float32)
    bmask = ((row // S) == (col // S)).astype(jnp.float32)
    r2 = lax.broadcasted_iota(jnp.int32, (BS, S), 0)
    c2 = lax.broadcasted_iota(jnp.int32, (BS, S), 1)
    lmask = ((r2 % S) == c2).astype(jnp.float32)          # labels = arange(S) per batch

    # slot_loss: per-batch slot similarity vs identity (block diagonal)
    fn = feats * lax.rsqrt(
        jnp.maximum(jnp.sum(feats * feats, axis=-1, keepdims=True), 1e-24))
    sim = lax.dot_general(fn, fn, (((1,), (1,)), ((), ())),
                          preferred_element_type=jnp.float32)          # (BS,BS)
    diff = (sim - eye) * bmask
    slot_loss = jnp.sqrt(jnp.sum(diff * diff)) / float(batch)

    # orthogonal_center_loss on L2-normalized class centres
    cn = cen * lax.rsqrt(
        jnp.maximum(jnp.sum(cen * cen, axis=-1, keepdims=True), 1e-24))
    cc = lax.dot_general(cn, cn, (((1,), (1,)), ((), ())),
                         preferred_element_type=jnp.float32)           # (S, S)
    eye_s = (lax.broadcasted_iota(jnp.int32, (S, S), 0)
             == lax.broadcasted_iota(jnp.int32, (S, S), 1)).astype(jnp.float32)
    ortho = jnp.sum((cc - eye_s) ** 2)

    # gumbel-softmax self-attention over (unnormalized) features, tau=1, soft
    fb = feats.astype(jnp.bfloat16)
    w = lax.dot_general(fb, fb, (((1,), (1,)), ((), ())),
                        preferred_element_type=jnp.float32)            # (BS,BS)
    y = w + gum
    y = y - jnp.max(y, axis=1, keepdims=True)
    e = jnp.exp(y)
    gs = e * _recip(jnp.sum(e, axis=1, keepdims=True))
    feats2 = jnp.dot(gs.astype(jnp.bfloat16), fb,
                     preferred_element_type=jnp.float32)
    feats2 = feats2 * lax.rsqrt(
        jnp.maximum(jnp.sum(feats2 * feats2, axis=1, keepdims=True), 1e-24))

    fcv = lax.dot_general(feats2, cn, (((1,), (1,)), ((), ())),
                          preferred_element_type=jnp.float32)          # (BS, S)
    same = jnp.sum(lmask * fcv) / (jnp.sum(lmask) + 1e-6)
    # NOTE: matches the PyTorch reference exactly: relu(0.2 + (1-mask)*fcv).mean()
    diff_cls = jnp.mean(jnp.maximum(0.2 + (1.0 - lmask) * fcv, 0.0))

    total = (slot_ortho_w * slot_loss + ortho_w * ortho
             + 0.5 * (1.0 - same) + diff_cls)
    out_ref[...] = jnp.full((1, 1), total, dtype=jnp.float32)


def ortho_projection_loss(features, class_centres, gum, *, batch, num_slots):
    # TODO(synk): for large batch*num_slots, row-tile the (BS,BS) similarity /
    # gumbel matrices over a "parallel" grid axis (partial accumulation) so the
    # f32 temporaries respect v7x's 64 MiB VMEM; trivial at BS = batch*S = 8.
    BS, D = features.shape
    S = class_centres.shape[0]
    out = pl.pallas_call(
        functools.partial(_ortho_loss_kernel, batch=batch, num_slots=num_slots,
                          slot_ortho_w=0.2, ortho_w=0.3),
        out_shape=jax.ShapeDtypeStruct((1, 1), jnp.float32),
        grid=(1,),
        in_specs=[
            pl.BlockSpec((BS, D), lambda i: (0, 0)),
            pl.BlockSpec((S, D), lambda i: (0, 0)),
            pl.BlockSpec((BS, BS), lambda i: (0, 0)),
        ],
        out_specs=pl.BlockSpec((1, 1), lambda i: (0, 0)),
        compiler_params=pltpu.CompilerParams(dimension_semantics=("arbitrary",)),
    )(features, class_centres, gum)
    return out[0, 0]


# ----------------------------------------------------------------------------
# Plain-JAX glue
# ----------------------------------------------------------------------------
def im2col_3x3(x_nhwc):
    # TODO(synk): for large images build the 3x3 patches in-kernel (halo DMA)
    # instead of materializing a 9x copy in HBM; trivial at these sizes.
    B, H, W, C = x_nhwc.shape
    xp = jnp.pad(x_nhwc, ((0, 0), (1, 1), (1, 1), (0, 0)))
    patches = []
    for di in range(3):
        for dj in range(3):
            patches.append(xp[:, di:di + H, dj:dj + W, :])
    return jnp.concatenate(patches, axis=-1).reshape(B, H * W, C * 9)


def slate_extractor_forward(image, pp, noise_key, *, tau=0.1, visualize=False,
                            num_iter=3, slot_lambda_entropy=1e-3):
    """image: (B, C, H, W) float32 (NCHW, PyTorch convention)."""
    B, C, H, W = image.shape
    N = H * W
    S, D = pp["mu"].shape
    V = pp["enc_wT"].shape[0]

    # channel-major view for the dVAE: free reshape from NCHW (no transpose)
    img_cn = image.reshape(B, C, N).astype(jnp.float32)
    # NHWC patches for the backbone conv GEMM
    x_nhwc = jnp.transpose(image, (0, 2, 3, 1)).astype(jnp.bfloat16)
    patches = im2col_3x3(x_nhwc)                                   # (B, N, 9C)

    k_dvae, k_ortho = jax.random.split(noise_key)
    # TODO(synk): move gumbel-noise generation in-kernel via pltpu.prng_* once
    # the target runtime supports it (no interpret-mode lowering for prng_seed).
    gum_dvae = jax.random.gumbel(k_dvae, (B, V, N), dtype=jnp.float32)

    fused = fused_forward(img_cn, gum_dvae, patches, pp, tau=tau,
                          num_iter=num_iter, emit_recon=visualize)
    if visualize:
        slots, attn, ent_b, sq_b, recon_cn = fused
    else:
        slots, attn, ent_b, sq_b = fused
        recon_cn = None

    # SLATE-style dVAE reduction: sum of squared error / batch size.
    mse = jnp.sum(sq_b) / B
    # reference: per-batch mean entropy, summed over the batch
    attn_entropy = slot_lambda_entropy * jnp.sum(ent_b)

    # ---- PerpetualOrthogonalProjectionLoss ----
    gum_ortho = jax.random.gumbel(k_ortho, (B * S, B * S), dtype=jnp.float32)
    sim_loss = ortho_projection_loss(slots.reshape(B * S, D),
                                     pp["class_centres"], gum_ortho,
                                     batch=B, num_slots=S)

    out = {
        "slots": slots,
        "attns": attn.reshape(B, S, 1, H, W),
        "attn_entropy": attn_entropy,
        "sim_loss": sim_loss,
        "loss": {"mse": mse},
    }
    if visualize:
        out["recon"] = recon_cn.reshape(B, C, H, W)
    return out


# ----------------------------------------------------------------------------
# parameters (raw, PyTorch-style) and one-time kernel-ready preparation
# ----------------------------------------------------------------------------
def make_params(key, *, C, N, F, V, S, D, MLP):
    ks = jax.random.split(key, 16)

    def nrm(k, shape, scale=0.1):
        return (scale * jax.random.normal(k, shape)).astype(jnp.float32)

    q, _ = jnp.linalg.qr(jax.random.normal(ks[15], (D, S)))
    return {
        # dVAE (1x1-conv encoder / decoder)
        "dvae_enc_w": nrm(ks[0], (C, V)),
        "dvae_enc_b": jnp.zeros((V,), jnp.float32),
        "dvae_dec_w": nrm(ks[1], (V, C)),
        "dvae_dec_b": jnp.zeros((C,), jnp.float32),
        # backbone 3x3 conv
        "conv_w": nrm(ks[2], (C * 9, F)),
        "conv_b": jnp.zeros((F,), jnp.float32),
        "ln_bb_g": jnp.ones((F,), jnp.float32),
        "ln_bb_b": jnp.zeros((F,), jnp.float32),
        # slot attention encoder
        "pos": nrm(ks[3], (N, F), 0.02),
        "ln_in_g": jnp.ones((F,), jnp.float32),
        "ln_in_b": jnp.zeros((F,), jnp.float32),
        "wk": nrm(ks[4], (F, D)),
        "wv": nrm(ks[5], (F, D)),
        "wq": nrm(ks[6], (D, D)),
        "ln_s_g": jnp.ones((D,), jnp.float32),
        "ln_s_b": jnp.zeros((D,), jnp.float32),
        "ln_u_g": jnp.ones((D,), jnp.float32),
        "ln_u_b": jnp.zeros((D,), jnp.float32),
        "w1": nrm(ks[7], (D, MLP)),
        "b1": jnp.zeros((MLP,), jnp.float32),
        "w2": nrm(ks[8], (MLP, D)),
        "b2": jnp.zeros((D,), jnp.float32),
        "mu": nrm(ks[9], (S, D), 0.5),
        # ortho loss class centres (orthogonal rows)
        "class_centres": q.T.astype(jnp.float32),                      # (S, D)
    }


def prepare_params(p):
    """One-time hoisting of per-call weight prep: bf16 casts, transposes,
    wk/wv concat, bias reshapes.  Forward then does zero parameter work."""
    bf = jnp.bfloat16
    return {
        "enc_wT": p["dvae_enc_w"].T.astype(bf),                        # (V, C)
        "enc_b": p["dvae_enc_b"].reshape(-1, 1).astype(jnp.float32),   # (V, 1)
        "dec_wT": p["dvae_dec_w"].T.astype(bf),                        # (C, V)
        "dec_b": p["dvae_dec_b"].reshape(-1, 1).astype(jnp.float32),   # (C, 1)
        "conv_w": p["conv_w"].astype(bf),
        "conv_b": p["conv_b"].reshape(1, -1),
        "ln_bb_g": p["ln_bb_g"].reshape(1, -1),
        "ln_bb_b": p["ln_bb_b"].reshape(1, -1),
        "pos": p["pos"].astype(jnp.float32),
        "ln_in_g": p["ln_in_g"].reshape(1, -1),
        "ln_in_b": p["ln_in_b"].reshape(1, -1),
        "wkv": jnp.concatenate([p["wk"], p["wv"]], axis=1).astype(bf), # (F, 2D)
        "wq": p["wq"].astype(bf),
        "ln_s_g": p["ln_s_g"].reshape(1, -1),
        "ln_s_b": p["ln_s_b"].reshape(1, -1),
        "ln_u_g": p["ln_u_g"].reshape(1, -1),
        "ln_u_b": p["ln_u_b"].reshape(1, -1),
        "w1": p["w1"].astype(bf),
        "b1": p["b1"].reshape(1, -1),
        "w2": p["w2"].astype(bf),
        "b2": p["b2"].reshape(1, -1),
        "mu": p["mu"].astype(jnp.float32),
        "class_centres": p["class_centres"].astype(jnp.float32),
    }


if __name__ == "__main__":
    # synthetic args: hidden_size=32, num_slot=4 -> slot_dim=8, feature_size=32,
    # vocab_size=16, num_iter=3, crop/img = 16x16, img_channels=4
    B, C, H, W = 2, 4, 16, 16
    N = H * W
    V, F, S, D, MLP = 16, 32, 4, 8, 16

    key = jax.random.PRNGKey(0)
    k_img, k_par, k_noise = jax.random.split(key, 3)
    image = jax.random.normal(k_img, (B, C, H, W), dtype=jnp.float32)
    raw_params = make_params(k_par, C=C, N=N, F=F, V=V, S=S, D=D, MLP=MLP)
    pp = prepare_params(raw_params)

    out = slate_extractor_forward(image, pp, k_noise, tau=0.1,
                                  visualize=True, num_iter=3,
                                  slot_lambda_entropy=1e-3)
    out = jax.block_until_ready(out)

    assert out["slots"].shape == (B, S, D)
    assert out["attns"].shape == (B, S, 1, H, W)
    assert out["recon"].shape == (B, C, H, W)
    finite = all(bool(jnp.all(jnp.isfinite(x))) for x in
                 jax.tree_util.tree_leaves(out))
    assert finite, "non-finite output"
    print("KERNEL_OK")
</pallas_src>

<mosaic_0001>
module attributes {stable_mosaic.version = 11 : i64} {
  func.func @_fused_kernel(%arg0: i32, %arg1: memref<1x4x256xf32, #tpu.memory_space<vmem>>, %arg2: memref<1x16x256xf32, #tpu.memory_space<vmem>>, %arg3: memref<1x256x36xbf16, #tpu.memory_space<vmem>>, %arg4: memref<256x32xf32, #tpu.memory_space<vmem>>, %arg5: memref<16x4xbf16, #tpu.memory_space<vmem>>, %arg6: memref<16x1xf32, #tpu.memory_space<vmem>>, %arg7: memref<4x16xbf16, #tpu.memory_space<vmem>>, %arg8: memref<4x1xf32, #tpu.memory_space<vmem>>, %arg9: memref<36x32xbf16, #tpu.memory_space<vmem>>, %arg10: memref<1x32xf32, #tpu.memory_space<vmem>>, %arg11: memref<1x32xf32, #tpu.memory_space<vmem>>, %arg12: memref<1x32xf32, #tpu.memory_space<vmem>>, %arg13: memref<1x32xf32, #tpu.memory_space<vmem>>, %arg14: memref<1x32xf32, #tpu.memory_space<vmem>>, %arg15: memref<32x16xbf16, #tpu.memory_space<vmem>>, %arg16: memref<8x8xbf16, #tpu.memory_space<vmem>>, %arg17: memref<1x8xf32, #tpu.memory_space<vmem>>, %arg18: memref<1x8xf32, #tpu.memory_space<vmem>>, %arg19: memref<1x8xf32, #tpu.memory_space<vmem>>, %arg20: memref<1x8xf32, #tpu.memory_space<vmem>>, %arg21: memref<8x16xbf16, #tpu.memory_space<vmem>>, %arg22: memref<1x16xf32, #tpu.memory_space<vmem>>, %arg23: memref<16x8xbf16, #tpu.memory_space<vmem>>, %arg24: memref<1x8xf32, #tpu.memory_space<vmem>>, %arg25: memref<4x8xf32, #tpu.memory_space<vmem>>, %arg26: memref<1x4x8xf32, #tpu.memory_space<vmem>>, %arg27: memref<1x4x256xf32, #tpu.memory_space<vmem>>, %arg28: memref<1x1x1xf32, #tpu.memory_space<vmem>>, %arg29: memref<1x1x1xf32, #tpu.memory_space<vmem>>, %arg30: memref<1x4x256xf32, #tpu.memory_space<vmem>>) attributes {dimension_semantics = [#tpu.dimension_semantics<parallel>], iteration_bounds = array<i64: 2>, scalar_prefetch = 0 : i64, scratch_operands = 0 : i64, tpu.core_type = #tpu.core_type<tc>, window_params = [{transform_indices = @transform_0, window_bounds = array<i64: 1, 4, 256>}, {transform_indices = @transform_1, window_bounds = array<i64: 1, 16, 256>}, {transform_indices = @transform_2, window_bounds = array<i64: 1, 256, 36>}, {pipeline_mode = #tpu.pipeline_mode<synchronous>, transform_indices = @transform_3, window_bounds = array<i64: 256, 32>}, {pipeline_mode = #tpu.pipeline_mode<synchronous>, transform_indices = @transform_4, window_bounds = array<i64: 16, 4>}, {pipeline_mode = #tpu.pipeline_mode<synchronous>, transform_indices = @transform_5, window_bounds = array<i64: 16, 1>}, {pipeline_mode = #tpu.pipeline_mode<synchronous>, transform_indices = @transform_6, window_bounds = array<i64: 4, 16>}, {pipeline_mode = #tpu.pipeline_mode<synchronous>, transform_indices = @transform_7, window_bounds = array<i64: 4, 1>}, {pipeline_mode = #tpu.pipeline_mode<synchronous>, transform_indices = @transform_8, window_bounds = array<i64: 36, 32>}, {pipeline_mode = #tpu.pipeline_mode<synchronous>, transform_indices = @transform_9, window_bounds = array<i64: 1, 32>}, {pipeline_mode = #tpu.pipeline_mode<synchronous>, transform_indices = @transform_10, window_bounds = array<i64: 1, 32>}, {pipeline_mode = #tpu.pipeline_mode<synchronous>, transform_indices = @transform_11, window_bounds = array<i64: 1, 32>}, {pipeline_mode = #tpu.pipeline_mode<synchronous>, transform_indices = @transform_12, window_bounds = array<i64: 1, 32>}, {pipeline_mode = #tpu.pipeline_mode<synchronous>, transform_indices = @transform_13, window_bounds = array<i64: 1, 32>}, {pipeline_mode = #tpu.pipeline_mode<synchronous>, transform_indices = @transform_14, window_bounds = array<i64: 32, 16>}, {pipeline_mode = #tpu.pipeline_mode<synchronous>, transform_indices = @transform_15, window_bounds = array<i64: 8, 8>}, {pipeline_mode = #tpu.pipeline_mode<synchronous>, transform_indices = @transform_16, window_bounds = array<i64: 1, 8>}, {pipeline_mode = #tpu.pipeline_mode<synchronous>, transform_indices = @transform_17, window_bounds = array<i64: 1, 8>}, {pipeline_mode = #tpu.pipeline_mode<synchronous>, transform_indices = @transform_18, window_bounds = array<i64: 1, 8>}, {pipeline_mode = #tpu.pipeline_mode<synchronous>, transform_indices = @transform_19, window_bounds = array<i64: 1, 8>}, {pipeline_mode = #tpu.pipeline_mode<synchronous>, transform_indices = @transform_20, window_bounds = array<i64: 8, 16>}, {pipeline_mode = #tpu.pipeline_mode<synchronous>, transform_indices = @transform_21, window_bounds = array<i64: 1, 16>}, {pipeline_mode = #tpu.pipeline_mode<synchronous>, transform_indices = @transform_22, window_bounds = array<i64: 16, 8>}, {pipeline_mode = #tpu.pipeline_mode<synchronous>, transform_indices = @transform_23, window_bounds = array<i64: 1, 8>}, {pipeline_mode = #tpu.pipeline_mode<synchronous>, transform_indices = @transform_24, window_bounds = array<i64: 4, 8>}, {transform_indices = @transform_25, window_bounds = array<i64: 1, 4, 8>}, {transform_indices = @transform_26, window_bounds = array<i64: 1, 4, 256>}, {transform_indices = @transform_27, window_bounds = array<i64: 1, 1, 1>}, {transform_indices = @transform_28, window_bounds = array<i64: 1, 1, 1>}, {transform_indices = @transform_29, window_bounds = array<i64: 1, 4, 256>}]} {
    %c0 = arith.constant 0 : index
    %c0_0 = arith.constant 0 : index
    %c0_1 = arith.constant 0 : index
    %0 = vector.load %arg1[%c0, %c0_0, %c0_1] : memref<1x4x256xf32, #tpu.memory_space<vmem>>, vector<1x4x256xf32>
    %1 = vector.shape_cast %0 : vector<1x4x256xf32> to vector<4x256xf32>
    %c0_2 = arith.constant 0 : index
    %c0_3 = arith.constant 0 : index
    %2 = vector.load %arg5[%c0_2, %c0_3] : memref<16x4xbf16, #tpu.memory_space<vmem>>, vector<16x4xbf16>
    %3 = arith.truncf %1 : vector<4x256xf32> to vector<4x256xbf16>
    %cst = arith.constant dense<0.000000e+00> : vector<16x256xf32>
    %4 = tpu.matmul %2, %3, %cst {dimension_numbers = #tpu.dot_dimension_numbers<[1], [0], [0], [1], [0, 0, 1, 1], [], []>} : vector<16x4xbf16>, vector<4x256xbf16>, vector<16x256xf32> -> vector<16x256xf32>
    %c0_4 = arith.constant 0 : index
    %c0_5 = arith.constant 0 : index
    %5 = vector.load %arg6[%c0_4, %c0_5] : memref<16x1xf32, #tpu.memory_space<vmem>>, vector<16x1xf32>
    %6 = vector.broadcast %5 : vector<16x1xf32> to vector<16x256xf32>
    %7 = arith.addf %4, %6 : vector<16x256xf32>
    %c0_6 = arith.constant 0 : index
    %c0_7 = arith.constant 0 : index
    %c0_8 = arith.constant 0 : index
    %8 = vector.load %arg2[%c0_6, %c0_7, %c0_8] : memref<1x16x256xf32, #tpu.memory_space<vmem>>, vector<1x16x256xf32>
    %9 = vector.shape_cast %8 : vector<1x16x256xf32> to vector<16x256xf32>
    %10 = arith.addf %7, %9 : vector<16x256xf32>
    %cst_9 = arith.constant 1.000000e+01 : f32
    %11 = vector.broadcast %cst_9 : f32 to vector<16x256xf32>
    %12 = arith.mulf %10, %11 : vector<16x256xf32>
    %cst_10 = arith.constant dense<0xFF800000> : vector<256xf32>
    %13 = vector.multi_reduction <maximumf>, %12, %cst_10 [0] : vector<16x256xf32> to vector<256xf32>
    %14 = vector.shape_cast %13 : vector<256xf32> to vector<1x256xf32>
    %15 = vector.broadcast %14 : vector<1x256xf32> to vector<16x256xf32>
    %16 = arith.subf %12, %15 : vector<16x256xf32>
    %17 = math.exp %16 : vector<16x256xf32>
    %cst_11 = arith.constant dense<0.000000e+00> : vector<256xf32>
    %18 = vector.multi_reduction <add>, %17, %cst_11 [0] : vector<16x256xf32> to vector<256xf32>
    %19 = vector.shape_cast %18 : vector<256xf32> to vector<1x256xf32>
    %20 = tpu.reciprocal %19 {approx = true} : vector<1x256xf32> -> vector<1x256xf32>
    %21 = vector.broadcast %20 : vector<1x256xf32> to vector<16x256xf32>
    %22 = arith.mulf %17, %21 : vector<16x256xf32>
    %c0_12 = arith.constant 0 : index
    %c0_13 = arith.constant 0 : index
    %23 = vector.load %arg7[%c0_12, %c0_13] : memref<4x16xbf16, #tpu.memory_space<vmem>>, vector<4x16xbf16>
    %24 = arith.truncf %22 : vector<16x256xf32> to vector<16x256xbf16>
    %cst_14 = arith.constant dense<0.000000e+00> : vector<4x256xf32>
    %25 = tpu.matmul %23, %24, %cst_14 {dimension_numbers = #tpu.dot_dimension_numbers<[1], [0], [0], [1], [0, 0, 1, 1], [], []>} : vector<4x16xbf16>, vector<16x256xbf16>, vector<4x256xf32> -> vector<4x256xf32>
    %c0_15 = arith.constant 0 : index
    %c0_16 = arith.constant 0 : index
    %26 = vector.load %arg8[%c0_15, %c0_16] : memref<4x1xf32, #tpu.memory_space<vmem>>, vector<4x1xf32>
    %27 = vector.broadcast %26 : vector<4x1xf32> to vector<4x256xf32>
    %28 = arith.addf %25, %27 : vector<4x256xf32>
    %29 = arith.subf %1, %28 : vector<4x256xf32>
    %30 = arith.mulf %29, %29 : vector<4x256xf32>
    %31 = vector.shape_cast %30 : vector<4x256xf32> to vector<1x4x256xf32>
    %cst_17 = arith.constant dense<0.000000e+00> : vector<1xf32>
    %32 = vector.multi_reduction <add>, %31, %cst_17 [1, 2] : vector<1x4x256xf32> to vector<1xf32>
    %33 = vector.shape_cast %32 : vector<1xf32> to vector<1x1x1xf32>
    %34 = vector.extract %33[0, 0, 0] : f32 from vector<1x1x1xf32>
    %c0_18 = arith.constant 0 : index
    %c0_19 = arith.constant 0 : index
    %c0_20 = arith.constant 0 : index
    %35 = vector.load %arg3[%c0_18, %c0_19, %c0_20] : memref<1x256x36xbf16, #tpu.memory_space<vmem>>, vector<1x256x36xbf16>
    %36 = vector.shape_cast %35 : vector<1x256x36xbf16> to vector<256x36xbf16>
    %c0_21 = arith.constant 0 : index
    %c0_22 = arith.constant 0 : index
    %37 = vector.load %arg9[%c0_21, %c0_22] : memref<36x32xbf16, #tpu.memory_space<vmem>>, vector<36x32xbf16>
    %cst_23 = arith.constant dense<0.000000e+00> : vector<256x32xf32>
    %38 = tpu.matmul %36, %37, %cst_23 {dimension_numbers = #tpu.dot_dimension_numbers<[1], [0], [0], [1], [0, 0, 1, 1], [], []>} : vector<256x36xbf16>, vector<36x32xbf16>, vector<256x32xf32> -> vector<256x32xf32>
    %c0_24 = arith.constant 0 : index
    %c0_25 = arith.constant 0 : index
    %39 = vector.load %arg10[%c0_24, %c0_25] : memref<1x32xf32, #tpu.memory_space<vmem>>, vector<1x32xf32>
    %40 = vector.broadcast %39 : vector<1x32xf32> to vector<256x32xf32>
    %41 = arith.addf %38, %40 : vector<256x32xf32>
    %cst_26 = arith.constant 0.000000e+00 : f32
    %42 = vector.broadcast %cst_26 : f32 to vector<256x32xf32>
    %43 = arith.maximumf %41, %42 : vector<256x32xf32>
    %c0_27 = arith.constant 0 : index
    %c0_28 = arith.constant 0 : index
    %44 = vector.load %arg11[%c0_27, %c0_28] : memref<1x32xf32, #tpu.memory_space<vmem>>, vector<1x32xf32>
    %c0_29 = arith.constant 0 : index
    %c0_30 = arith.constant 0 : index
    %45 = vector.load %arg12[%c0_29, %c0_30] : memref<1x32xf32, #tpu.memory_space<vmem>>, vector<1x32xf32>
    %cst_31 = arith.constant dense<0.000000e+00> : vector<256xf32>
    %46 = vector.multi_reduction <add>, %43, %cst_31 [1] : vector<256x32xf32> to vector<256xf32>
    %47 = vector.shape_cast %46 : vector<256xf32> to vector<256x1xf32>
    %cst_32 = arith.constant 3.200000e+01 : f32
    %48 = vector.broadcast %cst_32 : f32 to vector<256x1xf32>
    %49 = arith.divf %47, %48 : vector<256x1xf32>
    %50 = vector.broadcast %49 : vector<256x1xf32> to vector<256x32xf32>
    %51 = arith.subf %43, %50 : vector<256x32xf32>
    %52 = arith.mulf %51, %51 : vector<256x32xf32>
    %cst_33 = arith.constant dense<0.000000e+00> : vector<256xf32>
    %53 = vector.multi_reduction <add>, %52, %cst_33 [1] : vector<256x32xf32> to vector<256xf32>
    %54 = vector.shape_cast %53 : vector<256xf32> to vector<256x1xf32>
    %cst_34 = arith.constant 3.200000e+01 : f32
    %55 = vector.broadcast %cst_34 : f32 to vector<256x1xf32>
    %56 = arith.divf %54, %55 : vector<256x1xf32>
    %57 = vector.broadcast %49 : vector<256x1xf32> to vector<256x32xf32>
    %58 = arith.subf %43, %57 : vector<256x32xf32>
    %cst_35 = arith.constant 9.99999974E-6 : f32
    %59 = vector.broadcast %cst_35 : f32 to vector<256x1xf32>
    %60 = arith.addf %56, %59 : vector<256x1xf32>
    %61 = math.rsqrt %60 : vector<256x1xf32>
    %62 = vector.broadcast %61 : vector<256x1xf32> to vector<256x32xf32>
    %63 = arith.mulf %58, %62 : vector<256x32xf32>
    %64 = vector.broadcast %44 : vector<1x32xf32> to vector<256x32xf32>
    %65 = arith.mulf %63, %64 : vector<256x32xf32>
    %66 = vector.broadcast %45 : vector<1x32xf32> to vector<256x32xf32>
    %67 = arith.addf %65, %66 : vector<256x32xf32>
    %c0_36 = arith.constant 0 : index
    %c0_37 = arith.constant 0 : index
    %68 = vector.load %arg4[%c0_36, %c0_37] : memref<256x32xf32, #tpu.memory_space<vmem>>, vector<256x32xf32>
    %69 = arith.addf %67, %68 : vector<256x32xf32>
    %c0_38 = arith.constant 0 : index
    %c0_39 = arith.constant 0 : index
    %70 = vector.load %arg13[%c0_38, %c0_39] : memref<1x32xf32, #tpu.memory_space<vmem>>, vector<1x32xf32>
    %c0_40 = arith.constant 0 : index
    %c0_41 = arith.constant 0 : index
    %71 = vector.load %arg14[%c0_40, %c0_41] : memref<1x32xf32, #tpu.memory_space<vmem>>, vector<1x32xf32>
    %cst_42 = arith.constant dense<0.000000e+00> : vector<256xf32>
    %72 = vector.multi_reduction <add>, %69, %cst_42 [1] : vector<256x32xf32> to vector<256xf32>
    %73 = vector.shape_cast %72 : vector<256xf32> to vector<256x1xf32>
    %cst_43 = arith.constant 3.200000e+01 : f32
    %74 = vector.broadcast %cst_43 : f32 to vector<256x1xf32>
    %75 = arith.divf %73, %74 : vector<256x1xf32>
    %76 = vector.broadcast %75 : vector<256x1xf32> to vector<256x32xf32>
    %77 = arith.subf %69, %76 : vector<256x32xf32>
    %78 = arith.mulf %77, %77 : vector<256x32xf32>
    %cst_44 = arith.constant dense<0.000000e+00> : vector<256xf32>
    %79 = vector.multi_reduction <add>, %78, %cst_44 [1] : vector<256x32xf32> to vector<256xf32>
    %80 = vector.shape_cast %79 : vector<256xf32> to vector<256x1xf32>
    %cst_45 = arith.constant 3.200000e+01 : f32
    %81 = vector.broadcast %cst_45 : f32 to vector<256x1xf32>
    %82 = arith.divf %80, %81 : vector<256x1xf32>
    %83 = vector.broadcast %75 : vector<256x1xf32> to vector<256x32xf32>
    %84 = arith.subf %69, %83 : vector<256x32xf32>
    %cst_46 = arith.constant 9.99999974E-6 : f32
    %85 = vector.broadcast %cst_46 : f32 to vector<256x1xf32>
    %86 = arith.addf %82, %85 : vector<256x1xf32>
    %87 = math.rsqrt %86 : vector<256x1xf32>
    %88 = vector.broadcast %87 : vector<256x1xf32> to vector<256x32xf32>
    %89 = arith.mulf %84, %88 : vector<256x32xf32>
    %90 = vector.broadcast %70 : vector<1x32xf32> to vector<256x32xf32>
    %91 = arith.mulf %89, %90 : vector<256x32xf32>
    %92 = vector.broadcast %71 : vector<1x32xf32> to vector<256x32xf32>
    %93 = arith.addf %91, %92 : vector<256x32xf32>
    %94 = arith.truncf %93 : vector<256x32xf32> to vector<256x32xbf16>
    %c0_47 = arith.constant 0 : index
    %c0_48 = arith.constant 0 : index
    %95 = vector.load %arg15[%c0_47, %c0_48] : memref<32x16xbf16, #tpu.memory_space<vmem>>, vector<32x16xbf16>
    %cst_49 = arith.constant dense<0.000000e+00> : vector<256x16xf32>
    %96 = tpu.matmul %94, %95, %cst_49 {dimension_numbers = #tpu.dot_dimension_numbers<[1], [0], [0], [1], [0, 0, 1, 1], [], []>} : vector<256x32xbf16>, vector<32x16xbf16>, vector<256x16xf32> -> vector<256x16xf32>
    %97 = vector.extract_strided_slice %96 {offsets = [0, 0], sizes = [256, 8], strides = [1, 1]} : vector<256x16xf32> to vector<256x8xf32>
    %98 = arith.truncf %97 : vector<256x8xf32> to vector<256x8xbf16>
    %99 = vector.extract_strided_slice %96 {offsets = [0, 8], sizes = [256, 8], strides = [1, 1]} : vector<256x16xf32> to vector<256x8xf32>
    %100 = arith.truncf %99 : vector<256x8xf32> to vector<256x8xbf16>
    %c0_50 = arith.constant 0 : index
    %c0_51 = arith.constant 0 : index
    %101 = vector.load %arg25[%c0_50, %c0_51] : memref<4x8xf32, #tpu.memory_space<vmem>>, vector<4x8xf32>
    %c0_52 = arith.constant 0 : index
    %c0_53 = arith.constant 0 : index
    %102 = vector.load %arg17[%c0_52, %c0_53] : memref<1x8xf32, #tpu.memory_space<vmem>>, vector<1x8xf32>
    %c0_54 = arith.constant 0 : index
    %c0_55 = arith.constant 0 : index
    %103 = vector.load %arg18[%c0_54, %c0_55] : memref<1x8xf32, #tpu.memory_space<vmem>>, vector<1x8xf32>
    %cst_56 = arith.constant dense<0.000000e+00> : vector<4xf32>
    %104 = vector.multi_reduction <add>, %101, %cst_56 [1] : vector<4x8xf32> to vector<4xf32>
    %105 = vector.shape_cast %104 : vector<4xf32> to vector<4x1xf32>
    %cst_57 = arith.constant 8.000000e+00 : f32
    %106 = vector.broadcast %cst_57 : f32 to vector<4x1xf32>
    %107 = arith.divf %105, %106 : vector<4x1xf32>
    %108 = vector.broadcast %107 : vector<4x1xf32> to vector<4x8xf32>
    %109 = arith.subf %101, %108 : vector<4x8xf32>
    %110 = arith.mulf %109, %109 : vector<4x8xf32>
    %cst_58 = arith.constant dense<0.000000e+00> : vector<4xf32>
    %111 = vector.multi_reduction <add>, %110, %cst_58 [1] : vector<4x8xf32> to vector<4xf32>
    %112 = vector.shape_cast %111 : vector<4xf32> to vector<4x1xf32>
    %cst_59 = arith.constant 8.000000e+00 : f32
    %113 = vector.broadcast %cst_59 : f32 to vector<4x1xf32>
    %114 = arith.divf %112, %113 : vector<4x1xf32>
    %115 = vector.broadcast %107 : vector<4x1xf32> to vector<4x8xf32>
    %116 = arith.subf %101, %115 : vector<4x8xf32>
    %cst_60 = arith.constant 9.99999974E-6 : f32
    %117 = vector.broadcast %cst_60 : f32 to vector<4x1xf32>
    %118 = arith.addf %114, %117 : vector<4x1xf32>
    %119 = math.rsqrt %118 : vector<4x1xf32>
    %120 = vector.broadcast %119 : vector<4x1xf32> to vector<4x8xf32>
    %121 = arith.mulf %116, %120 : vector<4x8xf32>
    %122 = vector.broadcast %102 : vector<1x8xf32> to vector<4x8xf32>
    %123 = arith.mulf %121, %122 : vector<4x8xf32>
    %124 = vector.broadcast %103 : vector<1x8xf32> to vector<4x8xf32>
    %125 = arith.addf %123, %124 : vector<4x8xf32>
    %126 = arith.truncf %125 : vector<4x8xf32> to vector<4x8xbf16>
    %c0_61 = arith.constant 0 : index
    %c0_62 = arith.constant 0 : index
    %127 = vector.load %arg16[%c0_61, %c0_62] : memref<8x8xbf16, #tpu.memory_space<vmem>>, vector<8x8xbf16>
    %cst_63 = arith.constant dense<0.000000e+00> : vector<4x8xf32>
    %128 = tpu.matmul %126, %127, %cst_63 {dimension_numbers = #tpu.dot_dimension_numbers<[1], [0], [0], [1], [0, 0, 1, 1], [], []>} : vector<4x8xbf16>, vector<8x8xbf16>, vector<4x8xf32> -> vector<4x8xf32>
    %cst_64 = arith.constant 0.353553385 : f32
    %129 = vector.broadcast %cst_64 : f32 to vector<4x8xf32>
    %130 = arith.mulf %128, %129 : vector<4x8xf32>
    %131 = arith.truncf %130 : vector<4x8xf32> to vector<4x8xbf16>
    %cst_65 = arith.constant dense<0.000000e+00> : vector<4x256xf32>
    %132 = tpu.matmul %131, %98, %cst_65 {dimension_numbers = #tpu.dot_dimension_numbers<[1], [1], [0], [0], [0, 0, 1, 0], [], []>} : vector<4x8xbf16>, vector<256x8xbf16>, vector<4x256xf32> -> vector<4x256xf32>
    %cst_66 = arith.constant dense<0xFF800000> : vector<256xf32>
    %133 = vector.multi_reduction <maximumf>, %132, %cst_66 [0] : vector<4x256xf32> to vector<256xf32>
    %134 = vector.shape_cast %133 : vector<256xf32> to vector<1x256xf32>
    %135 = vector.broadcast %134 : vector<1x256xf32> to vector<4x256xf32>
    %136 = arith.subf %132, %135 : vector<4x256xf32>
    %137 = math.exp %136 : vector<4x256xf32>
    %cst_67 = arith.constant dense<0.000000e+00> : vector<256xf32>
    %138 = vector.multi_reduction <add>, %137, %cst_67 [0] : vector<4x256xf32> to vector<256xf32>
    %139 = vector.shape_cast %138 : vector<256xf32> to vector<1x256xf32>
    %140 = tpu.reciprocal %139 {approx = true} : vector<1x256xf32> -> vector<1x256xf32>
    %141 = vector.broadcast %140 : vector<1x256xf32> to vector<4x256xf32>
    %142 = arith.mulf %137, %141 : vector<4x256xf32>
    %cst_68 = arith.constant 9.99999993E-9 : f32
    %143 = vector.broadcast %cst_68 : f32 to vector<4x256xf32>
    %144 = arith.addf %142, %143 : vector<4x256xf32>
    %cst_69 = arith.constant dense<0.000000e+00> : vector<4xf32>
    %145 = vector.multi_reduction <add>, %144, %cst_69 [1] : vector<4x256xf32> to vector<4xf32>
    %146 = vector.shape_cast %145 : vector<4xf32> to vector<4x1xf32>
    %147 = tpu.reciprocal %146 {approx = true} : vector<4x1xf32> -> vector<4x1xf32>
    %148 = vector.broadcast %147 : vector<4x1xf32> to vector<4x256xf32>
    %149 = arith.mulf %144, %148 : vector<4x256xf32>
    %150 = arith.truncf %149 : vector<4x256xf32> to vector<4x256xbf16>
    %cst_70 = arith.constant dense<0.000000e+00> : vector<4x8xf32>
    %151 = tpu.matmul %150, %100, %cst_70 {dimension_numbers = #tpu.dot_dimension_numbers<[1], [0], [0], [1], [0, 0, 1, 1], [], []>} : vector<4x256xbf16>, vector<256x8xbf16>, vector<4x8xf32> -> vector<4x8xf32>
    %c0_71 = arith.constant 0 : index
    %c0_72 = arith.constant 0 : index
    %152 = vector.load %arg19[%c0_71, %c0_72] : memref<1x8xf32, #tpu.memory_space<vmem>>, vector<1x8xf32>
    %c0_73 = arith.constant 0 : index
    %c0_74 = arith.constant 0 : index
    %153 = vector.load %arg20[%c0_73, %c0_74] : memref<1x8xf32, #tpu.memory_space<vmem>>, vector<1x8xf32>
    %cst_75 = arith.constant dense<0.000000e+00> : vector<4xf32>
    %154 = vector.multi_reduction <add>, %151, %cst_75 [1] : vector<4x8xf32> to vector<4xf32>
    %155 = vector.shape_cast %154 : vector<4xf32> to vector<4x1xf32>
    %cst_76 = arith.constant 8.000000e+00 : f32
    %156 = vector.broadcast %cst_76 : f32 to vector<4x1xf32>
    %157 = arith.divf %155, %156 : vector<4x1xf32>
    %158 = vector.broadcast %157 : vector<4x1xf32> to vector<4x8xf32>
    %159 = arith.subf %151, %158 : vector<4x8xf32>
    %160 = arith.mulf %159, %159 : vector<4x8xf32>
    %cst_77 = arith.constant dense<0.000000e+00> : vector<4xf32>
    %161 = vector.multi_reduction <add>, %160, %cst_77 [1] : vector<4x8xf32> to vector<4xf32>
    %162 = vector.shape_cast %161 : vector<4xf32> to vector<4x1xf32>
    %cst_78 = arith.constant 8.000000e+00 : f32
    %163 = vector.broadcast %cst_78 : f32 to vector<4x1xf32>
    %164 = arith.divf %162, %163 : vector<4x1xf32>
    %165 = vector.broadcast %157 : vector<4x1xf32> to vector<4x8xf32>
    %166 = arith.subf %151, %165 : vector<4x8xf32>
    %cst_79 = arith.constant 9.99999974E-6 : f32
    %167 = vector.broadcast %cst_79 : f32 to vector<4x1xf32>
    %168 = arith.addf %164, %167 : vector<4x1xf32>
    %169 = math.rsqrt %168 : vector<4x1xf32>
    %170 = vector.broadcast %169 : vector<4x1xf32> to vector<4x8xf32>
    %171 = arith.mulf %166, %170 : vector<4x8xf32>
    %172 = vector.broadcast %152 : vector<1x8xf32> to vector<4x8xf32>
    %173 = arith.mulf %171, %172 : vector<4x8xf32>
    %174 = vector.broadcast %153 : vector<1x8xf32> to vector<4x8xf32>
    %175 = arith.addf %173, %174 : vector<4x8xf32>
    %176 = arith.truncf %175 : vector<4x8xf32> to vector<4x8xbf16>
    %c0_80 = arith.constant 0 : index
    %c0_81 = arith.constant 0 : index
    %177 = vector.load %arg21[%c0_80, %c0_81] : memref<8x16xbf16, #tpu.memory_space<vmem>>, vector<8x16xbf16>
    %cst_82 = arith.constant dense<0.000000e+00> : vector<4x16xf32>
    %178 = tpu.matmul %176, %177, %cst_82 {dimension_numbers = #tpu.dot_dimension_numbers<[1], [0], [0], [1], [0, 0, 1, 1], [], []>} : vector<4x8xbf16>, vector<8x16xbf16>, vector<4x16xf32> -> vector<4x16xf32>
    %c0_83 = arith.constant 0 : index
    %c0_84 = arith.constant 0 : index
    %179 = vector.load %arg22[%c0_83, %c0_84] : memref<1x16xf32, #tpu.memory_space<vmem>>, vector<1x16xf32>
    %180 = vector.broadcast %179 : vector<1x16xf32> to vector<4x16xf32>
    %181 = arith.addf %178, %180 : vector<4x16xf32>
    %cst_85 = arith.constant 0.000000e+00 : f32
    %182 = vector.broadcast %cst_85 : f32 to vector<4x16xf32>
    %183 = arith.maximumf %181, %182 : vector<4x16xf32>
    %184 = arith.truncf %183 : vector<4x16xf32> to vector<4x16xbf16>
    %c0_86 = arith.constant 0 : index
    %c0_87 = arith.constant 0 : index
    %185 = vector.load %arg23[%c0_86, %c0_87] : memref<16x8xbf16, #tpu.memory_space<vmem>>, vector<16x8xbf16>
    %cst_88 = arith.constant dense<0.000000e+00> : vector<4x8xf32>
    %186 = tpu.matmul %184, %185, %cst_88 {dimension_numbers = #tpu.dot_dimension_numbers<[1], [0], [0], [1], [0, 0, 1, 1], [], []>} : vector<4x16xbf16>, vector<16x8xbf16>, vector<4x8xf32> -> vector<4x8xf32>
    %c0_89 = arith.constant 0 : index
    %c0_90 = arith.constant 0 : index
    %187 = vector.load %arg24[%c0_89, %c0_90] : memref<1x8xf32, #tpu.memory_space<vmem>>, vector<1x8xf32>
    %188 = vector.broadcast %187 : vector<1x8xf32> to vector<4x8xf32>
    %189 = arith.addf %186, %188 : vector<4x8xf32>
    %190 = arith.addf %151, %189 : vector<4x8xf32>
    %c0_91 = arith.constant 0 : index
    %c0_92 = arith.constant 0 : index
    %191 = vector.load %arg17[%c0_91, %c0_92] : memref<1x8xf32, #tpu.memory_space<vmem>>, vector<1x8xf32>
    %c0_93 = arith.constant 0 : index
    %c0_94 = arith.constant 0 : index
    %192 = vector.load %arg18[%c0_93, %c0_94] : memref<1x8xf32, #tpu.memory_space<vmem>>, vector<1x8xf32>
    %cst_95 = arith.constant dense<0.000000e+00> : vector<4xf32>
    %193 = vector.multi_reduction <add>, %190, %cst_95 [1] : vector<4x8xf32> to vector<4xf32>
    %194 = vector.shape_cast %193 : vector<4xf32> to vector<4x1xf32>
    %cst_96 = arith.constant 8.000000e+00 : f32
    %195 = vector.broadcast %cst_96 : f32 to vector<4x1xf32>
    %196 = arith.divf %194, %195 : vector<4x1xf32>
    %197 = vector.broadcast %196 : vector<4x1xf32> to vector<4x8xf32>
    %198 = arith.subf %190, %197 : vector<4x8xf32>
    %199 = arith.mulf %198, %198 : vector<4x8xf32>
    %cst_97 = arith.constant dense<0.000000e+00> : vector<4xf32>
    %200 = vector.multi_reduction <add>, %199, %cst_97 [1] : vector<4x8xf32> to vector<4xf32>
    %201 = vector.shape_cast %200 : vector<4xf32> to vector<4x1xf32>
    %cst_98 = arith.constant 8.000000e+00 : f32
    %202 = vector.broadcast %cst_98 : f32 to vector<4x1xf32>
    %203 = arith.divf %201, %202 : vector<4x1xf32>
    %204 = vector.broadcast %196 : vector<4x1xf32> to vector<4x8xf32>
    %205 = arith.subf %190, %204 : vector<4x8xf32>
    %cst_99 = arith.constant 9.99999974E-6 : f32
    %206 = vector.broadcast %cst_99 : f32 to vector<4x1xf32>
    %207 = arith.addf %203, %206 : vector<4x1xf32>
    %208 = math.rsqrt %207 : vector<4x1xf32>
    %209 = vector.broadcast %208 : vector<4x1xf32> to vector<4x8xf32>
    %210 = arith.mulf %205, %209 : vector<4x8xf32>
    %211 = vector.broadcast %191 : vector<1x8xf32> to vector<4x8xf32>
    %212 = arith.mulf %210, %211 : vector<4x8xf32>
    %213 = vector.broadcast %192 : vector<1x8xf32> to vector<4x8xf32>
    %214 = arith.addf %212, %213 : vector<4x8xf32>
    %215 = arith.truncf %214 : vector<4x8xf32> to vector<4x8xbf16>
    %c0_100 = arith.constant 0 : index
    %c0_101 = arith.constant 0 : index
    %216 = vector.load %arg16[%c0_100, %c0_101] : memref<8x8xbf16, #tpu.memory_space<vmem>>, vector<8x8xbf16>
    %cst_102 = arith.constant dense<0.000000e+00> : vector<4x8xf32>
    %217 = tpu.matmul %215, %216, %cst_102 {dimension_numbers = #tpu.dot_dimension_numbers<[1], [0], [0], [1], [0, 0, 1, 1], [], []>} : vector<4x8xbf16>, vector<8x8xbf16>, vector<4x8xf32> -> vector<4x8xf32>
    %cst_103 = arith.constant 0.353553385 : f32
    %218 = vector.broadcast %cst_103 : f32 to vector<4x8xf32>
    %219 = arith.mulf %217, %218 : vector<4x8xf32>
    %220 = arith.truncf %219 : vector<4x8xf32> to vector<4x8xbf16>
    %cst_104 = arith.constant dense<0.000000e+00> : vector<4x256xf32>
    %221 = tpu.matmul %220, %98, %cst_104 {dimension_numbers = #tpu.dot_dimension_numbers<[1], [1], [0], [0], [0, 0, 1, 0], [], []>} : vector<4x8xbf16>, vector<256x8xbf16>, vector<4x256xf32> -> vector<4x256xf32>
    %cst_105 = arith.constant dense<0xFF800000> : vector<256xf32>
    %222 = vector.multi_reduction <maximumf>, %221, %cst_105 [0] : vector<4x256xf32> to vector<256xf32>
    %223 = vector.shape_cast %222 : vector<256xf32> to vector<1x256xf32>
    %224 = vector.broadcast %223 : vector<1x256xf32> to vector<4x256xf32>
    %225 = arith.subf %221, %224 : vector<4x256xf32>
    %226 = math.exp %225 : vector<4x256xf32>
    %cst_106 = arith.constant dense<0.000000e+00> : vector<256xf32>
    %227 = vector.multi_reduction <add>, %226, %cst_106 [0] : vector<4x256xf32> to vector<256xf32>
    %228 = vector.shape_cast %227 : vector<256xf32> to vector<1x256xf32>
    %229 = tpu.reciprocal %228 {approx = true} : vector<1x256xf32> -> vector<1x256xf32>
    %230 = vector.broadcast %229 : vector<1x256xf32> to vector<4x256xf32>
    %231 = arith.mulf %226, %230 : vector<4x256xf32>
    %cst_107 = arith.constant 9.99999993E-9 : f32
    %232 = vector.broadcast %cst_107 : f32 to vector<4x256xf32>
    %233 = arith.addf %231, %232 : vector<4x256xf32>
    %cst_108 = arith.constant dense<0.000000e+00> : vector<4xf32>
    %234 = vector.multi_reduction <add>, %233, %cst_108 [1] : vector<4x256xf32> to vector<4xf32>
    %235 = vector.shape_cast %234 : vector<4xf32> to vector<4x1xf32>
    %236 = tpu.reciprocal %235 {approx = true} : vector<4x1xf32> -> vector<4x1xf32>
    %237 = vector.broadcast %236 : vector<4x1xf32> to vector<4x256xf32>
    %238 = arith.mulf %233, %237 : vector<4x256xf32>
    %239 = arith.truncf %238 : vector<4x256xf32> to vector<4x256xbf16>
    %cst_109 = arith.constant dense<0.000000e+00> : vector<4x8xf32>
    %240 = tpu.matmul %239, %100, %cst_109 {dimension_numbers = #tpu.dot_dimension_numbers<[1], [0], [0], [1], [0, 0, 1, 1], [], []>} : vector<4x256xbf16>, vector<256x8xbf16>, vector<4x8xf32> -> vector<4x8xf32>
    %c0_110 = arith.constant 0 : index
    %c0_111 = arith.constant 0 : index
    %241 = vector.load %arg19[%c0_110, %c0_111] : memref<1x8xf32, #tpu.memory_space<vmem>>, vector<1x8xf32>
    %c0_112 = arith.constant 0 : index
    %c0_113 = arith.constant 0 : index
    %242 = vector.load %arg20[%c0_112, %c0_113] : memref<1x8xf32, #tpu.memory_space<vmem>>, vector<1x8xf32>
    %cst_114 = arith.constant dense<0.000000e+00> : vector<4xf32>
    %243 = vector.multi_reduction <add>, %240, %cst_114 [1] : vector<4x8xf32> to vector<4xf32>
    %244 = vector.shape_cast %243 : vector<4xf32> to vector<4x1xf32>
    %cst_115 = arith.constant 8.000000e+00 : f32
    %245 = vector.broadcast %cst_115 : f32 to vector<4x1xf32>
    %246 = arith.divf %244, %245 : vector<4x1xf32>
    %247 = vector.broadcast %246 : vector<4x1xf32> to vector<4x8xf32>
    %248 = arith.subf %240, %247 : vector<4x8xf32>
    %249 = arith.mulf %248, %248 : vector<4x8xf32>
    %cst_116 = arith.constant dense<0.000000e+00> : vector<4xf32>
    %250 = vector.multi_reduction <add>, %249, %cst_116 [1] : vector<4x8xf32> to vector<4xf32>
    %251 = vector.shape_cast %250 : vector<4xf32> to vector<4x1xf32>
    %cst_117 = arith.constant 8.000000e+00 : f32
    %252 = vector.broadcast %cst_117 : f32 to vector<4x1xf32>
    %253 = arith.divf %251, %252 : vector<4x1xf32>
    %254 = vector.broadcast %246 : vector<4x1xf32> to vector<4x8xf32>
    %255 = arith.subf %240, %254 : vector<4x8xf32>
    %cst_118 = arith.constant 9.99999974E-6 : f32
    %256 = vector.broadcast %cst_118 : f32 to vector<4x1xf32>
    %257 = arith.addf %253, %256 : vector<4x1xf32>
    %258 = math.rsqrt %257 : vector<4x1xf32>
    %259 = vector.broadcast %258 : vector<4x1xf32> to vector<4x8xf32>
    %260 = arith.mulf %255, %259 : vector<4x8xf32>
    %261 = vector.broadcast %241 : vector<1x8xf32> to vector<4x8xf32>
    %262 = arith.mulf %260, %261 : vector<4x8xf32>
    %263 = vector.broadcast %242 : vector<1x8xf32> to vector<4x8xf32>
    %264 = arith.addf %262, %263 : vector<4x8xf32>
    %265 = arith.truncf %264 : vector<4x8xf32> to vector<4x8xbf16>
    %c0_119 = arith.constant 0 : index
    %c0_120 = arith.constant 0 : index
    %266 = vector.load %arg21[%c0_119, %c0_120] : memref<8x16xbf16, #tpu.memory_space<vmem>>, vector<8x16xbf16>
    %cst_121 = arith.constant dense<0.000000e+00> : vector<4x16xf32>
    %267 = tpu.matmul %265, %266, %cst_121 {dimension_numbers = #tpu.dot_dimension_numbers<[1], [0], [0], [1], [0, 0, 1, 1], [], []>} : vector<4x8xbf16>, vector<8x16xbf16>, vector<4x16xf32> -> vector<4x16xf32>
    %c0_122 = arith.constant 0 : index
    %c0_123 = arith.constant 0 : index
    %268 = vector.load %arg22[%c0_122, %c0_123] : memref<1x16xf32, #tpu.memory_space<vmem>>, vector<1x16xf32>
    %269 = vector.broadcast %268 : vector<1x16xf32> to vector<4x16xf32>
    %270 = arith.addf %267, %269 : vector<4x16xf32>
    %cst_124 = arith.constant 0.000000e+00 : f32
    %271 = vector.broadcast %cst_124 : f32 to vector<4x16xf32>
    %272 = arith.maximumf %270, %271 : vector<4x16xf32>
    %273 = arith.truncf %272 : vector<4x16xf32> to vector<4x16xbf16>
    %c0_125 = arith.constant 0 : index
    %c0_126 = arith.constant 0 : index
    %274 = vector.load %arg23[%c0_125, %c0_126] : memref<16x8xbf16, #tpu.memory_space<vmem>>, vector<16x8xbf16>
    %cst_127 = arith.constant dense<0.000000e+00> : vector<4x8xf32>
    %275 = tpu.matmul %273, %274, %cst_127 {dimension_numbers = #tpu.dot_dimension_numbers<[1], [0], [0], [1], [0, 0, 1, 1], [], []>} : vector<4x16xbf16>, vector<16x8xbf16>, vector<4x8xf32> -> vector<4x8xf32>
    %c0_128 = arith.constant 0 : index
    %c0_129 = arith.constant 0 : index
    %276 = vector.load %arg24[%c0_128, %c0_129] : memref<1x8xf32, #tpu.memory_space<vmem>>, vector<1x8xf32>
    %277 = vector.broadcast %276 : vector<1x8xf32> to vector<4x8xf32>
    %278 = arith.addf %275, %277 : vector<4x8xf32>
    %279 = arith.addf %240, %278 : vector<4x8xf32>
    %c0_130 = arith.constant 0 : index
    %c0_131 = arith.constant 0 : index
    %280 = vector.load %arg17[%c0_130, %c0_131] : memref<1x8xf32, #tpu.memory_space<vmem>>, vector<1x8xf32>
    %c0_132 = arith.constant 0 : index
    %c0_133 = arith.constant 0 : index
    %281 = vector.load %arg18[%c0_132, %c0_133] : memref<1x8xf32, #tpu.memory_space<vmem>>, vector<1x8xf32>
    %cst_134 = arith.constant dense<0.000000e+00> : vector<4xf32>
    %282 = vector.multi_reduction <add>, %279, %cst_134 [1] : vector<4x8xf32> to vector<4xf32>
    %283 = vector.shape_cast %282 : vector<4xf32> to vector<4x1xf32>
    %cst_135 = arith.constant 8.000000e+00 : f32
    %284 = vector.broadcast %cst_135 : f32 to vector<4x1xf32>
    %285 = arith.divf %283, %284 : vector<4x1xf32>
    %286 = vector.broadcast %285 : vector<4x1xf32> to vector<4x8xf32>
    %287 = arith.subf %279, %286 : vector<4x8xf32>
    %288 = arith.mulf %287, %287 : vector<4x8xf32>
    %cst_136 = arith.constant dense<0.000000e+00> : vector<4xf32>
    %289 = vector.multi_reduction <add>, %288, %cst_136 [1] : vector<4x8xf32> to vector<4xf32>
    %290 = vector.shape_cast %289 : vector<4xf32> to vector<4x1xf32>
    %cst_137 = arith.constant 8.000000e+00 : f32
    %291 = vector.broadcast %cst_137 : f32 to vector<4x1xf32>
    %292 = arith.divf %290, %291 : vector<4x1xf32>
    %293 = vector.broadcast %285 : vector<4x1xf32> to vector<4x8xf32>
    %294 = arith.subf %279, %293 : vector<4x8xf32>
    %cst_138 = arith.constant 9.99999974E-6 : f32
    %295 = vector.broadcast %cst_138 : f32 to vector<4x1xf32>
    %296 = arith.addf %292, %295 : vector<4x1xf32>
    %297 = math.rsqrt %296 : vector<4x1xf32>
    %298 = vector.broadcast %297 : vector<4x1xf32> to vector<4x8xf32>
    %299 = arith.mulf %294, %298 : vector<4x8xf32>
    %300 = vector.broadcast %280 : vector<1x8xf32> to vector<4x8xf32>
    %301 = arith.mulf %299, %300 : vector<4x8xf32>
    %302 = vector.broadcast %281 : vector<1x8xf32> to vector<4x8xf32>
    %303 = arith.addf %301, %302 : vector<4x8xf32>
    %304 = arith.truncf %303 : vector<4x8xf32> to vector<4x8xbf16>
    %c0_139 = arith.constant 0 : index
    %c0_140 = arith.constant 0 : index
    %305 = vector.load %arg16[%c0_139, %c0_140] : memref<8x8xbf16, #tpu.memory_space<vmem>>, vector<8x8xbf16>
    %cst_141 = arith.constant dense<0.000000e+00> : vector<4x8xf32>
    %306 = tpu.matmul %304, %305, %cst_141 {dimension_numbers = #tpu.dot_dimension_numbers<[1], [0], [0], [1], [0, 0, 1, 1], [], []>} : vector<4x8xbf16>, vector<8x8xbf16>, vector<4x8xf32> -> vector<4x8xf32>
    %cst_142 = arith.constant 0.353553385 : f32
    %307 = vector.broadcast %cst_142 : f32 to vector<4x8xf32>
    %308 = arith.mulf %306, %307 : vector<4x8xf32>
    %309 = arith.truncf %308 : vector<4x8xf32> to vector<4x8xbf16>
    %cst_143 = arith.constant dense<0.000000e+00> : vector<4x256xf32>
    %310 = tpu.matmul %309, %98, %cst_143 {dimension_numbers = #tpu.dot_dimension_numbers<[1], [1], [0], [0], [0, 0, 1, 0], [], []>} : vector<4x8xbf16>, vector<256x8xbf16>, vector<4x256xf32> -> vector<4x256xf32>
    %cst_144 = arith.constant dense<0xFF800000> : vector<256xf32>
    %311 = vector.multi_reduction <maximumf>, %310, %cst_144 [0] : vector<4x256xf32> to vector<256xf32>
    %312 = vector.shape_cast %311 : vector<256xf32> to vector<1x256xf32>
    %313 = vector.broadcast %312 : vector<1x256xf32> to vector<4x256xf32>
    %314 = arith.subf %310, %313 : vector<4x256xf32>
    %315 = math.exp %314 : vector<4x256xf32>
    %cst_145 = arith.constant dense<0.000000e+00> : vector<256xf32>
    %316 = vector.multi_reduction <add>, %315, %cst_145 [0] : vector<4x256xf32> to vector<256xf32>
    %317 = vector.shape_cast %316 : vector<256xf32> to vector<1x256xf32>
    %318 = tpu.reciprocal %317 {approx = true} : vector<1x256xf32> -> vector<1x256xf32>
    %319 = vector.broadcast %318 : vector<1x256xf32> to vector<4x256xf32>
    %320 = arith.mulf %315, %319 : vector<4x256xf32>
    %cst_146 = arith.constant 9.99999993E-9 : f32
    %321 = vector.broadcast %cst_146 : f32 to vector<4x256xf32>
    %322 = arith.addf %320, %321 : vector<4x256xf32>
    %cst_147 = arith.constant dense<0.000000e+00> : vector<4xf32>
    %323 = vector.multi_reduction <add>, %322, %cst_147 [1] : vector<4x256xf32> to vector<4xf32>
    %324 = vector.shape_cast %323 : vector<4xf32> to vector<4x1xf32>
    %325 = tpu.reciprocal %324 {approx = true} : vector<4x1xf32> -> vector<4x1xf32>
    %326 = vector.broadcast %325 : vector<4x1xf32> to vector<4x256xf32>
    %327 = arith.mulf %322, %326 : vector<4x256xf32>
    %328 = arith.truncf %327 : vector<4x256xf32> to vector<4x256xbf16>
    %cst_148 = arith.constant dense<0.000000e+00> : vector<4x8xf32>
    %329 = tpu.matmul %328, %100, %cst_148 {dimension_numbers = #tpu.dot_dimension_numbers<[1], [0], [0], [1], [0, 0, 1, 1], [], []>} : vector<4x256xbf16>, vector<256x8xbf16>, vector<4x8xf32> -> vector<4x8xf32>
    %c0_149 = arith.constant 0 : index
    %c0_150 = arith.constant 0 : index
    %330 = vector.load %arg19[%c0_149, %c0_150] : memref<1x8xf32, #tpu.memory_space<vmem>>, vector<1x8xf32>
    %c0_151 = arith.constant 0 : index
    %c0_152 = arith.constant 0 : index
    %331 = vector.load %arg20[%c0_151, %c0_152] : memref<1x8xf32, #tpu.memory_space<vmem>>, vector<1x8xf32>
    %cst_153 = arith.constant dense<0.000000e+00> : vector<4xf32>
    %332 = vector.multi_reduction <add>, %329, %cst_153 [1] : vector<4x8xf32> to vector<4xf32>
    %333 = vector.shape_cast %332 : vector<4xf32> to vector<4x1xf32>
    %cst_154 = arith.constant 8.000000e+00 : f32
    %334 = vector.broadcast %cst_154 : f32 to vector<4x1xf32>
    %335 = arith.divf %333, %334 : vector<4x1xf32>
    %336 = vector.broadcast %335 : vector<4x1xf32> to vector<4x8xf32>
    %337 = arith.subf %329, %336 : vector<4x8xf32>
    %338 = arith.mulf %337, %337 : vector<4x8xf32>
    %cst_155 = arith.constant dense<0.000000e+00> : vector<4xf32>
    %339 = vector.multi_reduction <add>, %338, %cst_155 [1] : vector<4x8xf32> to vector<4xf32>
    %340 = vector.shape_cast %339 : vector<4xf32> to vector<4x1xf32>
    %cst_156 = arith.constant 8.000000e+00 : f32
    %341 = vector.broadcast %cst_156 : f32 to vector<4x1xf32>
    %342 = arith.divf %340, %341 : vector<4x1xf32>
    %343 = vector.broadcast %335 : vector<4x1xf32> to vector<4x8xf32>
    %344 = arith.subf %329, %343 : vector<4x8xf32>
    %cst_157 = arith.constant 9.99999974E-6 : f32
    %345 = vector.broadcast %cst_157 : f32 to vector<4x1xf32>
    %346 = arith.addf %342, %345 : vector<4x1xf32>
    %347 = math.rsqrt %346 : vector<4x1xf32>
    %348 = vector.broadcast %347 : vector<4x1xf32> to vector<4x8xf32>
    %349 = arith.mulf %344, %348 : vector<4x8xf32>
    %350 = vector.broadcast %330 : vector<1x8xf32> to vector<4x8xf32>
    %351 = arith.mulf %349, %350 : vector<4x8xf32>
    %352 = vector.broadcast %331 : vector<1x8xf32> to vector<4x8xf32>
    %353 = arith.addf %351, %352 : vector<4x8xf32>
    %354 = arith.truncf %353 : vector<4x8xf32> to vector<4x8xbf16>
    %c0_158 = arith.constant 0 : index
    %c0_159 = arith.constant 0 : index
    %355 = vector.load %arg21[%c0_158, %c0_159] : memref<8x16xbf16, #tpu.memory_space<vmem>>, vector<8x16xbf16>
    %cst_160 = arith.constant dense<0.000000e+00> : vector<4x16xf32>
    %356 = tpu.matmul %354, %355, %cst_160 {dimension_numbers = #tpu.dot_dimension_numbers<[1], [0], [0], [1], [0, 0, 1, 1], [], []>} : vector<4x8xbf16>, vector<8x16xbf16>, vector<4x16xf32> -> vector<4x16xf32>
    %c0_161 = arith.constant 0 : index
    %c0_162 = arith.constant 0 : index
    %357 = vector.load %arg22[%c0_161, %c0_162] : memref<1x16xf32, #tpu.memory_space<vmem>>, vector<1x16xf32>
    %358 = vector.broadcast %357 : vector<1x16xf32> to vector<4x16xf32>
    %359 = arith.addf %356, %358 : vector<4x16xf32>
    %cst_163 = arith.constant 0.000000e+00 : f32
    %360 = vector.broadcast %cst_163 : f32 to vector<4x16xf32>
    %361 = arith.maximumf %359, %360 : vector<4x16xf32>
    %362 = arith.truncf %361 : vector<4x16xf32> to vector<4x16xbf16>
    %c0_164 = arith.constant 0 : index
    %c0_165 = arith.constant 0 : index
    %363 = vector.load %arg23[%c0_164, %c0_165] : memref<16x8xbf16, #tpu.memory_space<vmem>>, vector<16x8xbf16>
    %cst_166 = arith.constant dense<0.000000e+00> : vector<4x8xf32>
    %364 = tpu.matmul %362, %363, %cst_166 {dimension_numbers = #tpu.dot_dimension_numbers<[1], [0], [0], [1], [0, 0, 1, 1], [], []>} : vector<4x16xbf16>, vector<16x8xbf16>, vector<4x8xf32> -> vector<4x8xf32>
    %c0_167 = arith.constant 0 : index
    %c0_168 = arith.constant 0 : index
    %365 = vector.load %arg24[%c0_167, %c0_168] : memref<1x8xf32, #tpu.memory_space<vmem>>, vector<1x8xf32>
    %366 = vector.broadcast %365 : vector<1x8xf32> to vector<4x8xf32>
    %367 = arith.addf %364, %366 : vector<4x8xf32>
    %368 = arith.addf %329, %367 : vector<4x8xf32>
    %cst_169 = arith.constant 9.99999968E-21 : f32
    %cst_170 = arith.constant 1.000000e+00 : f32
    %369 = vector.broadcast %cst_169 : f32 to vector<4x256xf32>
    %370 = arith.maximumf %369, %320 : vector<4x256xf32>
    %371 = vector.broadcast %cst_170 : f32 to vector<4x256xf32>
    %372 = arith.minimumf %371, %370 : vector<4x256xf32>
    %cst_171 = arith.constant 0.000000e+00 : f32
    %373 = vector.broadcast %cst_171 : f32 to vector<4x256xf32>
    %374 = arith.subf %373, %372 : vector<4x256xf32>
    %375 = math.log %372 : vector<4x256xf32>
    %376 = arith.mulf %374, %375 : vector<4x256xf32>
    %377 = vector.shape_cast %376 : vector<4x256xf32> to vector<1x4x256xf32>
    %cst_172 = arith.constant dense<0.000000e+00> : vector<1xf32>
    %378 = vector.multi_reduction <add>, %377, %cst_172 [1, 2] : vector<1x4x256xf32> to vector<1xf32>
    %379 = vector.shape_cast %378 : vector<1xf32> to vector<1x1x1xf32>
    %380 = vector.extract %379[0, 0, 0] : f32 from vector<1x1x1xf32>
    %cst_173 = arith.constant 1.024000e+03 : f32
    %381 = arith.divf %380, %cst_173 : f32
    %c0_174 = arith.constant 0 : index
    %c0_175 = arith.constant 0 : index
    %c0_176 = arith.constant 0 : index
    %382 = vector.load %arg26[%c0_174, %c0_175, %c0_176] : memref<1x4x8xf32, #tpu.memory_space<vmem>>, vector<1x4x8xf32>
    %383 = vector.shape_cast %382 : vector<1x4x8xf32> to vector<4x8xf32>
    %384 = vector.shape_cast %368 : vector<4x8xf32> to vector<1x4x8xf32>
    tpu.vector_store %arg26[%c0_174, %c0_175, %c0_176], %384 {strides = array<i32>} : memref<1x4x8xf32, #tpu.memory_space<vmem>>, vector<1x4x8xf32>,
    %c0_177 = arith.constant 0 : index
    %c0_178 = arith.constant 0 : index
    %c0_179 = arith.constant 0 : index
    %385 = vector.load %arg27[%c0_177, %c0_178, %c0_179] : memref<1x4x256xf32, #tpu.memory_space<vmem>>, vector<1x4x256xf32>
    %386 = vector.shape_cast %385 : vector<1x4x256xf32> to vector<4x256xf32>
    %387 = vector.shape_cast %320 : vector<4x256xf32> to vector<1x4x256xf32>
    tpu.vector_store %arg27[%c0_177, %c0_178, %c0_179], %387 {strides = array<i32>} : memref<1x4x256xf32, #tpu.memory_space<vmem>>, vector<1x4x256xf32>,
    %388 = vector.broadcast %381 : f32 to vector<1x1x1xf32>
    %c0_180 = arith.constant 0 : index
    %c0_181 = arith.constant 0 : index
    %c0_182 = arith.constant 0 : index
    %389 = vector.load %arg28[%c0_180, %c0_181, %c0_182] : memref<1x1x1xf32, #tpu.memory_space<vmem>>, vector<1x1x1xf32>
    tpu.vector_store %arg28[%c0_180, %c0_181, %c0_182], %388 {strides = array<i32>} : memref<1x1x1xf32, #tpu.memory_space<vmem>>, vector<1x1x1xf32>,
    %390 = vector.broadcast %34 : f32 to vector<1x1x1xf32>
    %c0_183 = arith.constant 0 : index
    %c0_184 = arith.constant 0 : index
    %c0_185 = arith.constant 0 : index
    %391 = vector.load %arg29[%c0_183, %c0_184, %c0_185] : memref<1x1x1xf32, #tpu.memory_space<vmem>>, vector<1x1x1xf32>
    tpu.vector_store %arg29[%c0_183, %c0_184, %c0_185], %390 {strides = array<i32>} : memref<1x1x1xf32, #tpu.memory_space<vmem>>, vector<1x1x1xf32>,
    %c0_186 = arith.constant 0 : index
    %c0_187 = arith.constant 0 : index
    %c0_188 = arith.constant 0 : index
    %392 = vector.load %arg30[%c0_186, %c0_187, %c0_188] : memref<1x4x256xf32, #tpu.memory_space<vmem>>, vector<1x4x256xf32>
    %393 = vector.shape_cast %392 : vector<1x4x256xf32> to vector<4x256xf32>
    %394 = vector.shape_cast %28 : vector<4x256xf32> to vector<1x4x256xf32>
    tpu.vector_store %arg30[%c0_186, %c0_187, %c0_188], %394 {strides = array<i32>} : memref<1x4x256xf32, #tpu.memory_space<vmem>>, vector<1x4x256xf32>,
    return
  }
  func.func @transform_0(%arg0: i32) -> (i32, i32, i32) {
    %c0_i32 = arith.constant 0 : i32
    %c0_i32_0 = arith.constant 0 : i32
    %c0_i32_1 = arith.constant 0 : i32
    return %arg0, %c0_i32, %c0_i32_0 : i32, i32, i32
  }
  func.func @transform_1(%arg0: i32) -> (i32, i32, i32) {
    %c0_i32 = arith.constant 0 : i32
    %c0_i32_0 = arith.constant 0 : i32
    %c0_i32_1 = arith.constant 0 : i32
    return %arg0, %c0_i32, %c0_i32_0 : i32, i32, i32
  }
  func.func @transform_2(%arg0: i32) -> (i32, i32, i32) {
    %c0_i32 = arith.constant 0 : i32
    %c0_i32_0 = arith.constant 0 : i32
    %c0_i32_1 = arith.constant 0 : i32
    return %arg0, %c0_i32, %c0_i32_0 : i32, i32, i32
  }
  func.func @transform_3(%arg0: i32) -> (i32, i32) {
    %c0_i32 = arith.constant 0 : i32
    %c0_i32_0 = arith.constant 0 : i32
    %c0_i32_1 = arith.constant 0 : i32
    return %c0_i32, %c0_i32_0 : i32, i32
  }
  func.func @transform_4(%arg0: i32) -> (i32, i32) {
    %c0_i32 = arith.constant 0 : i32
    %c0_i32_0 = arith.constant 0 : i32
    %c0_i32_1 = arith.constant 0 : i32
    return %c0_i32, %c0_i32_0 : i32, i32
  }
  func.func @transform_5(%arg0: i32) -> (i32, i32) {
    %c0_i32 = arith.constant 0 : i32
    %c0_i32_0 = arith.constant 0 : i32
    %c0_i32_1 = arith.constant 0 : i32
    return %c0_i32, %c0_i32_0 : i32, i32
  }
  func.func @transform_6(%arg0: i32) -> (i32, i32) {
    %c0_i32 = arith.constant 0 : i32
    %c0_i32_0 = arith.constant 0 : i32
    %c0_i32_1 = arith.constant 0 : i32
    return %c0_i32, %c0_i32_0 : i32, i32
  }
  func.func @transform_7(%arg0: i32) -> (i32, i32) {
    %c0_i32 = arith.constant 0 : i32
    %c0_i32_0 = arith.constant 0 : i32
    %c0_i32_1 = arith.constant 0 : i32
    return %c0_i32, %c0_i32_0 : i32, i32
  }
  func.func @transform_8(%arg0: i32) -> (i32, i32) {
    %c0_i32 = arith.constant 0 : i32
    %c0_i32_0 = arith.constant 0 : i32
    %c0_i32_1 = arith.constant 0 : i32
    return %c0_i32, %c0_i32_0 : i32, i32
  }
  func.func @transform_9(%arg0: i32) -> (i32, i32) {
    %c0_i32 = arith.constant 0 : i32
    %c0_i32_0 = arith.constant 0 : i32
    %c0_i32_1 = arith.constant 0 : i32
    return %c0_i32, %c0_i32_0 : i32, i32
  }
  func.func @transform_10(%arg0: i32) -> (i32, i32) {
    %c0_i32 = arith.constant 0 : i32
    %c0_i32_0 = arith.constant 0 : i32
    %c0_i32_1 = arith.constant 0 : i32
    return %c0_i32, %c0_i32_0 : i32, i32
  }
  func.func @transform_11(%arg0: i32) -> (i32, i32) {
    %c0_i32 = arith.constant 0 : i32
    %c0_i32_0 = arith.constant 0 : i32
    %c0_i32_1 = arith.constant 0 : i32
    return %c0_i32, %c0_i32_0 : i32, i32
  }
  func.func @transform_12(%arg0: i32) -> (i32, i32) {
    %c0_i32 = arith.constant 0 : i32
    %c0_i32_0 = arith.constant 0 : i32
    %c0_i32_1 = arith.constant 0 : i32
    return %c0_i32, %c0_i32_0 : i32, i32
  }
  func.func @transform_13(%arg0: i32) -> (i32, i32) {
    %c0_i32 = arith.constant 0 : i32
    %c0_i32_0 = arith.constant 0 : i32
    %c0_i32_1 = arith.constant 0 : i32
    return %c0_i32, %c0_i32_0 : i32, i32
  }
  func.func @transform_14(%arg0: i32) -> (i32, i32) {
    %c0_i32 = arith.constant 0 : i32
    %c0_i32_0 = arith.constant 0 : i32
    %c0_i32_1 = arith.constant 0 : i32
    return %c0_i32, %c0_i32_0 : i32, i32
  }
  func.func @transform_15(%arg0: i32) -> (i32, i32) {
    %c0_i32 = arith.constant 0 : i32
    %c0_i32_0 = arith.constant 0 : i32
    %c0_i32_1 = arith.constant 0 : i32
    return %c0_i32, %c0_i32_0 : i32, i32
  }
  func.func @transform_16(%arg0: i32) -> (i32, i32) {
    %c0_i32 = arith.constant 0 : i32
    %c0_i32_0 = arith.constant 0 : i32
    %c0_i32_1 = arith.constant 0 : i32
    return %c0_i32, %c0_i32_0 : i32, i32
  }
  func.func @transform_17(%arg0: i32) -> (i32, i32) {
    %c0_i32 = arith.constant 0 : i32
    %c0_i32_0 = arith.constant 0 : i32
    %c0_i32_1 = arith.constant 0 : i32
    return %c0_i32, %c0_i32_0 : i32, i32
  }
  func.func @transform_18(%arg0: i32) -> (i32, i32) {
    %c0_i32 = arith.constant 0 : i32
    %c0_i32_0 = arith.constant 0 : i32
    %c0_i32_1 = arith.constant 0 : i32
    return %c0_i32, %c0_i32_0 : i32, i32
  }
  func.func @transform_19(%arg0: i32) -> (i32, i32) {
    %c0_i32 = arith.constant 0 : i32
    %c0_i32_0 = arith.constant 0 : i32
    %c0_i32_1 = arith.constant 0 : i32
    return %c0_i32, %c0_i32_0 : i32, i32
  }
  func.func @transform_20(%arg0: i32) -> (i32, i32) {
    %c0_i32 = arith.constant 0 : i32
    %c0_i32_0 = arith.constant 0 : i32
    %c0_i32_1 = arith.constant 0 : i32
    return %c0_i32, %c0_i32_0 : i32, i32
  }
  func.func @transform_21(%arg0: i32) -> (i32, i32) {
    %c0_i32 = arith.constant 0 : i32
    %c0_i32_0 = arith.constant 0 : i32
    %c0_i32_1 = arith.constant 0 : i32
    return %c0_i32, %c0_i32_0 : i32, i32
  }
  func.func @transform_22(%arg0: i32) -> (i32, i32) {
    %c0_i32 = arith.constant 0 : i32
    %c0_i32_0 = arith.constant 0 : i32
    %c0_i32_1 = arith.constant 0 : i32
    return %c0_i32, %c0_i32_0 : i32, i32
  }
  func.func @transform_23(%arg0: i32) -> (i32, i32) {
    %c0_i32 = arith.constant 0 : i32
    %c0_i32_0 = arith.constant 0 : i32
    %c0_i32_1 = arith.constant 0 : i32
    return %c0_i32, %c0_i32_0 : i32, i32
  }
  func.func @transform_24(%arg0: i32) -> (i32, i32) {
    %c0_i32 = arith.constant 0 : i32
    %c0_i32_0 = arith.constant 0 : i32
    %c0_i32_1 = arith.constant 0 : i32
    return %c0_i32, %c0_i32_0 : i32, i32
  }
  func.func @transform_25(%arg0: i32) -> (i32, i32, i32) {
    %c0_i32 = arith.constant 0 : i32
    %c0_i32_0 = arith.constant 0 : i32
    %c0_i32_1 = arith.constant 0 : i32
    return %arg0, %c0_i32, %c0_i32_0 : i32, i32, i32
  }
  func.func @transform_26(%arg0: i32) -> (i32, i32, i32) {
    %c0_i32 = arith.constant 0 : i32
    %c0_i32_0 = arith.constant 0 : i32
    %c0_i32_1 = arith.constant 0 : i32
    return %arg0, %c0_i32, %c0_i32_0 : i32, i32, i32
  }
  func.func @transform_27(%arg0: i32) -> (i32, i32, i32) {
    %c0_i32 = arith.constant 0 : i32
    %c0_i32_0 = arith.constant 0 : i32
    %c0_i32_1 = arith.constant 0 : i32
    return %arg0, %c0_i32, %c0_i32_0 : i32, i32, i32
  }
  func.func @transform_28(%arg0: i32) -> (i32, i32, i32) {
    %c0_i32 = arith.constant 0 : i32
    %c0_i32_0 = arith.constant 0 : i32
    %c0_i32_1 = arith.constant 0 : i32
    return %arg0, %c0_i32, %c0_i32_0 : i32, i32, i32
  }
  func.func @transform_29(%arg0: i32) -> (i32, i32, i32) {
    %c0_i32 = arith.constant 0 : i32
    %c0_i32_0 = arith.constant 0 : i32
    %c0_i32_1 = arith.constant 0 : i32
    return %arg0, %c0_i32, %c0_i32_0 : i32, i32, i32
  }
}

</mosaic_0001>

<bundles_post_ra>
// kernel: tpu_custom_call.1
= control target key start
LH: loop header
LB: loop body
LE: loop exit
PB: predicated region body
PF: predicated region fallthrough
CT: control target
= control target key end

     0   :  { %s5014_s6 = smov 1   ;;  %s5015_s10 = smov 2   ;;  %s7428_s0 = inlined_call_operand.smem [shape: u32[30], index: -1, kind: input, shape index: {}] }
   0x1   :  { %s5056_s5 = sld [smem:[%s7428_s0]]   ;;  %s5016_s14 = smov 3  }
   0x2   :  { %s5061_s9 = sld [smem:[%s7428_s0 + %s5014_s6]]   ;;  %s5017_s18 = smov 4  }
   0x3   :  { %s5066_s13 = sld [smem:[%s7428_s0 + %s5015_s10]]   ;;  %s5018_s22 = smov 5  }
   0x4   :  { %s5071_s17 = sld [smem:[%s7428_s0 + %s5016_s14]]   ;;  %s5019_s26 = smov 6  }
   0x5   :  { %s5076_s21 = sld [smem:[%s7428_s0 + %s5017_s18]]   ;;  %s5020_s30 = smov 7  }
   0x6   :  { %s5081_s25 = sld [smem:[%s7428_s0 + %s5018_s22]]   ;;  %s5021_s4 = smov 8  }
   0x7   :  { %7442 = sst [smem:[#allocation9_spill]] %s5056_s5  ;;  %s5022_s10 = smov 9  }
   0x8   :  { %7443 = sst [smem:[#allocation10_spill]] %s5061_s9  ;;  %s5023_s15 = smov 10  }
   0x9   :  { %7444 = sst [smem:[#allocation11_spill]] %s5066_s13  ;;  %s5024_s20 = smov 11  }
   0xa   :  { %7445 = sst [smem:[#allocation12_spill]] %s5071_s17  ;;  %s5026_s1 = smov 13  }
   0xb   :  { %s5086_s29 = sld [smem:[%s7428_s0 + %s5019_s26]]   ;;  %s5025_s26 = smov 12  }
   0xc   :  { %s5091_s3 = sld [smem:[%s7428_s0 + %s5020_s30]]   ;;  %s5027_s7 = smov 14  }
   0xd   :  { %s5096_s8 = sld [smem:[%s7428_s0 + %s5021_s4]]   ;;  %s5029_s22 = smov 16  }
   0xe   :  { %s5101_s14 = sld [smem:[%s7428_s0 + %s5022_s10]]   ;;  %s5030_s28 = smov 17  }
   0xf   :  { %s5106_s19 = sld [smem:[%s7428_s0 + %s5023_s15]]   ;;  %s5028_s15 = smov 15  }
  0x10   :  { %s5111_s24 = sld [smem:[%s7428_s0 + %s5024_s20]]  }
  0x11   :  { %7446 = sst [smem:[#allocation13_spill]] %s5086_s29 }
  0x12   :  { %7447 = sst [smem:[#allocation14_spill]] %s5091_s3 }
  0x13   :  { %7448 = sst [smem:[#allocation15_spill]] %s5096_s8 }
  0x14   :  { %7449 = sst [smem:[#allocation16_spill]] %s5101_s14 }
  0x15   :  { %7450 = sst [smem:[#allocation17_spill]] %s5106_s19 }
  0x16   :  { %s5116_s30 = sld [smem:[%s7428_s0 + %s5025_s26]]  }
  0x17   :  { %s5121_s6 = sld [smem:[%s7428_s0 + %s5026_s1]]  }
  0x18   :  { %s5126_s12 = sld [smem:[%s7428_s0 + %s5027_s7]]   ;;  %s5031_s7 = smov 18  }
  0x19   :  { %s5131_s20 = sld [smem:[%s7428_s0 + %s5028_s15]]   ;;  %s5032_s15 = smov 19  }
  0x1a   :  { %s5136_s27 = sld [smem:[%s7428_s0 + %s5029_s22]]   ;;  %s5033_s22 = smov 20  }
  0x1b   :  { %s5141_s4 = sld [smem:[%s7428_s0 + %s5030_s28]]   ;;  %s5034_s28 = smov 21  }
  0x1c   :  { %s5146_s3 = sld [smem:[%s7428_s0 + %s5031_s7]]   ;;  %s5035_s7 = smov 22  }
  0x1d   :  { %7451 = sst [smem:[#allocation18_spill]] %s5121_s6 }
  0x1e   :  { %7452 = sst [smem:[#allocation19_spill]] %s5126_s12 }
  0x1f   :  { %7453 = sst [smem:[#allocation20_spill]] %s5131_s20 }
  0x20   :  { %7454 = sst [smem:[#allocation21_spill]] %s5136_s27 }
  0x21   :  { %7455 = sst [smem:[#allocation22_spill]] %s5141_s4 }
  0x22   :  { %7456 = sst [smem:[#allocation23_spill]] %s5146_s3 }
  0x23   :  { %s5151_s20 = sld [smem:[%s7428_s0 + %s5032_s15]]   ;;  %s5036_s15 = smov 23  }
  0x24   :  { %s5156_s27 = sld [smem:[%s7428_s0 + %s5033_s22]]   ;;  %s5037_s22 = smov 24  }
  0x25   :  { %s5161_s4 = sld [smem:[%s7428_s0 + %s5034_s28]]   ;;  %s5038_s28 = smov 25  }
  0x26   :  { %s5166_s3 = sld [smem:[%s7428_s0 + %s5035_s7]]   ;;  %s5039_s7 = smov 26  }
  0x29   :  { %7457 = sst [smem:[#allocation24_spill]] %s5151_s20 }
  0x2a   :  { %7458 = sst [smem:[#allocation25_spill]] %s5156_s27 }
  0x2b   :  { %7459 = sst [smem:[#allocation26_spill]] %s5161_s4 }
  0x2c   :  { %7460 = sst [smem:[#allocation27_spill]] %s5166_s3 }
  0x2d   :  { %s5171_s20 = sld [smem:[%s7428_s0 + %s5036_s15]]   ;;  %s5040_s15 = smov 27  }
  0x2e   :  { %s5176_s27 = sld [smem:[%s7428_s0 + %s5037_s22]]   ;;  %s5041_s22 = smov 28  }
  0x2f   :  { %s5181_s4 = sld [smem:[%s7428_s0 + %s5038_s28]]   ;;  %s5042_s28 = smov 29  }
  0x30   :  { %s5186_s3 = sld [smem:[%s7428_s0 + %s5039_s7]]  }
  0x31   :  { %s5196_s29 = sld [smem:[%s7428_s0 + %s5041_s22]]  }
  0x33   :  { %7461 = sst [smem:[#allocation28_spill]] %s5171_s20 }
  0x34   :  { %s5191_s20 = sld [smem:[%s7428_s0 + %s5040_s15]]  }
  0x35   :  { %7462 = sst [smem:[#allocation29_spill]] %s5181_s4 }
  0x36   :  { %s5201_s4 = sld [smem:[%s7428_s0 + %s5042_s28]]  }
  0x37   :  { %65 = vsyncpa [#allocation3], 0 }
  0x38   :  { %67 = vsyncpa [#allocation3 + $0x1], 0 }
  0x39   :  { %68 = vsyncpa [#allocation5], 0 }
  0x3a   :  { %70 = vsyncpa [#allocation5 + $0x1], 0  ;;  %s5203_s7 = smov 0   ;;  %s5205_s10 = smov 0  }
  0x3b   :  { %s5207_s11 = smov 0   ;;  %s5209_s15 = smov 0  }
  0x3c LB: > { %s7463_s19 = sld [smem:[#allocation17_spill]]  ;;  %s5224_s0 = sadd.s32 4294967295, %s5012_s15   ;;  %s5004_s10 = sphi %s5205_s10, %s7523_s10   ;;  %s5000_s7 = sphi %s5203_s7, %s7522_s7   ;;  %s5012_s15 = sphi %s5209_s15, %s7525_s15   ;;  %s5008_s11 = sphi %s5207_s11, %s7524_s11  }
  0x3d   : > { %s7464_s17 = sld [smem:[#allocation12_spill]]  ;;  %s7435_s16 = sadd.s32 4294967294, %s5012_s15  }
  0x3e   : > { %s7465_s14 = sld [smem:[#allocation16_spill]]  ;;  %s5228_s18 = sadd.s32 1, %s5012_s15  }
  0x3f   : > { %s7466_s12 = sld [smem:[#allocation19_spill]]  ;;  %s623_s22 = sadd.s32 1, %s5008_s11 }
  0x40   : > { %s7467_s8 = sld [smem:[#allocation15_spill]]  ;;  %s620_s23 = ssub.s32 %s5012_s15, %s5228_s18 }
  0x41   : > { %s7468_s6 = sld [smem:[#allocation18_spill]]  ;;  %p633_p0 = scmp.ne.s32.totalorder %s5008_s11, %s5004_s10 }
  0x42   : > { %p621_p1 = scmp.eq.s32.totalorder %s620_s23, 0  ;;  %p634_p2 = scmp.eq.s32.totalorder %s5224_s0, 1 }
  0x43   : > { %p639_p3 = scmp.ne.s32.totalorder %s5004_s10, %s5000_s7  ;;  %p640_p4 = scmp.eq.s32.totalorder %s7435_s16, 1 }
  0x44   : > { %s5241_s26 = scalar_select %p621_p1, %s5008_s11, %s623_s22  }
  0x45   : > { %p5243_p5 = por %p634_p2, %p633_p0  ;;  %p5247_p6 = por %p640_p4, %p639_p3 }
  0x46   : > { %p4400_p7 = scmp.ge.s32.totalorder %s5012_s15, 1  ;;  %p852_p8 = scmp.lt.s32.totalorder %s5012_s15, 3 }
  0x48   : > { %p853_p9 = pnand %p4400_p7, %p852_p8 }
  0x49   : > { %s7471_s5 = sld [smem:[#allocation9_spill]] (!%p853_p9)  ;;  %p954_p10 = scmp.lt.s32.totalorder (!%p853_p9), %s5224_s0, 1 }
  0x4a   : > { %856 = sbr.rel (%p853_p9) target bundleno = 5298 (0x14b2), region = 120  ;;  %s7472_s13 = sld [smem:[#allocation11_spill]] (!%p853_p9) }
  0x4b   : > { %s7508_s9 = sld [smem:[#allocation10_spill]] (!%p853_p9) }
  0x4f   : > { %s5255_s2 = scalar_select %p954_p10, %s5224_s0, 1  ;;  %v1202_v0 = vld [vmem:[%s7467_s8 + $0x10] sm:$0x3]  ;;  %vm1008_vm0 = vcmask 1041408   ;;  %v4562_v8 = vld [vmem:[%s5076_s21] sm:$0xff]  ;;  %vm1004_vm1 = vcmask 31744  }
  0x50   : > { %v1296_v2 = vunpack.c.l.b16 %v1202_v0  ;;  %v4580_v9 = vld [vmem:[%s7467_s8 + $0x8] sm:$0xff]  ;;  %v4579_v10 = vld [vmem:[%s7467_s8] sm:$0xff]  ;;  %vm1302_vm2 = vcmask 293888   ;;  %vm1477_vm3 = vcmask 261120  }
  0x51   : > { %s4559_s22 = sshll.u32 %s5255_s2, 3  ;;  %v5294_v21 = vld [vmem:[%s7465_s14] ss:$0 sm:$0xff]  ;;  %s971_s8 = scalar_lea.vmem %s5191_s20, %s5255_s2 }
  0x52   : > { %s958_s23 = scalar_lea.vmem %s7471_s5, %s4559_s22  ;;  %v1299_v3 = vpack.c.b16 %v1296_v2, %v1296_v2  ;;  %s4561_s22 = sshll.u32 %s5255_s2, 7 }
  0x53   : > { %v5260_v1 = vld [vmem:[%s958_s23] sm:$0xff]  ;;  %s5271_s23 = scalar_lea.vmem %s7472_s13, %s4561_s22  ;;  %s5045_s22 = smov 120  }
  0x54   : > { %980 = vst [vmem:[#allocation1] ss:$2 sm:$0xff] %v5260_v1  ;;  %v1352_v6 = vsel %vm1008_vm0, %v1299_v3, 0  ;;  %v4563_v11 = vld [vmem:[%s5271_s23] sm:$0xff]  ;;  %v4564_v12 = vld [vmem:[%s5271_s23 + $0x8] sm:$0xff]  ;;  %v4565_v13 = vld [vmem:[%s5271_s23 + $0x10] sm:$0xff] }
  0x55   : > { %v4566_v14 = vld [vmem:[%s5271_s23 + $0x18] sm:$0xff]  ;;  %v4567_v15 = vld [vmem:[%s5271_s23 + $0x20] sm:$0xff]  ;;  %v4568_v16 = vld [vmem:[%s5271_s23 + $0x28] sm:$0xff]  ;;  %s4584_s13 = sshll.u32 %s5224_s0, 3 }
  0x56   : > { %v4569_v17 = vld [vmem:[%s5271_s23 + $0x30] sm:$0xff]  ;;  %v4570_v18 = vld [vmem:[%s5271_s23 + $0x38] sm:$0xff]  ;;  %v4571_v22 = vld [vmem:[%s5271_s23 + $0x40] sm:$0xff] }
  0x57   : > { %v4572_v31 = vld [vmem:[%s5271_s23 + $0x48] sm:$0xff]  ;;  %v4573_v40 = vld [vmem:[%s5271_s23 + $0x50] sm:$0xff]  ;;  %v4574_v49 = vld [vmem:[%s5271_s23 + $0x58] sm:$0xff] }
  0x5b   : > { %v981_v4 = vld.sshfl [vmem:[#allocation1] sm:$0xff pattern:$0x75316420] }
  0x5c   : > { %v985_v5 = vpack.c.bf16 %v981_v4, %v981_v4 }
  0x5e   : > { %v1010_v7 = vsel %vm1008_vm0, %v985_v5, 0 }
  0x5f   : > { %1022 = vmatpush.bf16.msra.mxu0 %v1010_v7 }
  0x62   : > { %4414 = vmatmul.msk.bf16.vlgmr.msra.gmra.mxu0 %vm1004_vm1, %v4562_v8  ;;  %v5043_v8 = vmov 32.0  }
  0x63   : > { %1359 = vmatpush.bf16.msrb.mxu0 %v1352_v6  ;;  %4688 = vrcp.f32 %v5043_v8 }
  0x67   : > { %1360 = vmatpush.bf16.msrb.mxu0 %v4580_v9 }
  0x6b   : > { %1361 = vmatpush.bf16.msrb.mxu0 %v4579_v10 }
  0x72   : > { %4490 = vmatmul.msk.bf16.vlgmr.msrb.gmra.mxu0 %vm1302_vm2, %v4563_v11 }
  0x82   : > { %4491 = vmatmul.msk.bf16.gmra.mxu0 %vm1302_vm2, %v4564_v12  ;;  %v4689_v12 = vpop.eup %4688 }
  0x83   : > { %vm1579_vm4 = vweird.f32 %v4689_v12 }
  0x92   : > { %4492 = vmatmul.msk.bf16.gmra.mxu0 %vm1302_vm2, %v4565_v13 }
  0xa2   : > { %4493 = vmatmul.msk.bf16.gmra.mxu0 %vm1302_vm2, %v4566_v14  ;;  %v1575_v14 = vmul.f32 32.0, %v4689_v12 }
  0xb2   : > { %4494 = vmatmul.msk.bf16.gmra.mxu0 %vm1302_vm2, %v4567_v15 }
  0xc2   : > { %4495 = vmatmul.msk.bf16.gmra.mxu0 %vm1302_vm2, %v4568_v16  ;;  %v1576_v16 = vsub.f32 1.0, %v1575_v14 }
  0xd2   : > { %4496 = vmatmul.msk.bf16.gmra.mxu0 %vm1302_vm2, %v4569_v17  ;;  %v1577_v17 = vmul.f32 %v4689_v12, %v1576_v16 }
  0xdf   : > { %v5288_v19 = vpop.f32.mrf.mxu0 }
  0xe2   : > { %4497 = vmatmul.msk.bf16.gmra.mxu0 %vm1302_vm2, %v4570_v18 }
  0xe7   : > { %v5291_v20 = vpop.f32.mrf.mxu0 }
  0xef   : > { %v1363_v23 = vpop.f32.mrf.mxu0 }
  0xf0   : > { %v5298_v24 = vadd.f32 %v5294_v21, %v1363_v23 }
  0xf2   : > { %v1443_v25 = vmax.f32 %v5298_v24, 0.0  ;;  %4498 = vmatmul.msk.bf16.gmra.mxu0 %vm1302_vm2, %v4571_v22  ;;  %v1578_v22 = vadd.f32 %v4689_v12, %v1577_v17 }
  0xf4   : > { %v1478_v26 = vsel %vm1477_vm3, %v1443_v25, 0.0  ;;  %v5388_v23 = vsel %vm1579_vm4, %v4689_v12, %v1578_v22 }
  0xf5   : > { %1479 = vadd.xlane.f32.xlu0 %v1478_v26 }
  0xf7   : > { %v1365_v27 = vpop.f32.mrf.mxu0 }
  0xf8   : > { %v5306_v28 = vadd.f32 %v5294_v21, %v1365_v27 }
  0xfa   : > { %v1444_v29 = vmax.f32 %v5306_v28, 0.0 }
  0xfc   : > { %v1481_v30 = vsel %vm1477_vm3, %v1444_v29, 0.0 }
  0xfd   : > { %1482 = vadd.xlane.f32.xlu0 %v1481_v30 }
  0xff   : > { %v1368_v32 = vpop.f32.mrf.mxu0 }
 0x100   : > { %v5314_v33 = vadd.f32 %v5294_v21, %v1368_v32 }
 0x102   : > { %v1445_v34 = vmax.f32 %v5314_v33, 0.0  ;;  %4499 = vmatmul.msk.bf16.gmra.mxu0 %vm1302_vm2, %v4572_v31 }
 0x104   : > { %v1484_v35 = vsel %vm1477_vm3, %v1445_v34, 0.0 }
 0x105   : > { %1485 = vadd.xlane.f32.xlu1 %v1484_v35 }
 0x107   : > { %v1370_v36 = vpop.f32.mrf.mxu0 }
 0x108   : > { %v5322_v37 = vadd.f32 %v5294_v21, %v1370_v36 }
 0x10a   : > { %v1446_v38 = vmax.f32 %v5322_v37, 0.0 }
 0x10c   : > { %v1487_v39 = vsel %vm1477_vm3, %v1446_v38, 0.0 }
 0x10d   : > { %1488 = vadd.xlane.f32.xlu1 %v1487_v39 }
 0x10f   : > { %v1373_v41 = vpop.f32.mrf.mxu0 }
 0x110   : > { %v5330_v42 = vadd.f32 %v5294_v21, %v1373_v41 }
 0x112   : > { %v1447_v43 = vmax.f32 %v5330_v42, 0.0  ;;  %4500 = vmatmul.msk.bf16.gmra.mxu0 %vm1302_vm2, %v4573_v40 }
 0x114   : > { %v1490_v44 = vsel %vm1477_vm3, %v1447_v43, 0.0 }
 0x115   : > { %1491 = vadd.xlane.f32.xlu2 %v1490_v44 }
 0x117   : > { %v1375_v45 = vpop.f32.mrf.mxu0 }
 0x118   : > { %v5338_v46 = vadd.f32 %v5294_v21, %v1375_v45 }
 0x11a   : > { %v1448_v47 = vmax.f32 %v5338_v46, 0.0 }
 0x11c   : > { %v1493_v48 = vsel %vm1477_vm3, %v1448_v47, 0.0 }
 0x11d   : > { %1494 = vadd.xlane.f32.xlu2 %v1493_v48 }
 0x11f   : > { %v1378_v50 = vpop.f32.mrf.mxu0 }
 0x120   : > { %v5346_v51 = vadd.f32 %v5294_v21, %v1378_v50 }
 0x122   : > { %v1449_v52 = vmax.f32 %v5346_v51, 0.0  ;;  %4501 = vmatmul.msk.bf16.gmra.mxu0 %vm1302_vm2, %v4574_v49 }
 0x124   : > { %v1496_v53 = vsel %vm1477_vm3, %v1449_v52, 0.0 }
 0x125   : > { %1497 = vadd.xlane.f32.xlu2 %v1496_v53 }
 0x127   : > { %v1380_v54 = vpop.f32.mrf.mxu0 }
 0x128   : > { %v5354_v55 = vadd.f32 %v5294_v21, %v1380_v54 }
 0x12a   : > { %v1450_v56 = vmax.f32 %v5354_v55, 0.0 }
 0x12c   : > { %v1499_v57 = vsel %vm1477_vm3, %v1450_v56, 0.0 }
 0x12d   : > { %1500 = vadd.xlane.f32.xlu0 %v1499_v57 }
 0x12f   : > { %v1383_v58 = vpop.f32.mrf.mxu0 }
 0x130   : > { %v5361_v59 = vadd.f32 %v5294_v21, %v1383_v58 }
 0x132   : > { %v1451_v60 = vmax.f32 %v5361_v59, 0.0 }
 0x134   : > { %v1502_v61 = vsel %vm1477_vm3, %v1451_v60, 0.0 }
 0x135   : > { %1503 = vadd.xlane.f32.xlu0 %v1502_v61 }
 0x137   : > { %v1385_v62 = vpop.f32.mrf.mxu0 }
 0x138   : > { %v5368_v63 = vadd.f32 %v5294_v21, %v1385_v62 }
 0x13a   : > { %v1452_v0 = vmax.f32 %v5368_v63, 0.0 }
 0x13c   : > { %v1505_v2 = vsel %vm1477_vm3, %v1452_v0, 0.0 }
 0x13d   : > { %1506 = vadd.xlane.f32.xlu1 %v1505_v2 }
 0x13f   : > { %v1388_v3 = vpop.f32.mrf.mxu0 }
 0x140   : > { %v5410_v45 = vadd.f32 %v5294_v21, %v1388_v3 }
 0x142   : > { %v1453_v28 = vmax.f32 %v5410_v45, 0.0 }
 0x144   : > { %v1508_v2 = vsel %vm1477_vm3, %v1453_v28, 0.0 }
 0x147   : > { %v1390_v4 = vpop.f32.mrf.mxu0 }
 0x148   : > { %v5375_v5 = vadd.f32 %v5294_v21, %v1390_v4 }
 0x14a   : > { %v1454_v6 = vmax.f32 %v5375_v5, 0.0 }
 0x14c   : > { %v1511_v7 = vsel %vm1477_vm3, %v1454_v6, 0.0 }
 0x14d   : > { %1512 = vadd.xlane.f32.xlu2 %v1511_v7 }
 0x14f   : > { %v1393_v9 = vpop.f32.mrf.mxu0 }
 0x150   : > { %v5382_v10 = vadd.f32 %v5294_v21, %v1393_v9 }
 0x152   : > { %v1455_v11 = vmax.f32 %v5382_v10, 0.0 }
 0x154   : > { %v1514_v13 = vsel %vm1477_vm3, %v1455_v11, 0.0 }
 0x155   : > { %1515 = vadd.xlane.f32.xlu2 %v1514_v13 }
 0x157   : > { %v1395_v15 = vpop.f32.mrf.mxu0 }
 0x158   : > { %v5398_v35 = vadd.f32 %v5294_v21, %v1395_v15 }
 0x15a   : > { %v1456_v44 = vmax.f32 %v5398_v35, 0.0 }
 0x15c   : > { %v1517_v50 = vsel %vm1477_vm3, %v1456_v44, 0.0 }
 0x15f   : > { %v1398_v18 = vpop.f32.mrf.mxu0 }
 0x160   : > { %v5413_v48 = vadd.f32 %v5294_v21, %v1398_v18 }
 0x167   : > { %v1400_v26 = vpop.f32.mrf.mxu0 }
 0x168   : > { %v1480_v27 = vpop.xlane.xlu0 %1479  ;;  %v5450_v15 = vadd.f32 %v5294_v21, %v1400_v26 }
 0x169   : > { %v1581_v30 = vmul.f32 %v5388_v23, %v1480_v27 }
 0x16a   : > { %v1458_v18 = vmax.f32 %v5450_v15, 0.0 }
 0x16b   : > { %v5393_v31 = vsub.f32 %v1443_v25, %v1581_v30 }
 0x16d   : > { %v1645_v32 = vmul.f32 %v5393_v31, %v5393_v31 }
 0x16f   : > { %v1403_v36 = vpop.f32.mrf.mxu0  ;;  %v1677_v39 = vsel %vm1477_vm3, %v1645_v32, 0.0 }
 0x170   : > { %1678 = vadd.xlane.f32.xlu0 %v1677_v39  ;;  %v1483_v40 = vpop.xlane.xlu0 %1482  ;;  %v5423_v58 = vadd.f32 %v5294_v21, %v1403_v36  ;;  %v1523_v36 = vsel %vm1477_vm3, %v1458_v18, 0.0 }
 0x171   : > { %v1582_v41 = vmul.f32 %v5388_v23, %v1483_v40 }
 0x172   : > { %v1459_v7 = vmax.f32 %v5423_v58, 0.0 }
 0x173   : > { %v5405_v24 = vsub.f32 %v1444_v29, %v1582_v41  ;;  %v1457_v29 = vmax.f32 %v5413_v48, 0.0 }
 0x174   : > { %v1526_v33 = vsel %vm1477_vm3, %v1459_v7, 0.0 }
 0x175   : > { %v1646_v25 = vmul.f32 %v5405_v24, %v5405_v24  ;;  %v1520_v62 = vsel %vm1477_vm3, %v1457_v29, 0.0 }
 0x177   : > { %v1405_v49 = vpop.f32.mrf.mxu0  ;;  %v1680_v53 = vsel %vm1477_vm3, %v1646_v25, 0.0 }
 0x178   : > { %v1486_v54 = vpop.xlane.xlu1 %1485  ;;  %1518 = vadd.xlane.f32.xlu0 %v1517_v50  ;;  %1681 = vadd.xlane.f32.xlu1 %v1680_v53  ;;  %v5463_v30 = vadd.f32 %v5294_v21, %v1405_v49 }
 0x179   : > { %v1583_v57 = vmul.f32 %v5388_v23, %v1486_v54 }
 0x17a   : > { %v1460_v39 = vmax.f32 %v5463_v30, 0.0 }
 0x17b   : > { %v5433_v3 = vsub.f32 %v1445_v34, %v1583_v57 }
 0x17c   : > { %v1529_v46 = vsel %vm1477_vm3, %v1460_v39, 0.0 }
 0x17d   : > { %v1647_v12 = vmul.f32 %v5433_v3, %v5433_v3 }
 0x17f   : > { %v1408_v61 = vpop.f32.mrf.mxu0  ;;  %v1683_v37 = vsel %vm1477_vm3, %v1647_v12, 0.0 }
 0x180   : > { %v1489_v4 = vpop.xlane.xlu1 %1488  ;;  %1521 = vadd.xlane.f32.xlu0 %v1520_v62  ;;  %1509 = vadd.xlane.f32.xlu1 %v1508_v2  ;;  %v5477_v41 = vadd.f32 %v5294_v21, %v1408_v61 }
 0x181   : > { %v1584_v8 = vmul.f32 %v5388_v23, %v1489_v4 }
 0x183   : > { %v5439_v9 = vsub.f32 %v1446_v38, %v1584_v8 }
 0x185   : > { %v1648_v13 = vmul.f32 %v5439_v9, %v5439_v9 }
 0x187   : > { %v1410_v34 = vpop.f32.mrf.mxu0  ;;  %v1686_v14 = vsel %vm1477_vm3, %v1648_v13, 0.0 }
 0x188   : > { %v1492_v16 = vpop.xlane.xlu2 %1491  ;;  %1687 = vadd.xlane.f32.xlu2 %v1686_v14  ;;  %1527 = vadd.xlane.f32.xlu0 %v1526_v33  ;;  %v5481_v50 = vadd.f32 %v5294_v21, %v1410_v34 }
 0x189   : > { %v1585_v38 = vmul.f32 %v5388_v23, %v1492_v16  ;;  %1684 = vadd.xlane.f32.xlu1 %v1683_v37 }
 0x18a   : > { %v1462_v57 = vmax.f32 %v5481_v50, 0.0 }
 0x18b   : > { %v5456_v17 = vsub.f32 %v1447_v43, %v1585_v38 }
 0x18c   : > { %v1535_v8 = vsel %vm1477_vm3, %v1462_v57, 0.0 }
 0x18d   : > { %v1649_v22 = vmul.f32 %v5456_v17, %v5456_v17 }
 0x18f   : > { %v1413_v27 = vpop.f32.mrf.mxu0  ;;  %v1689_v26 = vsel %vm1477_vm3, %v1649_v22, 0.0 }
 0x190   : > { %v1495_v32 = vpop.xlane.xlu2 %1494  ;;  %1690 = vadd.xlane.f32.xlu2 %v1689_v26  ;;  %v5516_v16 = vadd.f32 %v5294_v21, %v1413_v27  ;;  %v4575_v26 = vld [vmem:[%s5271_s23 + $0x60] sm:$0xff] }
 0x191   : > { %v1586_v42 = vmul.f32 %v5388_v23, %v1495_v32  ;;  %1524 = vadd.xlane.f32.xlu1 %v1523_v36  ;;  %4502 = vmatmul.msk.bf16.gmra.mxu0 %vm1302_vm2, %v4575_v26 }
 0x192   : > { %v1463_v22 = vmax.f32 %v5516_v16, 0.0 }
 0x193   : > { %v5471_v43 = vsub.f32 %v1448_v47, %v1586_v42  ;;  %v1461_v47 = vmax.f32 %v5477_v41, 0.0 }
 0x194   : > { %v1538_v27 = vsel %vm1477_vm3, %v1463_v22, 0.0 }
 0x195   : > { %v1650_v40 = vmul.f32 %v5471_v43, %v5471_v43  ;;  %v1532_v2 = vsel %vm1477_vm3, %v1461_v47, 0.0 }
 0x197   : > { %v1415_v25 = vpop.f32.mrf.mxu0  ;;  %v1692_v49 = vsel %vm1477_vm3, %v1650_v40, 0.0 }
 0x198   : > { %v1498_v53 = vpop.xlane.xlu2 %1497  ;;  %1693 = vadd.xlane.f32.xlu0 %v1692_v49 }
 0x199   : > { %1530 = vadd.xlane.f32.xlu1 %v1529_v46  ;;  %v1587_v54 = vmul.f32 %v5388_v23, %v1498_v53 }
 0x19b   : > { %v5491_v61 = vsub.f32 %v1449_v52, %v1587_v54 }
 0x19d   : > { %v1651_v33 = vmul.f32 %v5491_v61, %v5491_v61 }
 0x19f   : > { %v1418_v62 = vpop.f32.mrf.mxu0  ;;  %v1695_v37 = vsel %vm1477_vm3, %v1651_v33, 0.0 }
 0x1a0   : > { %v5497_v4 = vadd.f32 %v5294_v21, %v1418_v62  ;;  %1533 = vadd.xlane.f32.xlu0 %v1532_v2  ;;  %v1501_v12 = vpop.xlane.xlu0 %1500 }
 0x1a1   : > { %1536 = vadd.xlane.f32.xlu1 %v1535_v8  ;;  %v1588_v51 = vmul.f32 %v5388_v23, %v1501_v12 }
 0x1a2   : > { %v1465_v52 = vmax.f32 %v5497_v4, 0.0 }
 0x1a3   : > { %v5506_v13 = vsub.f32 %v1450_v56, %v1588_v51  ;;  %v5521_v56 = vadd.f32 %v5294_v21, %v1415_v25 }
 0x1a4   : > { %v1544_v34 = vsel %vm1477_vm3, %v1465_v52, 0.0 }
 0x1a5   : > { %1545 = vadd.xlane.f32.xlu2 %v1544_v34  ;;  %v1652_v14 = vmul.f32 %v5506_v13, %v5506_v13  ;;  %v1464_v32 = vmax.f32 %v5521_v56, 0.0 }
 0x1a7   : > { %v1698_v55 = vsel %vm1477_vm3, %v1652_v14, 0.0  ;;  %v1541_v25 = vsel %vm1477_vm3, %v1464_v32, 0.0 }
 0x1a8   : > { %1696 = vadd.xlane.f32.xlu0 %v1695_v37  ;;  %v1504_v38 = vpop.xlane.xlu0 %1503 }
 0x1a9   : > { %1699 = vadd.xlane.f32.xlu1 %v1698_v55  ;;  %v1589_v36 = vmul.f32 %v5388_v23, %v1504_v38 }
 0x1ab   : > { %v5533_v42 = vsub.f32 %v1451_v60, %v1589_v36 }
 0x1ad   : > { %v1653_v46 = vmul.f32 %v5533_v42, %v5533_v42 }
 0x1af   : > { %v1701_v54 = vsel %vm1477_vm3, %v1653_v46, 0.0 }
 0x1b0   : > { %v1507_v40 = vpop.xlane.xlu1 %1506  ;;  %1539 = vadd.xlane.f32.xlu0 %v1538_v27 }
 0x1b1   : > { %v1590_v49 = vmul.f32 %v5388_v23, %v1507_v40  ;;  %1542 = vadd.xlane.f32.xlu1 %v1541_v25 }
 0x1b3   : > { %v5541_v53 = vsub.f32 %v1452_v0, %v1590_v49 }
 0x1b5   : > { %v1654_v59 = vmul.f32 %v5541_v53, %v5541_v53 }
 0x1b7   : > { %v1704_v60 = vsel %vm1477_vm3, %v1654_v59, 0.0 }
 0x1b8   : > { %1705 = vadd.xlane.f32.xlu2 %v1704_v60 }
 0x1b9   : > { %1702 = vadd.xlane.f32.xlu1 %v1701_v54 }
 0x1c0   : > { %v1513_v62 = vpop.xlane.xlu2 %1512 }
 0x1c1   : > { %v1592_v2 = vmul.f32 %v5388_v23, %v1513_v62 }
 0x1c3   : > { %v5552_v63 = vsub.f32 %v1454_v6, %v1592_v2 }
 0x1c5   : > { %v1656_v0 = vmul.f32 %v5552_v63, %v5552_v63 }
 0x1c7   : > { %v1710_v8 = vsel %vm1477_vm3, %v1656_v0, 0.0 }
 0x1c8   : > { %1711 = vadd.xlane.f32.xlu2 %v1710_v8  ;;  %v1516_v40 = vpop.xlane.xlu2 %1515 }
 0x1c9   : > { %v1593_v35 = vmul.f32 %v5388_v23, %v1516_v40 }
 0x1cb   : > { %v5577_v8 = vsub.f32 %v1455_v11, %v1593_v35 }
 0x1cd   : > { %v1657_v11 = vmul.f32 %v5577_v8, %v5577_v8 }
 0x1e3   : > { %v1679_v12 = vpop.xlane.xlu0 %1678 }
 0x1e4   : > { %v1773_v51 = vmul.f32 %v1679_v12, %v5388_v23 }
 0x1e6   : > { %v1805_v33 = vadd.f32 1e-05, %v1773_v51 }
 0x1e8   : > { %4690 = vrsqrt.f32 %v1805_v33  ;;  %vm1843_vm7 = vweird.f32 %v1805_v33 }
 0x1eb   : > { %v1682_v34 = vpop.xlane.xlu1 %1681  ;;  %v1519_v14 = vpop.xlane.xlu0 %1518 }
 0x1ec   : > { %v1774_v37 = vmul.f32 %v1682_v34, %v5388_v23  ;;  %v1594_v55 = vmul.f32 %v5388_v23, %v1519_v14 }
 0x1ee   : > { %v4691_v5 = vpop.eup %4690  ;;  %v1806_v6 = vadd.f32 1e-05, %v1774_v37  ;;  %v5562_v38 = vsub.f32 %v1456_v44, %v1594_v55  ;;  %v4576_v55 = vld [vmem:[%s5271_s23 + $0x68] sm:$0xff] }
 0x1ef   : > { %v1838_v26 = vmul.f32 %v4691_v5, %v1805_v33  ;;  %vm1844_vm5 = vweird.f32 %v4691_v5  ;;  %4503 = vmatmul.msk.bf16.gmra.mxu0 %vm1302_vm2, %v4576_v55 }
 0x1f0   : > { %4692 = vrsqrt.f32 %v1806_v6  ;;  %v1658_v36 = vmul.f32 %v5562_v38, %v5562_v38  ;;  %vm5594_vm8 = vmor %vm1843_vm7, %vm1844_vm5  ;;  %vm1853_vm9 = vweird.f32 %v1806_v6 }
 0x1f1   : > { %v1839_v27 = vmul.f32 %v4691_v5, %v1838_v26 }
 0x1f2   : > { %v1716_v25 = vsel %vm1477_vm3, %v1658_v36, 0.0 }
 0x1f3   : > { %v1510_v49 = vpop.xlane.xlu1 %1509  ;;  %1717 = vadd.xlane.f32.xlu2 %v1716_v25  ;;  %v1522_v46 = vpop.xlane.xlu0 %1521  ;;  %v1840_v59 = vmul.f32 0.5, %v1839_v27 }
 0x1f4   : > { %v1591_v60 = vmul.f32 %v5388_v23, %v1510_v49  ;;  %v1595_v40 = vmul.f32 %v5388_v23, %v1522_v46 }
 0x1f5   : > { %v1841_v2 = vsub.f32 1.5, %v1840_v59 }
 0x1f6   : > { %v4693_v44 = vpop.eup %4692  ;;  %v5571_v54 = vsub.f32 %v1453_v28, %v1591_v60  ;;  %v5608_v46 = vsub.f32 %v1457_v29, %v1595_v40  ;;  %v5620_v29 = vld [vmem:[%s5111_s24] ss:$0 sm:$0xff] }
 0x1f7   : > { %v1848_v62 = vmul.f32 %v4693_v44, %v1806_v6  ;;  %v1842_v45 = vmul.f32 %v4691_v5, %v1841_v2  ;;  %vm1854_vm6 = vweird.f32 %v4693_v44  ;;  %v1713_v6 = vsel %vm1477_vm3, %v1657_v11, 0.0  ;;  %v5614_v2 = vld [vmem:[%s7463_s19] ss:$0 sm:$0xff] }
 0x1f8   : > { %v1655_v0 = vmul.f32 %v5571_v54, %v5571_v54  ;;  %vm1855_vm10 = vmor %vm1853_vm9, %vm1854_vm6 }
 0x1f9   : > { %v1849_v12 = vmul.f32 %v4693_v44, %v1848_v62  ;;  %v1846_v33 = vsel %vm5594_vm8, %v4691_v5, %v1842_v45  ;;  %v2260_v45 = vld [vmem:[%s7464_s17 + $0x8] sm:$0xff] }
 0x1fa   : > { %v1707_v51 = vsel %vm1477_vm3, %v1655_v0, 0.0 }
 0x1fb   : > { %v1850_v34 = vmul.f32 0.5, %v1849_v12  ;;  %v1688_v14 = vpop.xlane.xlu2 %1687  ;;  %1708 = vadd.xlane.f32.xlu1 %v1707_v51  ;;  %v1528_v37 = vpop.xlane.xlu0 %1527  ;;  %v2157_v12 = vmul.f32 %v1846_v33, %v5393_v31 }
 0x1fc   : > { %v1776_v28 = vmul.f32 %v1688_v14, %v5388_v23  ;;  %v1685_v26 = vpop.xlane.xlu1 %1684  ;;  %v1597_v36 = vmul.f32 %v5388_v23, %v1528_v37 }
 0x1fd   : > { %v1851_v27 = vsub.f32 1.5, %v1850_v34  ;;  %v1775_v10 = vmul.f32 %v1685_v26, %v5388_v23 }
 0x1fe   : > { %v5588_v25 = vadd.f32 1e-05, %v1776_v28  ;;  %v5592_v49 = vsub.f32 %v1459_v7, %v1597_v36  ;;  %v2192_v36 = vmul.f32 %v5614_v2, %v2157_v12 }
 0x1ff   : > { %v1852_v60 = vmul.f32 %v4693_v44, %v1851_v27  ;;  %v5598_v35 = vadd.f32 1e-05, %v1775_v10  ;;  %v1420_v10 = vpop.f32.mrf.mxu0 }
 0x200   : > { %4694 = vrsqrt.f32 %v5588_v25  ;;  %v1661_v58 = vmul.f32 %v5592_v49, %v5592_v49  ;;  %vm1873_vm12 = vweird.f32 %v5588_v25 }
 0x201   : > { %4696 = vrsqrt.f32 %v5598_v35  ;;  %v1856_v7 = vsel %vm1855_vm10, %v4693_v44, %v1852_v60  ;;  %vm1863_vm15 = vweird.f32 %v5598_v35 }
 0x202   : > { %v1725_v62 = vsel %vm1477_vm3, %v1661_v58, 0.0  ;;  %v2158_v5 = vmul.f32 %v1856_v7, %v5405_v24  ;;  %v1659_v24 = vmul.f32 %v5608_v46, %v5608_v46 }
 0x203   : > { %v1691_v0 = vpop.xlane.xlu2 %1690  ;;  %1714 = vadd.xlane.f32.xlu1 %v1713_v6  ;;  %1726 = vadd.xlane.f32.xlu0 %v1725_v62  ;;  %v2227_v6 = vadd.f32 %v5620_v29, %v2192_v36  ;;  %v5647_v62 = vadd.f32 %v5294_v21, %v1420_v10 }
 0x204   : > { %v1777_v44 = vmul.f32 %v1691_v0, %v5388_v23  ;;  %v1525_v51 = vpop.xlane.xlu1 %1524  ;;  %v2193_v48 = vmul.f32 %v5614_v2, %v2158_v5  ;;  %v1719_v33 = vsel %vm1477_vm3, %v1659_v24, 0.0 }
 0x205   : > { %v1596_v34 = vmul.f32 %v5388_v23, %v1525_v51  ;;  %v1466_v10 = vmax.f32 %v5647_v62, 0.0 }
 0x206   : > { %v4695_v14 = vpop.eup %4694  ;;  %v5623_v37 = vadd.f32 1e-05, %v1777_v44  ;;  %v2228_v55 = vadd.f32 %v5620_v29, %v2193_v48  ;;  %v2259_v44 = vld [vmem:[%s7464_s17] sm:$0xff] }
 0x207   : > { %v4697_v28 = vpop.eup %4696  ;;  %v1868_v31 = vmul.f32 %v4695_v14, %v5588_v25  ;;  %v5632_v26 = vsub.f32 %v1458_v18, %v1596_v34  ;;  %vm1874_vm11 = vweird.f32 %v4695_v14 }
 0x208   : > { %v1858_v27 = vmul.f32 %v4697_v28, %v5598_v35  ;;  %4698 = vrsqrt.f32 %v5623_v37  ;;  %v5639_v59 = vadd.f32 %v2260_v45, %v2228_v55  ;;  %vm1864_vm13 = vweird.f32 %v4697_v28  ;;  %vm1875_vm14 = vmor %vm1873_vm12, %vm1874_vm11 }
 0x209   : > { %v1869_v11 = vmul.f32 %v4695_v14, %v1868_v31  ;;  %v1660_v40 = vmul.f32 %v5632_v26, %v5632_v26  ;;  %vm1865_vm4 = vmor %vm1863_vm15, %vm1864_vm13  ;;  %vm1883_vm6 = vweird.f32 %v5623_v37 }
 0x20a   : > { %v1859_v60 = vmul.f32 %v4697_v28, %v1858_v27  ;;  %v2328_v58 = vsel %vm1477_vm3, %v5639_v59, 0.0  ;;  %v5660_v27 = vadd.f32 %v2259_v44, %v2227_v6 }
 0x20b   : > { %v1870_v15 = vmul.f32 0.5, %v1869_v11  ;;  %v1722_v18 = vsel %vm1477_vm3, %v1660_v40, 0.0  ;;  %1720 = vadd.xlane.f32.xlu1 %v1719_v33  ;;  %v1694_v7 = vpop.xlane.xlu0 %1693  ;;  %2329 = vadd.xlane.f32.xlu0 %v2328_v58 }
 0x20c   : > { %v1860_v5 = vmul.f32 0.5, %v1859_v60  ;;  %v1531_v0 = vpop.xlane.xlu1 %1530  ;;  %1723 = vadd.xlane.f32.xlu2 %v1722_v18  ;;  %v1778_v12 = vmul.f32 %v1694_v7, %v5388_v23  ;;  %v4577_v7 = vld [vmem:[%s5271_s23 + $0x70] sm:$0xff] }
 0x20d   : > { %v1871_v51 = vsub.f32 1.5, %v1870_v15  ;;  %v1598_v48 = vmul.f32 %v5388_v23, %v1531_v0  ;;  %v2325_v15 = vsel %vm1477_vm3, %v5660_v27, 0.0  ;;  %v2262_v0 = vld [vmem:[%s7464_s17 + $0x18] sm:$0xff]  ;;  %4504 = vmatmul.msk.bf16.gmra.mxu0 %vm1302_vm2, %v4577_v7 }
 0x20e   : > { %v4699_v34 = vpop.eup %4698  ;;  %v1861_v24 = vsub.f32 1.5, %v1860_v5  ;;  %v5653_v55 = vadd.f32 1e-05, %v1778_v12 }
 0x20f   : > { %v1872_v45 = vmul.f32 %v4695_v14, %v1871_v51  ;;  %v1878_v31 = vmul.f32 %v4699_v34, %v5623_v37  ;;  %v5658_v36 = vsub.f32 %v1460_v39, %v1598_v48  ;;  %vm1884_vm5 = vweird.f32 %v4699_v34 }
 0x210   : > { %v1862_v11 = vmul.f32 %v4697_v28, %v1861_v24  ;;  %4700 = vrsqrt.f32 %v5653_v55  ;;  %vm1885_vm7 = vmor %vm1883_vm6, %vm1884_vm5  ;;  %vm1893_vm9 = vweird.f32 %v5653_v55 }
 0x211   : > { %v1879_v25 = vmul.f32 %v4699_v34, %v1878_v31  ;;  %v1662_v40 = vmul.f32 %v5658_v36, %v5658_v36  ;;  %v1876_v60 = vsel %vm1875_vm14, %v4695_v14, %v1872_v45 }
 0x212   : > { %v2160_v30 = vmul.f32 %v1876_v60, %v5439_v9  ;;  %v1866_v39 = vsel %vm1865_vm4, %v4697_v28, %v1862_v11  ;;  %v1547_v9 = vsel %vm1477_vm3, %v1466_v10, 0.0 }
 0x213   : > { %v1880_v33 = vmul.f32 0.5, %v1879_v25  ;;  %v1728_v18 = vsel %vm1477_vm3, %v1662_v40, 0.0  ;;  %v1534_v58 = vpop.xlane.xlu0 %1533  ;;  %v2159_v35 = vmul.f32 %v1866_v39, %v5433_v3  ;;  %1548 = vadd.xlane.f32.xlu0 %v1547_v9 }
 0x214   : > { %v5673_v6 = vpop.xlane.xlu1 %1536  ;;  %2326 = vadd.xlane.f32.xlu2 %v2325_v15  ;;  %1729 = vadd.xlane.f32.xlu1 %v1728_v18  ;;  %v1599_v14 = vmul.f32 %v5388_v23, %v1534_v58  ;;  %v2195_v28 = vmul.f32 %v5614_v2, %v2160_v30  ;;  %v2261_v15 = vld [vmem:[%s7464_s17 + $0x10] sm:$0xff] }
 0x215   : > { %v1881_v5 = vsub.f32 1.5, %v1880_v33  ;;  %v2194_v24 = vmul.f32 %v5614_v2, %v2159_v35 }
 0x216   : > { %v4701_v3 = vpop.eup %4700  ;;  %v5684_v12 = vsub.f32 %v1461_v47, %v1599_v14  ;;  %v2230_v44 = vadd.f32 %v5620_v29, %v2195_v28 }
 0x217   : > { %v1882_v51 = vmul.f32 %v4699_v34, %v1881_v5  ;;  %v1888_v48 = vmul.f32 %v4701_v3, %v5653_v55  ;;  %v2229_v60 = vadd.f32 %v5620_v29, %v2194_v24  ;;  %vm1894_vm8 = vweird.f32 %v4701_v3  ;;  %v2264_v24 = vld [vmem:[%s7464_s17 + $0x28] sm:$0xff] }
 0x218   : > { %v5690_v45 = vadd.f32 %v2262_v0, %v2230_v44  ;;  %v1663_v31 = vmul.f32 %v5684_v12, %v5684_v12  ;;  %vm1895_vm10 = vmor %vm1893_vm9, %vm1894_vm8  ;;  %v5707_v5 = vpop.xlane.xlu2 %1545 }
 0x219   : > { %v1889_v11 = vmul.f32 %v4701_v3, %v1888_v48  ;;  %v1886_v41 = vsel %vm1885_vm7, %v4699_v34, %v1882_v51  ;;  %v5703_v9 = vadd.f32 %v2261_v15, %v2229_v60  ;;  %v2263_v48 = vld [vmem:[%s7464_s17 + $0x20] sm:$0xff]  ;;  %v4578_v15 = vld [vmem:[%s5271_s23 + $0x78] sm:$0xff]  ;;  %s4560_s23 = sshll.u32 %s5255_s2, 5 }
 0x21a   : > { %v2334_v47 = vsel %vm1477_vm3, %v5690_v45, 0.0  ;;  %v1731_v25 = vsel %vm1477_vm3, %v1663_v31, 0.0  ;;  %v2161_v30 = vmul.f32 %v1886_v41, %v5456_v17  ;;  %s963_s16 = scalar_lea.vmem %s7508_s9, %s4560_s23  ;;  %s7510_s23 = sld [smem:[#allocation20_spill]] }
 0x21b   : > { %v1890_v40 = vmul.f32 0.5, %v1889_v11  ;;  %v1697_v37 = vpop.xlane.xlu0 %1696  ;;  %2335 = vadd.xlane.f32.xlu0 %v2334_v47  ;;  %v2331_v55 = vsel %vm1477_vm3, %v5703_v9, 0.0 }
 0x21c   : > { %v1700_v39 = vpop.xlane.xlu1 %1699  ;;  %1732 = vadd.xlane.f32.xlu2 %v1731_v25  ;;  %v1779_v33 = vmul.f32 %v1697_v37, %v5388_v23  ;;  %v2196_v17 = vmul.f32 %v5614_v2, %v2161_v30 }
 0x21d   : > { %v1891_v18 = vsub.f32 1.5, %v1890_v40  ;;  %v1780_v34 = vmul.f32 %v1700_v39, %v5388_v23  ;;  %4505 = vmatmul.msk.bf16.gmra.mxu0 %vm1302_vm2, %v4578_v15 }
 0x21e   : > { %v1811_v58 = vadd.f32 1e-05, %v1779_v33  ;;  %v2231_v0 = vadd.f32 %v5620_v29, %v2196_v17 }
 0x21f   : > { %v1892_v35 = vmul.f32 %v4701_v3, %v1891_v18  ;;  %v1812_v7 = vadd.f32 1e-05, %v1780_v34 }
 0x220   : > { %4702 = vrsqrt.f32 %v1811_v58  ;;  %v5718_v41 = vadd.f32 %v2263_v48, %v2231_v0  ;;  %vm1903_vm13 = vweird.f32 %v1811_v58 }
 0x221   : > { %v1896_v14 = vsel %vm1895_vm10, %v4701_v3, %v1892_v35  ;;  %4704 = vrsqrt.f32 %v1812_v7  ;;  %vm1913_vm14 = vweird.f32 %v1812_v7 }
 0x222   : > { %v2162_v28 = vmul.f32 %v1896_v14, %v5471_v43  ;;  %v2337_v33 = vsel %vm1477_vm3, %v5718_v41, 0.0 }
 0x224   : > { %v5712_v44 = vpop.xlane.xlu1 %1542  ;;  %2332 = vadd.xlane.f32.xlu2 %v2331_v55  ;;  %v2197_v51 = vmul.f32 %v5614_v2, %v2162_v28 }
 0x226   : > { %v4703_v31 = vpop.eup %4702  ;;  %v2232_v3 = vadd.f32 %v5620_v29, %v2197_v51 }
 0x227   : > { %v4705_v11 = vpop.eup %4704  ;;  %v1898_v43 = vmul.f32 %v4703_v31, %v1811_v58  ;;  %vm1904_vm11 = vweird.f32 %v4703_v31 }
 0x228   : > { %v1908_v47 = vmul.f32 %v4705_v11, %v1812_v7  ;;  %v5720_v25 = vadd.f32 %v2264_v24, %v2232_v3  ;;  %vm1914_vm12 = vweird.f32 %v4705_v11  ;;  %vm1905_vm15 = vmor %vm1903_vm13, %vm1904_vm11 }
 0x229   : > { %v1899_v40 = vmul.f32 %v4703_v31, %v1898_v43  ;;  %vm1915_vm4 = vmor %vm1913_vm14, %vm1914_vm12 }
 0x22a   : > { %v1909_v37 = vmul.f32 %v4705_v11, %v1908_v47  ;;  %v2340_v60 = vsel %vm1477_vm3, %v5720_v25, 0.0 }
 0x22b   : > { %v1900_v30 = vmul.f32 0.5, %v1899_v40  ;;  %v1706_v39 = vpop.xlane.xlu2 %1705  ;;  %2341 = vadd.xlane.f32.xlu0 %v2340_v60  ;;  %v2265_v60 = vld [vmem:[%s7464_s17 + $0x30] sm:$0xff] }
 0x22c   : > { %v1910_v18 = vmul.f32 0.5, %v1909_v37  ;;  %v1782_v34 = vmul.f32 %v1706_v39, %v5388_v23  ;;  %v1703_v35 = vpop.xlane.xlu1 %1702  ;;  %2338 = vadd.xlane.f32.xlu2 %v2337_v33 }
 0x22d   : > { %v1901_v17 = vsub.f32 1.5, %v1900_v30  ;;  %v1781_v14 = vmul.f32 %v1703_v35, %v5388_v23  ;;  %v2266_v30 = vld [vmem:[%s7464_s17 + $0x38] sm:$0xff] }
 0x22e   : > { %v1911_v28 = vsub.f32 1.5, %v1910_v18  ;;  %v1814_v55 = vadd.f32 1e-05, %v1782_v34 }
 0x22f   : > { %v1902_v0 = vmul.f32 %v4703_v31, %v1901_v17  ;;  %v1813_v51 = vadd.f32 1e-05, %v1781_v14 }
 0x230   : > { %v1912_v48 = vmul.f32 %v4705_v11, %v1911_v28  ;;  %4706 = vrsqrt.f32 %v1814_v55  ;;  %vm1933_vm6 = vweird.f32 %v1814_v55 }
 0x231   : > { %v1906_v24 = vsel %vm1905_vm15, %v4703_v31, %v1902_v0  ;;  %4708 = vrsqrt.f32 %v1813_v51  ;;  %vm1923_vm8 = vweird.f32 %v1813_v51 }
 0x232   : > { %v1916_v3 = vsel %vm1915_vm4, %v4705_v11, %v1912_v48  ;;  %v2163_v43 = vmul.f32 %v1906_v24, %v5491_v61 }
 0x233   : > { %v2164_v47 = vmul.f32 %v1916_v3, %v5506_v13 }
 0x234   : > { %v2198_v40 = vmul.f32 %v5614_v2, %v2163_v43 }
 0x235   : > { %v2199_v37 = vmul.f32 %v5614_v2, %v2164_v47 }
 0x236   : > { %v4707_v58 = vpop.eup %4706  ;;  %v2233_v39 = vadd.f32 %v5620_v29, %v2198_v40 }
 0x237   : > { %v4709_v7 = vpop.eup %4708  ;;  %v1928_v33 = vmul.f32 %v4707_v58, %v1814_v55  ;;  %v2234_v15 = vadd.f32 %v5620_v29, %v2199_v37  ;;  %vm1934_vm2 = vweird.f32 %v4707_v58 }
 0x238   : > { %v1918_v31 = vmul.f32 %v4709_v7, %v1813_v51  ;;  %v5738_v18 = vadd.f32 %v2265_v60, %v2233_v39  ;;  %vm1924_vm5 = vweird.f32 %v4709_v7  ;;  %vm1935_vm7 = vmor %vm1933_vm6, %vm1934_vm2  ;;  %v1423_v39 = vpop.f32.mrf.mxu0 }
 0x239   : > { %v1929_v11 = vmul.f32 %v4707_v58, %v1928_v33  ;;  %v5740_v61 = vadd.f32 %v2266_v30, %v2234_v15  ;;  %vm1925_vm9 = vmor %vm1923_vm8, %vm1924_vm5  ;;  %v2268_v30 = vld [vmem:[%s7464_s17 + $0x48] sm:$0xff]  ;;  %v2267_v33 = vld [vmem:[%s7464_s17 + $0x40] sm:$0xff]  ;;  %v5757_v51 = vadd.f32 %v5294_v21, %v1423_v39 }
 0x23a   : > { %v1919_v13 = vmul.f32 %v4709_v7, %v1918_v31  ;;  %v2343_v34 = vsel %vm1477_vm3, %v5738_v18, 0.0 }
 0x23b   : > { %v1930_v35 = vmul.f32 0.5, %v1929_v11  ;;  %v2346_v17 = vsel %vm1477_vm3, %v5740_v61, 0.0  ;;  %2344 = vadd.xlane.f32.xlu1 %v2343_v34 }
 0x23c   : > { %v1920_v14 = vmul.f32 0.5, %v1919_v13  ;;  %2347 = vadd.xlane.f32.xlu2 %v2346_v17  ;;  %v1712_v13 = vpop.xlane.xlu2 %1711 }
 0x23d   : > { %v1931_v28 = vsub.f32 1.5, %v1930_v35  ;;  %v1784_v21 = vmul.f32 %v1712_v13, %v5388_v23  ;;  %v5770_v35 = vpop.xlane.xlu0 %1539  ;;  %v1600_v13 = vmul.f32 %v5388_v23, %v5673_v6 }
 0x23e   : > { %v1921_v0 = vsub.f32 1.5, %v1920_v14 }
 0x23f   : > { %v1932_v48 = vmul.f32 %v4707_v58, %v1931_v28  ;;  %v1816_v34 = vadd.f32 1e-05, %v1784_v21 }
 0x240   : > { %v1922_v24 = vmul.f32 %v4709_v7, %v1921_v0  ;;  %v1425_v50 = vpop.f32.mrf.mxu0 }
 0x241   : > { %v1936_v3 = vsel %vm1935_vm7, %v4707_v58, %v1932_v48  ;;  %4710 = vrsqrt.f32 %v1816_v34  ;;  %vm1953_vm11 = vweird.f32 %v1816_v34 }
 0x242   : > { %v1926_v43 = vsel %vm1925_vm9, %v4709_v7, %v1922_v24  ;;  %v2166_v47 = vmul.f32 %v1936_v3, %v5541_v53  ;;  %v7430_v7 = vmax.f32 %v5757_v51, 0.0 }
 0x243   : > { %v2165_v40 = vmul.f32 %v1926_v43, %v5533_v42 }
 0x244   : > { %v2201_v37 = vmul.f32 %v5614_v2, %v2166_v47  ;;  %v1550_v11 = vsel %vm1477_vm3, %v7430_v7, 0.0 }
 0x245   : > { %v2200_v60 = vmul.f32 %v5614_v2, %v2165_v40 }
 0x246   : > { %v2236_v15 = vadd.f32 %v5620_v29, %v2201_v37 }
 0x247   : > { %v2235_v55 = vadd.f32 %v5620_v29, %v2200_v60  ;;  %v4711_v14 = vpop.eup %4710 }
 0x248   : > { %v5754_v31 = vadd.f32 %v2268_v30, %v2236_v15  ;;  %v1948_v0 = vmul.f32 %v4711_v14, %v1816_v34  ;;  %vm1954_vm10 = vweird.f32 %v4711_v14 }
 0x249   : > { %v5759_v58 = vadd.f32 %v2267_v33, %v2235_v55  ;;  %vm1955_vm12 = vmor %vm1953_vm11, %vm1954_vm10 }
 0x24a   : > { %v2352_v42 = vsel %vm1477_vm3, %v5754_v31, 0.0  ;;  %v1949_v24 = vmul.f32 %v4711_v14, %v1948_v0 }
 0x24b   : > { %v2349_v53 = vsel %vm1477_vm3, %v5759_v58, 0.0  ;;  %2353 = vadd.xlane.f32.xlu1 %v2352_v42 }
 0x24c   : > { %2350 = vadd.xlane.f32.xlu0 %v2349_v53  ;;  %v1950_v47 = vmul.f32 0.5, %v1949_v24 }
 0x24e   : > { %v1951_v60 = vsub.f32 1.5, %v1950_v47  ;;  %v5794_v47 = vsub.f32 %v1462_v57, %v1600_v13 }
 0x250   : > { %v1952_v42 = vmul.f32 %v4711_v14, %v1951_v60 }
 0x253   : > { %1551 = vadd.xlane.f32.xlu1 %v1550_v11 }
 0x266   : > { %v1718_v43 = vpop.xlane.xlu2 %1717 }
 0x267   : > { %v1786_v37 = vmul.f32 %v1718_v43, %v5388_v23 }
 0x269   : > { %v5779_v15 = vadd.f32 1e-05, %v1786_v37 }
 0x26b   : > { %vm1973_vm2 = vweird.f32 %v5779_v15 }
 0x26e   : > { %v1709_v17 = vpop.xlane.xlu1 %1708 }
 0x26f   : > { %v1783_v28 = vmul.f32 %v1709_v17, %v5388_v23 }
 0x271   : > { %v1815_v48 = vadd.f32 1e-05, %v1783_v28  ;;  %v1956_v28 = vsel %vm1955_vm12, %v4711_v14, %v1952_v42 }
 0x272   : > { %v2168_v14 = vmul.f32 %v1956_v28, %v5552_v63 }
 0x273   : > { %4712 = vrsqrt.f32 %v1815_v48  ;;  %vm1943_vm14 = vweird.f32 %v1815_v48 }
 0x274   : > { %4714 = vrsqrt.f32 %v5779_v15  ;;  %v2203_v63 = vmul.f32 %v5614_v2, %v2168_v14 }
 0x276   : > { %v5773_v3 = vpop.xlane.xlu0 %1726  ;;  %v1715_v53 = vpop.xlane.xlu1 %1714 }
 0x277   : > { %v1785_v21 = vmul.f32 %v1715_v53, %v5388_v23  ;;  %v5817_v53 = vld [vmem:[%s7465_s14] ss:$0 sm:$0xff]  ;;  %v1789_v4 = vmul.f32 %v5773_v3, %v5388_v23  ;;  %s4158_s14 = scalar_lea.hbm %s5186_s3, %s4584_s13 }
 0x279   : > { %v5775_v40 = vpop.eup %4712  ;;  %v5799_v37 = vadd.f32 1e-05, %v1785_v21 }
 0x27a   : > { %v1938_v30 = vmul.f32 %v5775_v40, %v1815_v48  ;;  %v5803_v60 = vpop.eup %4714  ;;  %vm1944_vm13 = vweird.f32 %v5775_v40 }
 0x27b   : > { %v1968_v42 = vmul.f32 %v5803_v60, %v5779_v15  ;;  %4716 = vrsqrt.f32 %v5799_v37  ;;  %vm1945_vm15 = vmor %vm1943_vm14, %vm1944_vm13  ;;  %vm1974_vm4 = vweird.f32 %v5803_v60  ;;  %vm1963_vm7 = vweird.f32 %v5799_v37 }
 0x27c   : > { %v1939_v11 = vmul.f32 %v5775_v40, %v1938_v30  ;;  %vm5889_vm5 = vmor %vm1973_vm2, %vm1974_vm4 }
 0x27e   : > { %v2330_v33 = vpop.xlane.xlu0 %2329  ;;  %v1940_v0 = vmul.f32 0.5, %v1939_v11  ;;  %v1721_v11 = vpop.xlane.xlu1 %1720 }
 0x27f   : > { %v1724_v39 = vpop.xlane.xlu2 %1723  ;;  %v2422_v55 = vmul.f32 %v2330_v33, %v5388_v23 }
 0x280   : > { %v1941_v57 = vsub.f32 1.5, %v1940_v0 }
 0x281   : > { %v5788_v17 = vsub.f32 %v5639_v59, %v2422_v55  ;;  %v1664_v55 = vmul.f32 %v5794_v47, %v5794_v47 }
 0x282   : > { %v1942_v21 = vmul.f32 %v5775_v40, %v1941_v57  ;;  %v2270_v57 = vld [vmem:[%s7464_s17 + $0x58] sm:$0xff] }
 0x283   : > { %v2486_v43 = vmul.f32 %v5788_v17, %v5788_v17  ;;  %v1734_v0 = vsel %vm1477_vm3, %v1664_v55, 0.0  ;;  %v1428_v55 = vpop.f32.mrf.mxu0 }
 0x285   : > { %v2520_v59 = vsel %vm1477_vm3, %v2486_v43, 0.0  ;;  %v1969_v43 = vmul.f32 %v5803_v60, %v1968_v42  ;;  %v1788_v42 = vmul.f32 %v1724_v39, %v5388_v23  ;;  %v5852_v39 = vadd.f32 %v5817_v53, %v1428_v55 }
 0x286   : > { %v5797_v34 = vpop.xlane.xlu0 %1548  ;;  %2521 = vadd.xlane.f32.xlu0 %v2520_v59  ;;  %v2238_v59 = vadd.f32 %v5620_v29, %v2203_v63 }
 0x287   : > { %v2327_v24 = vpop.xlane.xlu2 %2326  ;;  %v1970_v7 = vmul.f32 0.5, %v1969_v43  ;;  %v1601_v43 = vmul.f32 %v5388_v23, %v5770_v35 }
 0x288   : > { %v2421_v6 = vmul.f32 %v2327_v24, %v5388_v23 }
 0x28a   : > { %v5806_v30 = vsub.f32 %v5660_v27, %v2421_v6  ;;  %v5820_v27 = vadd.f32 %v5817_v53, %v1425_v50  ;;  %v1787_v6 = vmul.f32 %v1721_v11, %v5388_v23  ;;  %v5840_v11 = vadd.f32 %v2270_v57, %v2238_v59 }
 0x28b   : > { %v1971_v59 = vsub.f32 1.5, %v1970_v7  ;;  %v5857_v57 = vadd.f32 1e-05, %v1788_v42  ;;  %v7431_v7 = vmax.f32 %v5852_v39, 0.0  ;;  %v5874_v42 = vsub.f32 %v1463_v22, %v1601_v43  ;;  %v2269_v43 = vld [vmem:[%s7464_s17 + $0x50] sm:$0xff] }
 0x28c   : > { %v2485_v33 = vmul.f32 %v5806_v30, %v5806_v30  ;;  %v1468_v14 = vmax.f32 %v5820_v27, 0.0  ;;  %v5838_v48 = vadd.f32 1e-05, %v1787_v6 }
 0x28d   : > { %v1556_v22 = vsel %vm1477_vm3, %v7431_v7, 0.0  ;;  %vm1993_vm13 = vweird.f32 %v5857_v57 }
 0x28e   : > { %v2517_v13 = vsel %vm1477_vm3, %v2485_v33, 0.0  ;;  %v2336_v24 = vpop.xlane.xlu0 %2335  ;;  %1735 = vadd.xlane.f32.xlu0 %v1734_v0  ;;  %v5834_v33 = vpop.eup %4716  ;;  %4718 = vrsqrt.f32 %v5838_v48  ;;  %vm1983_vm10 = vweird.f32 %v5838_v48 }
 0x28f   : > { %2518 = vadd.xlane.f32.xlu2 %v2517_v13  ;;  %v5825_v28 = vpop.xlane.xlu2 %1732  ;;  %v2424_v50 = vmul.f32 %v2336_v24, %v5388_v23  ;;  %v1946_v13 = vsel %vm1945_vm15, %v5775_v40, %v1942_v21  ;;  %v1958_v63 = vmul.f32 %v5834_v33, %v5799_v37  ;;  %v1553_v24 = vsel %vm1477_vm3, %v1468_v14, 0.0 }
 0x290   : > { %v2167_v40 = vmul.f32 %v1946_v13, %v5571_v54  ;;  %4720 = vrsqrt.f32 %v5857_v57  ;;  %vm1964_vm6 = vweird.f32 %v5834_v33 }
 0x291   : > { %v5845_v0 = vsub.f32 %v5690_v45, %v2424_v50  ;;  %v2358_v45 = vsel %vm1477_vm3, %v5840_v11, 0.0  ;;  %v1959_v54 = vmul.f32 %v5834_v33, %v1958_v63  ;;  %v1972_v63 = vmul.f32 %v5803_v60, %v1971_v59  ;;  %vm1965_vm8 = vmor %vm1963_vm7, %vm1964_vm6 }
 0x292   : > { %v2202_v35 = vmul.f32 %v5614_v2, %v2167_v40 }
 0x293   : > { %v2488_v13 = vmul.f32 %v5845_v0, %v5845_v0  ;;  %v1976_v15 = vsel %vm5889_vm5, %v5803_v60, %v1972_v63  ;;  %v1603_v63 = vmul.f32 %v5388_v23, %v5707_v5 }
 0x295   : > { %v2526_v40 = vsel %vm1477_vm3, %v2488_v13, 0.0  ;;  %v1602_v13 = vmul.f32 %v5388_v23, %v5712_v44 }
 0x296   : > { %2359 = vadd.xlane.f32.xlu0 %v2358_v45 }
 0x297   : > { %1554 = vadd.xlane.f32.xlu2 %v1553_v24  ;;  %v2333_v21 = vpop.xlane.xlu2 %2332 }
 0x298   : > { %v2423_v6 = vmul.f32 %v2333_v21, %v5388_v23  ;;  %v2237_v21 = vadd.f32 %v5620_v29, %v2202_v35  ;;  %v1665_v35 = vmul.f32 %v5874_v42, %v5874_v42 }
 0x29a   : > { %v5864_v50 = vsub.f32 %v5703_v9, %v2423_v6  ;;  %v1960_v9 = vmul.f32 0.5, %v1959_v54  ;;  %v5882_v6 = vpop.eup %4718  ;;  %v1430_v54 = vpop.f32.mrf.mxu0 }
 0x29b   : > { %v5908_v7 = vpop.eup %4720  ;;  %v5913_v60 = vadd.f32 %v5817_v53, %v1430_v54  ;;  %v5937_v54 = vsub.f32 %v1465_v52, %v1603_v63  ;;  %vm1984_vm9 = vweird.f32 %v5882_v6 }
 0x29c   : > { %v2487_v55 = vmul.f32 %v5864_v50, %v5864_v50  ;;  %v1988_v5 = vmul.f32 %v5908_v7, %v5857_v57  ;;  %vm1985_vm11 = vmor %vm1983_vm10, %vm1984_vm9  ;;  %vm1994_vm12 = vweird.f32 %v5908_v7 }
 0x29d   : > { %vm1995_vm14 = vmor %vm1993_vm13, %vm1994_vm12 }
 0x29e   : > { %v2523_v24 = vsel %vm1477_vm3, %v2487_v55, 0.0  ;;  %v1961_v55 = vsub.f32 1.5, %v1960_v9  ;;  %1557 = vadd.xlane.f32.xlu0 %v1556_v22  ;;  %v5919_v9 = vsub.f32 %v1464_v32, %v1602_v13  ;;  %v2342_v56 = vpop.xlane.xlu0 %2341 }
 0x29f   : > { %v2339_v16 = vpop.xlane.xlu2 %2338  ;;  %2524 = vadd.xlane.f32.xlu1 %v2523_v24  ;;  %2527 = vadd.xlane.f32.xlu2 %v2526_v40  ;;  %v1978_v24 = vmul.f32 %v5882_v6, %v5838_v48 }
 0x2a0   : > { %v2425_v45 = vmul.f32 %v2339_v16, %v5388_v23  ;;  %v5906_v16 = vadd.f32 %v2269_v43, %v2237_v21  ;;  %v2170_v21 = vmul.f32 %v1976_v15, %v5562_v38  ;;  %v1962_v22 = vmul.f32 %v5834_v33, %v1961_v55 }
 0x2a1   : > { %v1979_v43 = vmul.f32 %v5882_v6, %v1978_v24  ;;  %v7432_v38 = vmax.f32 %v5913_v60, 0.0  ;;  %v2426_v55 = vmul.f32 %v2342_v56, %v5388_v23  ;;  %v1666_v24 = vmul.f32 %v5919_v9, %v5919_v9 }
 0x2a2   : > { %v5904_v40 = vsub.f32 %v5718_v41, %v2425_v45  ;;  %v1737_v41 = vsel %vm1477_vm3, %v1665_v35, 0.0  ;;  %v2355_v59 = vsel %vm1477_vm3, %v5906_v16, 0.0  ;;  %v5930_v45 = vpop.xlane.xlu1 %1729  ;;  %v2205_v13 = vmul.f32 %v5614_v2, %v2170_v21  ;;  %v1433_v37 = vpop.f32.mrf.mxu0 }
 0x2a3   : > { %v1966_v15 = vsel %vm1965_vm8, %v5834_v33, %v1962_v22  ;;  %v1980_v35 = vmul.f32 0.5, %v1979_v43  ;;  %v1559_v52 = vsel %vm1477_vm3, %v7432_v38, 0.0  ;;  %v1667_v33 = vmul.f32 %v5937_v54, %v5937_v54 }
 0x2a4   : > { %v2489_v44 = vmul.f32 %v5904_v40, %v5904_v40  ;;  %v2240_v63 = vadd.f32 %v5620_v29, %v2205_v13  ;;  %v5955_v22 = vsub.f32 %v5720_v25, %v2426_v55  ;;  %v1740_v43 = vsel %vm1477_vm3, %v1666_v24, 0.0 }
 0x2a5   : > { %v1981_v21 = vsub.f32 1.5, %v1980_v35 }
 0x2a6   : > { %v2529_v32 = vsel %vm1477_vm3, %v2489_v44, 0.0  ;;  %v1989_v44 = vmul.f32 %v5908_v7, %v1988_v5  ;;  %v2490_v24 = vmul.f32 %v5955_v22, %v5955_v22 }
 0x2a7   : > { %1738 = vadd.xlane.f32.xlu1 %v1737_v41  ;;  %2356 = vadd.xlane.f32.xlu2 %v2355_v59  ;;  %v2169_v41 = vmul.f32 %v1966_v15, %v5577_v8  ;;  %v2272_v59 = vld [vmem:[%s7464_s17 + $0x68] sm:$0xff]  ;;  %v1743_v8 = vsel %vm1477_vm3, %v1667_v33, 0.0  ;;  %v1982_v15 = vmul.f32 %v5882_v6, %v1981_v21 }
 0x2a8   : > { %2530 = vadd.xlane.f32.xlu0 %v2529_v32  ;;  %v1990_v5 = vmul.f32 0.5, %v1989_v44  ;;  %v5959_v32 = vadd.f32 1e-05, %v1789_v4  ;;  %v5964_v13 = vadd.f32 %v2272_v59, %v2240_v63  ;;  %v2532_v63 = vsel %vm1477_vm3, %v2490_v24, 0.0  ;;  %v2271_v59 = vld [vmem:[%s7464_s17 + $0x60] sm:$0xff] }
 0x2a9   : > { %v2204_v25 = vmul.f32 %v5614_v2, %v2169_v41 }
 0x2aa   : > { %v1991_v44 = vsub.f32 1.5, %v1990_v5  ;;  %4722 = vrsqrt.f32 %v5959_v32  ;;  %v1604_v5 = vmul.f32 %v5388_v23, %v5797_v34  ;;  %vm2003_vm4 = vweird.f32 %v5959_v32 }
 0x2ab   : > { %v2239_v41 = vadd.f32 %v5620_v29, %v2204_v25 }
 0x2ac   : > { %v1992_v21 = vmul.f32 %v5908_v7, %v1991_v44  ;;  %v6010_v34 = vsub.f32 %v1466_v10, %v1604_v5 }
 0x2ae   : > { %v2345_v56 = vpop.xlane.xlu1 %2344 }
 0x2af   : > { %v2348_v3 = vpop.xlane.xlu2 %2347  ;;  %1560 = vadd.xlane.f32.xlu1 %v1559_v52  ;;  %1741 = vadd.xlane.f32.xlu2 %v1740_v43  ;;  %v2427_v55 = vmul.f32 %v2345_v56, %v5388_v23  ;;  %v1435_v52 = vpop.f32.mrf.mxu0  ;;  %v5999_v56 = vadd.f32 %v2271_v59, %v2239_v41 }
 0x2b0   : > { %v2428_v38 = vmul.f32 %v2348_v3, %v5388_v23  ;;  %1744 = vadd.xlane.f32.xlu0 %v1743_v8  ;;  %v5990_v43 = vadd.f32 %v5817_v53, %v1435_v52  ;;  %v1996_v8 = vsel %vm1995_vm14, %v5908_v7, %v1992_v21 }
 0x2b1   : > { %v5982_v33 = vsub.f32 %v5738_v18, %v2427_v55  ;;  %v2361_v7 = vsel %vm1477_vm3, %v5999_v56, 0.0  ;;  %v2172_v44 = vmul.f32 %v1996_v8, %v5632_v26  ;;  %v2274_v8 = vld [vmem:[%s7464_s17 + $0x78] sm:$0xff] }
 0x2b2   : > { %v5969_v35 = vsub.f32 %v5740_v61, %v2428_v38  ;;  %v2364_v61 = vsel %vm1477_vm3, %v5964_v13, 0.0  ;;  %v1986_v38 = vsel %vm1985_vm11, %v5882_v6, %v1982_v15  ;;  %v4723_v6 = vpop.eup %4722  ;;  %v1472_v25 = vmax.f32 %v5990_v43, 0.0 }
 0x2b3   : > { %v2171_v18 = vmul.f32 %v1986_v38, %v5608_v46  ;;  %v2491_v3 = vmul.f32 %v5982_v33, %v5982_v33  ;;  %v6004_v15 = vadd.f32 %v5817_v53, %v1433_v37  ;;  %v1998_v46 = vmul.f32 %v4723_v6, %v5959_v32 }
 0x2b4   : > { %v2492_v4 = vmul.f32 %v5969_v35, %v5969_v35  ;;  %v1565_v37 = vsel %vm1477_vm3, %v1472_v25, 0.0  ;;  %v1668_v38 = vmul.f32 %v6010_v34, %v6010_v34  ;;  %v2207_v26 = vmul.f32 %v5614_v2, %v2172_v44 }
 0x2b5   : > { %v2206_v57 = vmul.f32 %v5614_v2, %v2171_v18  ;;  %v2535_v24 = vsel %vm1477_vm3, %v2491_v3, 0.0  ;;  %v1999_v52 = vmul.f32 %v4723_v6, %v1998_v46  ;;  %vm2004_vm15 = vweird.f32 %v4723_v6 }
 0x2b6   : > { %v2538_v48 = vsel %vm1477_vm3, %v2492_v4, 0.0  ;;  %v1471_v4 = vmax.f32 %v6004_v15, 0.0  ;;  %v1746_v59 = vsel %vm1477_vm3, %v1668_v38, 0.0  ;;  %v2242_v18 = vadd.f32 %v5620_v29, %v2207_v26  ;;  %vm2005_vm2 = vmor %vm2003_vm4, %vm2004_vm15 }
 0x2b7   : > { %2365 = vadd.xlane.f32.xlu2 %v2364_v61  ;;  %2533 = vadd.xlane.f32.xlu1 %v2532_v63  ;;  %v2241_v62 = vadd.f32 %v5620_v29, %v2206_v57  ;;  %v2273_v61 = vld [vmem:[%s7464_s17 + $0x70] sm:$0xff]  ;;  %v2000_v41 = vmul.f32 0.5, %v1999_v52 }
 0x2b8   : > { %2539 = vadd.xlane.f32.xlu0 %v2538_v48  ;;  %v1562_v63 = vsel %vm1477_vm3, %v1471_v4, 0.0  ;;  %v6043_v44 = vadd.f32 %v2274_v8, %v2242_v18 }
 0x2b9   : > { %v6029_v21 = vadd.f32 %v2273_v61, %v2241_v62  ;;  %v2001_v46 = vsub.f32 1.5, %v2000_v41  ;;  %v7477_v62 = vmax.f32 %v5757_v51, 0.0 }
 0x2ba   : > { %v2370_v38 = vsel %vm1477_vm3, %v6043_v44, 0.0 }
 0x2bb   : > { %v2367_v57 = vsel %vm1477_vm3, %v6029_v21, 0.0 }
 0x2be   : > { %v2354_v55 = vpop.xlane.xlu1 %2353 }
 0x2bf   : > { %2536 = vadd.xlane.f32.xlu2 %v2535_v24  ;;  %2362 = vadd.xlane.f32.xlu1 %v2361_v7  ;;  %v2430_v10 = vmul.f32 %v2354_v55, %v5388_v23  ;;  %v2351_v5 = vpop.xlane.xlu0 %2350  ;;  %v1438_v55 = vpop.f32.mrf.mxu0 }
 0x2c0   : > { %1566 = vadd.xlane.f32.xlu0 %v1565_v37  ;;  %v2429_v24 = vmul.f32 %v2351_v5, %v5388_v23  ;;  %v2002_v37 = vmul.f32 %v4723_v6, %v2001_v46 }
 0x2c1   : > { %v6032_v48 = vsub.f32 %v5754_v31, %v2430_v10 }
 0x2c2   : > { %v6046_v52 = vsub.f32 %v5759_v58, %v2429_v24  ;;  %v2006_v26 = vsel %vm2005_vm2, %v4723_v6, %v2002_v37 }
 0x2c3   : > { %v2494_v31 = vmul.f32 %v6032_v48, %v6032_v48  ;;  %v2173_v41 = vmul.f32 %v2006_v26, %v5592_v49 }
 0x2c4   : > { %v2493_v58 = vmul.f32 %v6046_v52, %v6046_v52 }
 0x2c5   : > { %v2544_v61 = vsel %vm1477_vm3, %v2494_v31, 0.0  ;;  %v2208_v8 = vmul.f32 %v5614_v2, %v2173_v41  ;;  %v1790_v2 = vmul.f32 %v5930_v45, %v5388_v23  ;;  %v982_v31 = vld.sshfl [vmem:[#allocation1 + $0x8] sm:$0xff pattern:$0x75316420] }
 0x2c6   : > { %v1552_v3 = vpop.xlane.xlu1 %1551  ;;  %v2541_v6 = vsel %vm1477_vm3, %v2493_v58, 0.0  ;;  %v986_v37 = vpack.c.bf16 %v982_v31, %v982_v31 }
 0x2c7   : > { %1563 = vadd.xlane.f32.xlu2 %v1562_v63  ;;  %1747 = vadd.xlane.f32.xlu1 %v1746_v59  ;;  %v1605_v7 = vmul.f32 %v5388_v23, %v1552_v3  ;;  %v1440_v51 = vpop.f32.mrf.mxu0  ;;  %v6062_v59 = vadd.f32 %v5817_v53, %v1438_v55  ;;  %v2243_v46 = vadd.f32 %v5620_v29, %v2208_v8  ;;  %v4581_v8 = vld [vmem:[%s7466_s12] sm:$0xff] }
 0x2c8   : > { %2368 = vadd.xlane.f32.xlu0 %v2367_v57  ;;  %v6065_v18 = vadd.f32 %v5817_v53, %v1440_v51  ;;  %v2275_v57 = vld [vmem:[%s7464_s17 + $0x80] sm:$0xff]  ;;  %v1791_v29 = vmul.f32 %v5825_v28, %v5388_v23  ;;  %v4582_v51 = vld [vmem:[%s7466_s12 + $0x8] sm:$0xff]  ;;  %s4121_s12 = sand.u32 1, %s5224_s0  }
 0x2c9   : > { %v6050_v10 = vsub.f32 %v7477_v62, %v1605_v7  ;;  %v7433_v5 = vmax.f32 %v6062_v59, 0.0  ;;  %v6080_v55 = vadd.f32 %v2275_v57, %v2243_v46  ;;  %v1822_v7 = vadd.f32 1e-05, %v1790_v2 }
 0x2ca   : > { %v7434_v3 = vmax.f32 %v6065_v18, 0.0  ;;  %v1013_v62 = vsel %vm1008_vm0, %v986_v37, 0 }
 0x2cb   : > { %v1669_v63 = vmul.f32 %v6050_v10, %v6050_v10  ;;  %v1568_v53 = vsel %vm1477_vm3, %v7433_v5, 0.0  ;;  %v2373_v24 = vsel %vm1477_vm3, %v6080_v55, 0.0  ;;  %4724 = vrsqrt.f32 %v1822_v7  ;;  %1036 = vmatpush.bf16.msra.mxu1 %v1013_v62 }
 0x2cc   : > { %v1571_v49 = vsel %vm1477_vm3, %v7434_v3, 0.0 }
 0x2cd   : > { %v1749_v32 = vsel %vm1477_vm3, %v1669_v63, 0.0 }
 0x2cf   : > { %2545 = vadd.xlane.f32.xlu2 %v2544_v61  ;;  %2371 = vadd.xlane.f32.xlu1 %v2370_v38  ;;  %v4881_v61 = vld [vmem:[%s5076_s21] sm:$0xff]  ;;  %v6091_v38 = vadd.f32 1e-05, %v1791_v29 }
 0x2d0   : > { %4415 = vmatmul.msk.bf16.vlgmr.msra.gmra.mxu1 %vm1004_vm1, %v4881_v61  ;;  %vm2013_vm1 = vweird.f32 %v1822_v7 }
 0x2d1   : > { %v6093_v26 = vpop.eup %4724  ;;  %4726 = vrsqrt.f32 %v6091_v38  ;;  %3185 = vmatpush.bf16.msrb.mxu1 %v4582_v51  ;;  %vm2023_vm12 = vweird.f32 %v6091_v38 }
 0x2d2   : > { %v2008_v45 = vmul.f32 %v6093_v26, %v1822_v7  ;;  %vm2014_vm0 = vweird.f32 %v6093_v26 }
 0x2d3   : > { %vm6119_vm5 = vmor %vm2013_vm1, %vm2014_vm0 }
 0x2d4   : > { %v2009_v41 = vmul.f32 %v6093_v26, %v2008_v45 }
 0x2d5   : > { %3186 = vmatpush.bf16.msrb.mxu1 %v4581_v8 }
 0x2d7   : > { %1750 = vadd.xlane.f32.xlu2 %v1749_v32  ;;  %2542 = vadd.xlane.f32.xlu1 %v2541_v6  ;;  %v6100_v32 = vpop.eup %4726 }
 0x2d8   : > { %v2018_v46 = vmul.f32 %v6100_v32, %v6091_v38  ;;  %vm2024_vm10 = vweird.f32 %v6100_v32 }
 0x2d9   : > { %vm6174_vm14 = vmor %vm2023_vm12, %vm2024_vm10 }
 0x2da   : > { %v2019_v29 = vmul.f32 %v6100_v32, %v2018_v46 }
 0x2df   : > { %1572 = vadd.xlane.f32.xlu2 %v1571_v49  ;;  %1569 = vadd.xlane.f32.xlu1 %v1568_v53  ;;  %v2010_v53 = vmul.f32 0.5, %v2009_v41 }
 0x2e1   : > { %v2011_v37 = vsub.f32 1.5, %v2010_v53 }
 0x2e3   : > { %v2012_v51 = vmul.f32 %v6093_v26, %v2011_v37 }
 0x2e5   : > { %v2016_v27 = vsel %vm6119_vm5, %v6093_v26, %v2012_v51 }
 0x2e7   : > { %2374 = vadd.xlane.f32.xlu2 %v2373_v24 }
 0x2f9   : > { %v2522_v63 = vpop.xlane.xlu0 %2521 }
 0x2fa   : > { %v2614_v58 = vmul.f32 %v2522_v63, %v5388_v23 }
 0x2fc   : > { %v2646_v28 = vadd.f32 1e-05, %v2614_v58 }
 0x2fe   : > { %4728 = vrsqrt.f32 %v2646_v28  ;;  %vm2693_vm7 = vweird.f32 %v2646_v28 }
 0x301   : > { %v1736_v24 = vpop.xlane.xlu0 %1735 }
 0x302   : > { %v2519_v6 = vpop.xlane.xlu2 %2518  ;;  %v1792_v2 = vmul.f32 %v1736_v24, %v5388_v23 }
 0x303   : > { %v2613_v49 = vmul.f32 %v2519_v6, %v5388_v23  ;;  %v2020_v6 = vmul.f32 0.5, %v2019_v29 }
 0x304   : > { %v4729_v31 = vpop.eup %4728  ;;  %v6107_v62 = vadd.f32 1e-05, %v1792_v2  ;;  %v2174_v2 = vmul.f32 %v2016_v27, %v5658_v36 }
 0x305   : > { %v2645_v57 = vadd.f32 1e-05, %v2613_v49  ;;  %v2688_v61 = vmul.f32 %v4729_v31, %v2646_v28  ;;  %vm2694_vm6 = vweird.f32 %v4729_v31 }
 0x306   : > { %vm6134_vm8 = vmor %vm2693_vm7, %vm2694_vm6  ;;  %vm2033_vm4 = vweird.f32 %v6107_v62 }
 0x307   : > { %4730 = vrsqrt.f32 %v2645_v57  ;;  %v2689_v63 = vmul.f32 %v4729_v31, %v2688_v61  ;;  %vm2683_vm11 = vweird.f32 %v2645_v57 }
 0x308   : > { %4732 = vrsqrt.f32 %v6107_v62 }
 0x309   : > { %v2690_v8 = vmul.f32 0.5, %v2689_v63  ;;  %v2360_v53 = vpop.xlane.xlu0 %2359 }
 0x30a   : > { %v1555_v45 = vpop.xlane.xlu2 %1554  ;;  %v2432_v24 = vmul.f32 %v2360_v53, %v5388_v23 }
 0x30b   : > { %v1606_v58 = vmul.f32 %v5388_v23, %v1555_v45  ;;  %v2691_v61 = vsub.f32 1.5, %v2690_v8  ;;  %v2021_v45 = vsub.f32 1.5, %v2020_v6 }
 0x30c   : > { %v6131_v7 = vsub.f32 %v5840_v11, %v2432_v24 }
 0x30d   : > { %v4731_v41 = vpop.eup %4730  ;;  %v6116_v49 = vsub.f32 %v1468_v14, %v1606_v58  ;;  %v2692_v63 = vmul.f32 %v4729_v31, %v2691_v61  ;;  %v2022_v61 = vmul.f32 %v6100_v32, %v2021_v45 }
 0x30e   : > { %v2678_v46 = vmul.f32 %v4731_v41, %v2645_v57  ;;  %v6125_v29 = vpop.eup %4732  ;;  %v2496_v26 = vmul.f32 %v6131_v7, %v6131_v7  ;;  %vm2684_vm9 = vweird.f32 %v4731_v41  ;;  %v6169_v57 = vld [vmem:[%s7463_s19] ss:$0 sm:$0xff] }
 0x30f   : > { %v1670_v37 = vmul.f32 %v6116_v49, %v6116_v49  ;;  %v2696_v11 = vsel %vm6134_vm8, %v4729_v31, %v2692_v63  ;;  %v2028_v51 = vmul.f32 %v6125_v29, %v6107_v62  ;;  %vm2685_vm13 = vmor %vm2683_vm11, %vm2684_vm9  ;;  %v2209_v8 = vmul.f32 %v6169_v57, %v2174_v2 }
 0x310   : > { %v2679_v14 = vmul.f32 %v4731_v41, %v2678_v46  ;;  %v2550_v24 = vsel %vm1477_vm3, %v2496_v26, 0.0  ;;  %vm2034_vm15 = vweird.f32 %v6125_v29 }
 0x311   : > { %v1752_v58 = vsel %vm1477_vm3, %v1670_v37, 0.0  ;;  %2551 = vadd.xlane.f32.xlu1 %v2550_v24  ;;  %v2029_v36 = vmul.f32 %v6125_v29, %v2028_v51  ;;  %vm6235_vm5 = vmor %vm2033_vm4, %vm2034_vm15 }
 0x312   : > { %v2680_v53 = vmul.f32 0.5, %v2679_v14  ;;  %v2525_v5 = vpop.xlane.xlu1 %2524  ;;  %1753 = vadd.xlane.f32.xlu0 %v1752_v58  ;;  %v2528_v3 = vpop.xlane.xlu2 %2527  ;;  %v2998_v14 = vmul.f32 %v2696_v11, %v5788_v17  ;;  %v6157_v58 = vld [vmem:[%s5116_s30] ss:$0 sm:$0xff]  ;;  %v7482_v17 = vmax.f32 %v5852_v39, 0.0 }
 0x313   : > { %v2615_v28 = vmul.f32 %v2525_v5, %v5388_v23  ;;  %v2616_v6 = vmul.f32 %v2528_v3, %v5388_v23  ;;  %v1558_v5 = vpop.xlane.xlu0 %1557 }
 0x314   : > { %v2681_v46 = vsub.f32 1.5, %v2680_v53  ;;  %v1607_v63 = vmul.f32 %v5388_v23, %v1558_v5  ;;  %v3033_v51 = vmul.f32 %v6157_v58, %v2998_v14 }
 0x315   : > { %v6150_v37 = vadd.f32 1e-05, %v2615_v28  ;;  %v6152_v31 = vadd.f32 1e-05, %v2616_v6  ;;  %v6186_v28 = vld [vmem:[%s7468_s6] ss:$0 sm:$0xff] }
 0x316   : > { %v2682_v3 = vmul.f32 %v4731_v41, %v2681_v46  ;;  %v6166_v45 = vsub.f32 %v7482_v17, %v1607_v63  ;;  %v2030_v6 = vmul.f32 0.5, %v2029_v36 }
 0x317   : > { %4734 = vrsqrt.f32 %v6150_v37  ;;  %vm2703_vm2 = vweird.f32 %v6150_v37  ;;  %vm2713_vm6 = vweird.f32 %v6152_v31 }
 0x318   : > { %v2686_v27 = vsel %vm2685_vm13, %v4731_v41, %v2682_v3  ;;  %4736 = vrsqrt.f32 %v6152_v31  ;;  %v2026_v41 = vsel %vm6174_vm14, %v6100_v32, %v2022_v61  ;;  %v1671_v11 = vmul.f32 %v6166_v45, %v6166_v45  ;;  %v6193_v32 = vld [vmem:[%s5111_s24] ss:$0 sm:$0xff] }
 0x319   : > { %v2997_v53 = vmul.f32 %v2686_v27, %v5806_v30  ;;  %v2244_v61 = vadd.f32 %v6193_v32, %v2209_v8  ;;  %v2175_v27 = vmul.f32 %v2026_v41, %v5684_v12  ;;  %v2276_v8 = vld [vmem:[%s7464_s17 + $0x88] sm:$0xff] }
 0x31a   : > { %v1739_v39 = vpop.xlane.xlu1 %1738  ;;  %v2357_v26 = vpop.xlane.xlu2 %2356  ;;  %v1755_v2 = vsel %vm1477_vm3, %v1671_v11, 0.0 }
 0x31b   : > { %v1793_v46 = vmul.f32 %v1739_v39, %v5388_v23  ;;  %v2431_v24 = vmul.f32 %v2357_v26, %v5388_v23  ;;  %v3032_v30 = vmul.f32 %v6157_v58, %v2997_v53  ;;  %1756 = vadd.xlane.f32.xlu1 %v1755_v2  ;;  %v2531_v63 = vpop.xlane.xlu0 %2530  ;;  %v3068_v39 = vadd.f32 %v6186_v28, %v3033_v51 }
 0x31c   : > { %v2617_v53 = vmul.f32 %v2531_v63, %v5388_v23  ;;  %v2031_v26 = vsub.f32 1.5, %v2030_v6  ;;  %v2210_v2 = vmul.f32 %v6169_v57, %v2175_v27 }
 0x31d   : > { %v4735_v5 = vpop.eup %4734  ;;  %v6196_v3 = vadd.f32 1e-05, %v1793_v46  ;;  %v6199_v14 = vsub.f32 %v5906_v16, %v2431_v24  ;;  %v3067_v36 = vadd.f32 %v6186_v28, %v3032_v30  ;;  %v6213_v30 = vadd.f32 %v2276_v8, %v2244_v61 }
 0x31e   : > { %v4737_v17 = vpop.eup %4736  ;;  %v2698_v38 = vmul.f32 %v4735_v5, %v6150_v37  ;;  %v6209_v46 = vadd.f32 1e-05, %v2617_v53  ;;  %vm2704_vm0 = vweird.f32 %v4735_v5 }
 0x31f   : > { %v2708_v11 = vmul.f32 %v4737_v17, %v6152_v31  ;;  %4738 = vrsqrt.f32 %v6196_v3  ;;  %v3099_v24 = vpack.c.bf16 %v3068_v39, %v3067_v36  ;;  %v2495_v12 = vmul.f32 %v6199_v14, %v6199_v14  ;;  %vm2705_vm7 = vmor %vm2703_vm2, %vm2704_vm0 }
 0x320   : > { %v2699_v16 = vmul.f32 %v4735_v5, %v2698_v38  ;;  %4740 = vrsqrt.f32 %v6209_v46  ;;  %v2032_v36 = vmul.f32 %v6125_v29, %v2031_v26  ;;  %vm2714_vm1 = vweird.f32 %v4737_v17 }
 0x321   : > { %v2709_v41 = vmul.f32 %v4737_v17, %v2708_v11  ;;  %4514 = vmatmul.msk.bf16.vlgmr.msrb.gmra.mxu1 %vm1477_vm3, %v3099_v24  ;;  %v2547_v63 = vsel %vm1477_vm3, %v2495_v12, 0.0  ;;  %vm2715_vm8 = vmor %vm2713_vm6, %vm2714_vm1  ;;  %vm2043_vm10 = vweird.f32 %v6196_v3  ;;  %vm2723_vm13 = vweird.f32 %v6209_v46 }
 0x322   : > { %v2700_v51 = vmul.f32 0.5, %v2699_v16  ;;  %v1561_v6 = vpop.xlane.xlu1 %1560  ;;  %v1742_v38 = vpop.xlane.xlu2 %1741  ;;  %2548 = vadd.xlane.f32.xlu0 %v2547_v63  ;;  %v7485_v16 = vmax.f32 %v5913_v60, 0.0  ;;  %v2036_v60 = vsel %vm6235_vm5, %v6125_v29, %v2032_v36 }
 0x323   : > { %v2710_v53 = vmul.f32 0.5, %v2709_v41  ;;  %v1608_v39 = vmul.f32 %v5388_v23, %v1561_v6  ;;  %v1794_v61 = vmul.f32 %v1742_v38, %v5388_v23  ;;  %v1745_v12 = vpop.xlane.xlu0 %1744 }
 0x324   : > { %v2701_v27 = vsub.f32 1.5, %v2700_v51  ;;  %v1795_v51 = vmul.f32 %v1745_v12, %v5388_v23 }
 0x325   : > { %v6225_v8 = vpop.eup %4738  ;;  %v2711_v11 = vsub.f32 1.5, %v2710_v53  ;;  %v6229_v24 = vsub.f32 %v7485_v16, %v1608_v39  ;;  %v6231_v26 = vadd.f32 1e-05, %v1794_v61  ;;  %v2245_v61 = vadd.f32 %v6193_v32, %v2210_v2  ;;  %v2277_v16 = vld [vmem:[%s7464_s17 + $0x90] sm:$0xff] }
 0x326   : > { %v2702_v62 = vmul.f32 %v4735_v5, %v2701_v27  ;;  %v2038_v37 = vmul.f32 %v6225_v8, %v6196_v3  ;;  %v6249_v38 = vpop.eup %4740  ;;  %v6253_v39 = vadd.f32 1e-05, %v1795_v51  ;;  %vm2044_vm9 = vweird.f32 %v6225_v8 }
 0x327   : > { %v2712_v6 = vmul.f32 %v4737_v17, %v2711_v11  ;;  %4742 = vrsqrt.f32 %v6231_v26  ;;  %v1672_v63 = vmul.f32 %v6229_v24, %v6229_v24  ;;  %v2718_v27 = vmul.f32 %v6249_v38, %v6209_v46  ;;  %vm6291_vm11 = vmor %vm2043_vm10, %vm2044_vm9 }
 0x328   : > { %v2706_v31 = vsel %vm2705_vm7, %v4735_v5, %v2702_v62  ;;  %v2039_v53 = vmul.f32 %v6225_v8, %v2038_v37  ;;  %v2376_v11 = vsel %vm1477_vm3, %v6213_v30, 0.0  ;;  %4744 = vrsqrt.f32 %v6253_v39 }
 0x329   : > { %v2999_v29 = vmul.f32 %v2706_v31, %v5864_v50  ;;  %v2716_v36 = vsel %vm2715_vm8, %v4737_v17, %v2712_v6  ;;  %v2176_v37 = vmul.f32 %v2036_v60, %v5794_v47  ;;  %v2719_v2 = vmul.f32 %v6249_v38, %v2718_v27 }
 0x32a   : > { %v3000_v5 = vmul.f32 %v2716_v36, %v5845_v0  ;;  %v2040_v12 = vmul.f32 0.5, %v2039_v53  ;;  %v2366_v41 = vpop.xlane.xlu2 %2365  ;;  %v2534_v62 = vpop.xlane.xlu1 %2533  ;;  %v1758_v50 = vsel %vm1477_vm3, %v1672_v63, 0.0  ;;  %2377 = vadd.xlane.f32.xlu0 %v2376_v11  ;;  %v6271_v53 = vadd.f32 %v2277_v16, %v2245_v61 }
 0x32b   : > { %v2434_v17 = vmul.f32 %v2366_v41, %v5388_v23  ;;  %v2618_v51 = vmul.f32 %v2534_v62, %v5388_v23  ;;  %1759 = vadd.xlane.f32.xlu2 %v1758_v50  ;;  %v3034_v0 = vmul.f32 %v6157_v58, %v2999_v29  ;;  %v2720_v47 = vmul.f32 0.5, %v2719_v2  ;;  %v2540_v27 = vpop.xlane.xlu0 %2539 }
 0x32c   : > { %v2041_v6 = vsub.f32 1.5, %v2040_v12  ;;  %v3035_v31 = vmul.f32 %v6157_v58, %v3000_v5  ;;  %v2620_v5 = vmul.f32 %v2540_v27, %v5388_v23  ;;  %v2211_v61 = vmul.f32 %v6169_v57, %v2176_v37 }
 0x32d   : > { %v6273_v36 = vpop.eup %4742  ;;  %v6277_v60 = vsub.f32 %v5964_v13, %v2434_v17  ;;  %v6279_v63 = vadd.f32 1e-05, %v2618_v51  ;;  %v2721_v16 = vsub.f32 1.5, %v2720_v47  ;;  %v3069_v13 = vadd.f32 %v6186_v28, %v3034_v0 }
 0x32e   : > { %v2042_v11 = vmul.f32 %v6225_v8, %v2041_v6  ;;  %v2048_v29 = vmul.f32 %v6273_v36, %v6231_v26  ;;  %v6289_v12 = vpop.eup %4744  ;;  %v6296_v2 = vadd.f32 1e-05, %v2620_v5  ;;  %v3070_v37 = vadd.f32 %v6186_v28, %v3035_v31 }
 0x32f   : > { %4746 = vrsqrt.f32 %v6279_v63  ;;  %v2379_v50 = vsel %vm1477_vm3, %v6271_v53, 0.0  ;;  %v2498_v17 = vmul.f32 %v6277_v60, %v6277_v60  ;;  %v2246_v27 = vadd.f32 %v6193_v32, %v2211_v61 }
 0x330   : > { %v2049_v62 = vmul.f32 %v6273_v36, %v2048_v29  ;;  %v2046_v3 = vsel %vm6291_vm11, %v6225_v8, %v2042_v11  ;;  %4748 = vrsqrt.f32 %v6296_v2  ;;  %v3100_v6 = vpack.c.bf16 %v3070_v37, %v3069_v13  ;;  %v2278_v29 = vld [vmem:[%s7464_s17 + $0x98] sm:$0xff] }
 0x331   : > { %v2722_v31 = vmul.f32 %v6249_v38, %v2721_v16  ;;  %vm2724_vm12 = vweird.f32 %v6249_v38  ;;  %v2058_v5 = vmul.f32 %v6289_v12, %v6253_v39  ;;  %v2556_v13 = vsel %vm1477_vm3, %v2498_v17, 0.0 }
 0x332   : > { %v2050_v51 = vmul.f32 0.5, %v2049_v62  ;;  %v2537_v0 = vpop.xlane.xlu2 %2536  ;;  %v2363_v47 = vpop.xlane.xlu1 %2362  ;;  %4515 = vmatmul.msk.bf16.gmra.mxu1 %vm1477_vm3, %v3100_v6  ;;  %v2177_v41 = vmul.f32 %v2046_v3, %v5874_v42  ;;  %2557 = vadd.xlane.f32.xlu1 %v2556_v13  ;;  %vm6326_vm14 = vmor %vm2723_vm13, %vm2724_vm12  ;;  %v6332_v3 = vadd.f32 %v2278_v29, %v2246_v27  ;;  %vm2053_vm15 = vweird.f32 %v6231_v26 }
 0x333   : > { %v2619_v8 = vmul.f32 %v2537_v0, %v5388_v23  ;;  %v2433_v11 = vmul.f32 %v2363_v47, %v5388_v23  ;;  %2380 = vadd.xlane.f32.xlu2 %v2379_v50  ;;  %v1567_v0 = vpop.xlane.xlu0 %1566  ;;  %v2726_v46 = vsel %vm6326_vm14, %v6249_v38, %v2722_v31  ;;  %vm2054_vm4 = vweird.f32 %v6273_v36 }
 0x334   : > { %v2051_v16 = vsub.f32 1.5, %v2050_v51  ;;  %v1610_v42 = vmul.f32 %v5388_v23, %v1567_v0  ;;  %v2059_v51 = vmul.f32 %v6289_v12, %v2058_v5  ;;  %v3001_v29 = vmul.f32 %v2726_v46, %v5904_v40  ;;  %vm6364_vm0 = vmor %vm2053_vm15, %vm2054_vm4 }
 0x335   : > { %v4747_v61 = vpop.eup %4746  ;;  %v6319_v62 = vadd.f32 1e-05, %v2619_v8  ;;  %v6322_v37 = vsub.f32 %v5999_v56, %v2433_v11  ;;  %v2212_v8 = vmul.f32 %v6169_v57, %v2177_v41  ;;  %vm2733_vm2 = vweird.f32 %v6279_v63 }
 0x336   : > { %v2728_v50 = vmul.f32 %v4747_v61, %v6279_v63  ;;  %v6341_v17 = vpop.eup %4748  ;;  %v6346_v27 = vsub.f32 %v1472_v25, %v1610_v42  ;;  %v2052_v38 = vmul.f32 %v6273_v36, %v2051_v16  ;;  %vm2734_vm1 = vweird.f32 %v4747_v61 }
 0x337   : > { %4750 = vrsqrt.f32 %v6319_v62  ;;  %v2497_v56 = vmul.f32 %v6322_v37, %v6322_v37  ;;  %v2748_v31 = vmul.f32 %v6341_v17, %v6296_v2  ;;  %v2247_v6 = vadd.f32 %v6193_v32, %v2212_v8  ;;  %vm2735_vm5 = vmor %vm2733_vm2, %vm2734_vm1 }
 0x338   : > { %v2729_v47 = vmul.f32 %v4747_v61, %v2728_v50  ;;  %v1674_v13 = vmul.f32 %v6346_v27, %v6346_v27  ;;  %v2060_v50 = vmul.f32 0.5, %v2059_v51  ;;  %v2382_v63 = vsel %vm1477_vm3, %v6332_v3, 0.0 }
 0x339   : > { %v2553_v11 = vsel %vm1477_vm3, %v2497_v56, 0.0  ;;  %v2749_v41 = vmul.f32 %v6341_v17, %v2748_v31  ;;  %v2279_v56 = vld [vmem:[%s7464_s17 + $0xa0] sm:$0xff]  ;;  %v2056_v31 = vsel %vm6364_vm0, %v6273_v36, %v2052_v38  ;;  %vm2754_vm6 = vweird.f32 %v6341_v17 }
 0x33a   : > { %v2730_v5 = vmul.f32 0.5, %v2729_v47  ;;  %v1564_v43 = vpop.xlane.xlu2 %1563  ;;  %2554 = vadd.xlane.f32.xlu0 %v2553_v11  ;;  %v1748_v25 = vpop.xlane.xlu1 %1747  ;;  %v1764_v46 = vsel %vm1477_vm3, %v1674_v13, 0.0  ;;  %v3036_v13 = vmul.f32 %v6157_v58, %v3001_v29  ;;  %vm2743_vm8 = vweird.f32 %v6319_v62 }
 0x33b   : > { %v1609_v16 = vmul.f32 %v5388_v23, %v1564_v43  ;;  %v1796_v0 = vmul.f32 %v1748_v25, %v5388_v23  ;;  %v2750_v11 = vmul.f32 0.5, %v2749_v41  ;;  %1765 = vadd.xlane.f32.xlu2 %v1764_v46  ;;  %v2369_v51 = vpop.xlane.xlu0 %2368  ;;  %vm2753_vm9 = vweird.f32 %v6296_v2 }
 0x33c   : > { %v2731_v42 = vsub.f32 1.5, %v2730_v5  ;;  %v2435_v25 = vmul.f32 %v2369_v51, %v5388_v23  ;;  %vm2064_vm11 = vweird.f32 %v6289_v12  ;;  %vm6435_vm12 = vmor %vm2753_vm9, %vm2754_vm6  ;;  %vm2063_vm13 = vweird.f32 %v6253_v39 }
 0x33d   : > { %v6370_v47 = vpop.eup %4750  ;;  %v6377_v26 = vsub.f32 %v1471_v4, %v1609_v16  ;;  %v6379_v8 = vadd.f32 1e-05, %v1796_v0  ;;  %v6390_v4 = vadd.f32 %v2279_v56, %v2247_v6  ;;  %v2751_v38 = vsub.f32 1.5, %v2750_v11  ;;  %vm2065_vm14 = vmor %vm2063_vm13, %vm2064_vm11 }
 0x33e   : > { %v2732_v5 = vmul.f32 %v4747_v61, %v2731_v42  ;;  %v2738_v43 = vmul.f32 %v6370_v47, %v6319_v62  ;;  %v2178_v16 = vmul.f32 %v2056_v31, %v5919_v9  ;;  %v6396_v29 = vsub.f32 %v6029_v21, %v2435_v25 }
 0x33f   : > { %4752 = vrsqrt.f32 %v6379_v8  ;;  %v1673_v15 = vmul.f32 %v6377_v26, %v6377_v26  ;;  %v2061_v42 = vsub.f32 1.5, %v2060_v50  ;;  %v3071_v9 = vadd.f32 %v6186_v28, %v3036_v13 }
 0x340   : > { %v2736_v36 = vsel %vm2735_vm5, %v4747_v61, %v2732_v5  ;;  %v2739_v41 = vmul.f32 %v6370_v47, %v2738_v43  ;;  %vm2744_vm7 = vweird.f32 %v6370_v47  ;;  %v2752_v31 = vmul.f32 %v6341_v17, %v2751_v38 }
 0x341   : > { %v3002_v0 = vmul.f32 %v2736_v36, %v5955_v22  ;;  %v1761_v40 = vsel %vm1477_vm3, %v1673_v15, 0.0  ;;  %v2385_v11 = vsel %vm1477_vm3, %v6390_v4, 0.0  ;;  %v2213_v51 = vmul.f32 %v6169_v57, %v2178_v16  ;;  %vm2745_vm10 = vmor %vm2743_vm8, %vm2744_vm7 }
 0x342   : > { %v2740_v6 = vmul.f32 0.5, %v2739_v41  ;;  %v2546_v61 = vpop.xlane.xlu2 %2545  ;;  %v2372_v46 = vpop.xlane.xlu1 %2371  ;;  %2383 = vadd.xlane.f32.xlu0 %v2382_v63  ;;  %1762 = vadd.xlane.f32.xlu1 %v1761_v40  ;;  %v2499_v15 = vmul.f32 %v6396_v29, %v6396_v29  ;;  %v2062_v16 = vmul.f32 %v6289_v12, %v2061_v42  ;;  %v2756_v63 = vsel %vm6435_vm12, %v6341_v17, %v2752_v31 }
 0x343   : > { %v2622_v22 = vmul.f32 %v2546_v61, %v5388_v23  ;;  %v2436_v21 = vmul.f32 %v2372_v46, %v5388_v23  ;;  %v3037_v56 = vmul.f32 %v6157_v58, %v3002_v0  ;;  %2386 = vadd.xlane.f32.xlu2 %v2385_v11  ;;  %vm2073_vm4 = vweird.f32 %v6379_v8 }
 0x344   : > { %v2741_v50 = vsub.f32 1.5, %v2740_v6  ;;  %v2559_v42 = vsel %vm1477_vm3, %v2499_v15, 0.0  ;;  %v2248_v6 = vadd.f32 %v6193_v32, %v2213_v51 }
 0x345   : > { %v6411_v5 = vpop.eup %4752  ;;  %v6413_v43 = vadd.f32 1e-05, %v2622_v22  ;;  %v6416_v25 = vsub.f32 %v6043_v44, %v2436_v21  ;;  %v3072_v13 = vadd.f32 %v6186_v28, %v3037_v56  ;;  %v3004_v56 = vmul.f32 %v2756_v63, %v5969_v35 }
 0x346   : > { %v2742_v36 = vmul.f32 %v6370_v47, %v2741_v50  ;;  %v2068_v38 = vmul.f32 %v6411_v5, %v6379_v8  ;;  %vm2074_vm15 = vweird.f32 %v6411_v5 }
 0x347   : > { %4754 = vrsqrt.f32 %v6413_v43  ;;  %v3101_v44 = vpack.c.bf16 %v3072_v13, %v3071_v9  ;;  %v2500_v41 = vmul.f32 %v6416_v25, %v6416_v25  ;;  %vm6483_vm2 = vmor %vm2073_vm4, %vm2074_vm15  ;;  %vm2773_vm1 = vweird.f32 %v6413_v43 }
 0x348   : > { %v2746_v2 = vsel %vm2745_vm10, %v6370_v47, %v2742_v36  ;;  %v2069_v0 = vmul.f32 %v6411_v5, %v2068_v38  ;;  %v2280_v47 = vld [vmem:[%s7464_s17 + $0xa8] sm:$0xff] }
 0x349   : > { %4516 = vmatmul.msk.bf16.gmra.mxu1 %vm1477_vm3, %v3101_v44  ;;  %v2562_v40 = vsel %vm1477_vm3, %v2500_v41, 0.0  ;;  %v3003_v61 = vmul.f32 %v2746_v2, %v5982_v33  ;;  %v2066_v33 = vsel %vm2065_vm14, %v6289_v12, %v2062_v16  ;;  %v6463_v51 = vadd.f32 %v2280_v47, %v2248_v6 }
 0x34a   : > { %v2070_v46 = vmul.f32 0.5, %v2069_v0  ;;  %v1751_v9 = vpop.xlane.xlu2 %1750  ;;  %v2543_v22 = vpop.xlane.xlu1 %2542  ;;  %2563 = vadd.xlane.f32.xlu1 %v2562_v40  ;;  %2560 = vadd.xlane.f32.xlu0 %v2559_v42  ;;  %v3039_v12 = vmul.f32 %v6157_v58, %v3004_v56  ;;  %v2179_v36 = vmul.f32 %v2066_v33, %v5937_v54 }
 0x34b   : > { %v1797_v17 = vmul.f32 %v1751_v9, %v5388_v23  ;;  %v2621_v21 = vmul.f32 %v2543_v22, %v5388_v23  ;;  %v3038_v15 = vmul.f32 %v6157_v58, %v3003_v61  ;;  %v2388_v38 = vsel %vm1477_vm3, %v6463_v51, 0.0 }
 0x34c   : > { %v2071_v39 = vsub.f32 1.5, %v2070_v46  ;;  %v3074_v40 = vadd.f32 %v6186_v28, %v3039_v12  ;;  %v2214_v42 = vmul.f32 %v6169_v57, %v2179_v36  ;;  %v7498_v46 = vmax.f32 %v6065_v18, 0.0  ;;  %v2281_v36 = vld [vmem:[%s7464_s17 + $0xb0] sm:$0xff] }
 0x34d   : > { %v6456_v31 = vpop.eup %4754  ;;  %v6459_v50 = vadd.f32 1e-05, %v1797_v17  ;;  %v6461_v11 = vadd.f32 1e-05, %v2621_v21  ;;  %v3073_v2 = vadd.f32 %v6186_v28, %v3038_v15  ;;  %v7499_v22 = vmax.f32 %v6062_v59, 0.0 }
 0x34e   : > { %v2768_v13 = vmul.f32 %v6456_v31, %v6413_v43  ;;  %v2072_v44 = vmul.f32 %v6411_v5, %v2071_v39  ;;  %vm2774_vm0 = vweird.f32 %v6456_v31 }
 0x34f   : > { %4756 = vrsqrt.f32 %v6459_v50  ;;  %v3102_v56 = vpack.c.bf16 %v3074_v40, %v3073_v2  ;;  %vm2775_vm5 = vmor %vm2773_vm1, %vm2774_vm0  ;;  %vm2083_vm8 = vweird.f32 %v6459_v50  ;;  %vm2763_vm10 = vweird.f32 %v6461_v11 }
 0x350   : > { %v2769_v35 = vmul.f32 %v6456_v31, %v2768_v13  ;;  %4758 = vrsqrt.f32 %v6461_v11  ;;  %v2076_v8 = vsel %vm6483_vm2, %v6411_v5, %v2072_v44  ;;  %v2249_v5 = vadd.f32 %v6193_v32, %v2214_v42 }
 0x352   : > { %v2770_v41 = vmul.f32 0.5, %v2769_v35  ;;  %v1573_v16 = vpop.xlane.xlu2 %1572  ;;  %v1570_v62 = vpop.xlane.xlu1 %1569  ;;  %2389 = vadd.xlane.f32.xlu0 %v2388_v38  ;;  %v2180_v38 = vmul.f32 %v2076_v8, %v6010_v34 }
 0x353   : > { %v1612_v0 = vmul.f32 %v5388_v23, %v1573_v16  ;;  %v1611_v63 = vmul.f32 %v5388_v23, %v1570_v62 }
 0x354   : > { %v2771_v54 = vsub.f32 1.5, %v2770_v41 }
 0x355   : > { %v4757_v6 = vpop.eup %4756  ;;  %v6489_v9 = vsub.f32 %v7498_v46, %v1612_v0  ;;  %v6493_v47 = vsub.f32 %v7499_v22, %v1611_v63  ;;  %v6517_v0 = vadd.f32 %v2281_v36, %v2249_v5 }
 0x356   : > { %v4759_v17 = vpop.eup %4758  ;;  %v2078_v21 = vmul.f32 %v4757_v6, %v6459_v50  ;;  %v2772_v33 = vmul.f32 %v6456_v31, %v2771_v54  ;;  %vm2084_vm6 = vweird.f32 %v4757_v6  ;;  %v2215_v54 = vmul.f32 %v6169_v57, %v2180_v38 }
 0x357   : > { %v2758_v18 = vmul.f32 %v4759_v17, %v6461_v11  ;;  %v1675_v59 = vmul.f32 %v6493_v47, %v6493_v47  ;;  %v1676_v39 = vmul.f32 %v6489_v9, %v6489_v9  ;;  %vm2764_vm7 = vweird.f32 %v4759_v17  ;;  %vm2085_vm9 = vmor %vm2083_vm8, %vm2084_vm6 }
 0x358   : > { %v2079_v13 = vmul.f32 %v4757_v6, %v2078_v21  ;;  %v2776_v43 = vsel %vm2775_vm5, %v6456_v31, %v2772_v33  ;;  %vm2765_vm11 = vmor %vm2763_vm10, %vm2764_vm7 }
 0x359   : > { %v2759_v15 = vmul.f32 %v4759_v17, %v2758_v18  ;;  %4517 = vmatmul.msk.bf16.gmra.mxu1 %vm1477_vm3, %v3102_v56  ;;  %v1767_v35 = vsel %vm1477_vm3, %v1675_v59, 0.0  ;;  %v1770_v12 = vsel %vm1477_vm3, %v1676_v39, 0.0  ;;  %v3006_v40 = vmul.f32 %v2776_v43, %v6032_v48  ;;  %v2282_v56 = vld [vmem:[%s7464_s17 + $0xb8] sm:$0xff] }
 0x35a   : > { %v2080_v44 = vmul.f32 0.5, %v2079_v13  ;;  %v2375_v41 = vpop.xlane.xlu2 %2374  ;;  %1768 = vadd.xlane.f32.xlu1 %v1767_v35  ;;  %1771 = vadd.xlane.f32.xlu2 %v1770_v12  ;;  %v2250_v48 = vadd.f32 %v6193_v32, %v2215_v54  ;;  %v2283_v13 = vld [vmem:[%s7464_s17 + $0xc0] sm:$0xff] }
 0x35b   : > { %v2760_v16 = vmul.f32 0.5, %v2759_v15  ;;  %v2437_v62 = vmul.f32 %v2375_v41, %v5388_v23  ;;  %v3041_v11 = vmul.f32 %v6157_v58, %v3006_v40 }
 0x35c   : > { %v2081_v2 = vsub.f32 1.5, %v2080_v44  ;;  %v6537_v33 = vadd.f32 %v2282_v56, %v2250_v48 }
 0x35d   : > { %v2761_v63 = vsub.f32 1.5, %v2760_v16  ;;  %v6520_v34 = vsub.f32 %v6080_v55, %v2437_v62  ;;  %v2391_v55 = vsel %vm1477_vm3, %v6517_v0, 0.0  ;;  %v3076_v59 = vadd.f32 %v6186_v28, %v3041_v11 }
 0x35e   : > { %v2082_v42 = vmul.f32 %v4757_v6, %v2081_v2 }
 0x35f   : > { %v2762_v31 = vmul.f32 %v4759_v17, %v2761_v63  ;;  %v2501_v61 = vmul.f32 %v6520_v34, %v6520_v34 }
 0x360   : > { %v2086_v46 = vsel %vm2085_vm9, %v4757_v6, %v2082_v42 }
 0x361   : > { %v2766_v22 = vsel %vm2765_vm11, %v4759_v17, %v2762_v31  ;;  %v2565_v8 = vsel %vm1477_vm3, %v2501_v61, 0.0  ;;  %v2181_v50 = vmul.f32 %v2086_v46, %v6050_v10  ;;  %v2394_v10 = vsel %vm1477_vm3, %v6537_v33, 0.0 }
 0x362   : > { %v3005_v21 = vmul.f32 %v2766_v22, %v6046_v52  ;;  %2392 = vadd.xlane.f32.xlu2 %v2391_v55  ;;  %2566 = vadd.xlane.f32.xlu0 %v2565_v8 }
 0x363   : > { %v2216_v17 = vmul.f32 %v6169_v57, %v2181_v50 }
 0x364   : > { %v3040_v6 = vmul.f32 %v6157_v58, %v3005_v21 }
 0x365   : > { %v2251_v52 = vadd.f32 %v6193_v32, %v2216_v17 }
 0x366   : > { %v3075_v18 = vadd.f32 %v6186_v28, %v3040_v6 }
 0x367   : > { %v6547_v5 = vadd.f32 %v2283_v13, %v2251_v52 }
 0x368   : > { %v3103_v39 = vpack.c.bf16 %v3076_v59, %v3075_v18 }
 0x369   : > { %v2397_v15 = vsel %vm1477_vm3, %v6547_v5, 0.0 }
 0x36a   : > { %4518 = vmatmul.msk.bf16.gmra.mxu1 %vm1477_vm3, %v3103_v39  ;;  %2395 = vadd.xlane.f32.xlu0 %v2394_v10 }
 0x372   : > { %2398 = vadd.xlane.f32.xlu0 %v2397_v15 }
 0x384   : > { %v2552_v36 = vpop.xlane.xlu1 %2551 }
 0x385   : > { %v1754_v35 = vpop.xlane.xlu0 %1753  ;;  %v2624_v44 = vmul.f32 %v2552_v36, %v5388_v23 }
 0x386   : > { %v1798_v12 = vmul.f32 %v1754_v35, %v5388_v23 }
 0x387   : > { %v2656_v41 = vadd.f32 1e-05, %v2624_v44 }
 0x388   : > { %v1830_v38 = vadd.f32 1e-05, %v1798_v12 }
 0x389   : > { %vm2793_vm4 = vweird.f32 %v2656_v41 }
 0x38a   : > { %4760 = vrsqrt.f32 %v1830_v38  ;;  %vm2093_vm13 = vweird.f32 %v1830_v38 }
 0x38b   : > { %4762 = vrsqrt.f32 %v2656_v41 }
 0x38e   : > { %v1757_v16 = vpop.xlane.xlu1 %1756 }
 0x38f   : > { %v1799_v2 = vmul.f32 %v1757_v16, %v5388_v23 }
 0x390   : > { %v4761_v43 = vpop.eup %4760 }
 0x391   : > { %v2088_v62 = vmul.f32 %v4761_v43, %v1830_v38  ;;  %v4763_v63 = vpop.eup %4762  ;;  %v1831_v40 = vadd.f32 1e-05, %v1799_v2  ;;  %vm2094_vm12 = vweird.f32 %v4761_v43 }
 0x392   : > { %v2788_v42 = vmul.f32 %v4763_v63, %v2656_v41  ;;  %vm2794_vm14 = vweird.f32 %v4763_v63  ;;  %vm2095_vm15 = vmor %vm2093_vm13, %vm2094_vm12 }
 0x393   : > { %v2089_v54 = vmul.f32 %v4761_v43, %v2088_v62  ;;  %4764 = vrsqrt.f32 %v1831_v40  ;;  %vm2795_vm2 = vmor %vm2793_vm4, %vm2794_vm14  ;;  %vm2103_vm5 = vweird.f32 %v1831_v40 }
 0x394   : > { %v2789_v31 = vmul.f32 %v4763_v63, %v2788_v42 }
 0x395   : > { %v2090_v61 = vmul.f32 0.5, %v2089_v54  ;;  %v2549_v46 = vpop.xlane.xlu0 %2548 }
 0x396   : > { %v2623_v55 = vmul.f32 %v2549_v46, %v5388_v23  ;;  %v2790_v22 = vmul.f32 0.5, %v2789_v31 }
 0x397   : > { %v2091_v48 = vsub.f32 1.5, %v2090_v61 }
 0x398   : > { %v2655_v8 = vadd.f32 1e-05, %v2623_v55  ;;  %v2791_v11 = vsub.f32 1.5, %v2790_v22  ;;  %v2285_v22 = vld [vmem:[%s7464_s17 + $0xd0] sm:$0xff] }
 0x399   : > { %v6555_v50 = vpop.eup %4764  ;;  %v2092_v56 = vmul.f32 %v4761_v43, %v2091_v48 }
 0x39a   : > { %4766 = vrsqrt.f32 %v2655_v8  ;;  %v2098_v21 = vmul.f32 %v6555_v50, %v1831_v40  ;;  %v2792_v13 = vmul.f32 %v4763_v63, %v2791_v11  ;;  %vm2104_vm0 = vweird.f32 %v6555_v50 }
 0x39b   : > { %v2096_v35 = vsel %vm2095_vm15, %v4761_v43, %v2092_v56  ;;  %vm6579_vm6 = vmor %vm2103_vm5, %vm2104_vm0  ;;  %vm2783_vm7 = vweird.f32 %v2655_v8 }
 0x39c   : > { %v2099_v6 = vmul.f32 %v6555_v50, %v2098_v21  ;;  %v2796_v62 = vsel %vm2795_vm2, %v4763_v63, %v2792_v13  ;;  %v2182_v54 = vmul.f32 %v2096_v35, %v6116_v49 }
 0x39d   : > { %v2378_v17 = vpop.xlane.xlu0 %2377  ;;  %v3008_v42 = vmul.f32 %v2796_v62, %v6131_v7 }
 0x39e   : > { %v1760_v18 = vpop.xlane.xlu2 %1759  ;;  %v2438_v59 = vmul.f32 %v2378_v17, %v5388_v23  ;;  %v2100_v39 = vmul.f32 0.5, %v2099_v6  ;;  %v2217_v55 = vmul.f32 %v6169_v57, %v2182_v54 }
 0x39f   : > { %v1800_v10 = vmul.f32 %v1760_v18, %v5388_v23  ;;  %v3043_v17 = vmul.f32 %v6157_v58, %v3008_v42 }
 0x3a0   : > { %v4767_v52 = vpop.eup %4766  ;;  %v6562_v15 = vsub.f32 %v6213_v30, %v2438_v59  ;;  %v2101_v44 = vsub.f32 1.5, %v2100_v39  ;;  %v2252_v59 = vadd.f32 %v6193_v32, %v2217_v55 }
 0x3a1   : > { %v2778_v12 = vmul.f32 %v4767_v52, %v2655_v8  ;;  %v6564_v36 = vadd.f32 1e-05, %v1800_v10  ;;  %vm2784_vm1 = vweird.f32 %v4767_v52  ;;  %v2284_v10 = vld [vmem:[%s7464_s17 + $0xc8] sm:$0xff] }
 0x3a2   : > { %v2502_v16 = vmul.f32 %v6562_v15, %v6562_v15  ;;  %v2102_v43 = vmul.f32 %v6555_v50, %v2101_v44  ;;  %vm2785_vm8 = vmor %vm2783_vm7, %vm2784_vm1 }
 0x3a3   : > { %v2779_v38 = vmul.f32 %v4767_v52, %v2778_v12  ;;  %4768 = vrsqrt.f32 %v6564_v36  ;;  %vm2113_vm10 = vweird.f32 %v6564_v36 }
 0x3a4   : > { %v2568_v2 = vsel %vm1477_vm3, %v2502_v16, 0.0  ;;  %v2106_v40 = vsel %vm6579_vm6, %v6555_v50, %v2102_v43 }
 0x3a5   : > { %v2780_v30 = vmul.f32 0.5, %v2779_v38  ;;  %2569 = vadd.xlane.f32.xlu1 %v2568_v2  ;;  %v2558_v46 = vpop.xlane.xlu1 %2557  ;;  %v6607_v2 = vadd.f32 %v2284_v10, %v2252_v59 }
 0x3a6   : > { %v2381_v41 = vpop.xlane.xlu2 %2380  ;;  %v2626_v63 = vmul.f32 %v2558_v46, %v5388_v23 }
 0x3a7   : > { %v2781_v31 = vsub.f32 1.5, %v2780_v30  ;;  %v2439_v61 = vmul.f32 %v2381_v41, %v5388_v23  ;;  %v2400_v42 = vsel %vm1477_vm3, %v6607_v2, 0.0 }
 0x3a8   : > { %v2658_v11 = vadd.f32 1e-05, %v2626_v63 }
 0x3a9   : > { %v6577_v49 = vpop.eup %4768  ;;  %v2782_v48 = vmul.f32 %v4767_v52, %v2781_v31  ;;  %v6584_v7 = vsub.f32 %v6271_v53, %v2439_v61 }
 0x3aa   : > { %v2108_v21 = vmul.f32 %v6577_v49, %v6564_v36  ;;  %4770 = vrsqrt.f32 %v2658_v11  ;;  %vm2114_vm9 = vweird.f32 %v6577_v49  ;;  %vm2813_vm13 = vweird.f32 %v2658_v11 }
 0x3ab   : > { %v2786_v56 = vsel %vm2785_vm8, %v4767_v52, %v2782_v48  ;;  %v2503_v6 = vmul.f32 %v6584_v7, %v6584_v7  ;;  %v2183_v52 = vmul.f32 %v2106_v40, %v6166_v45  ;;  %vm6624_vm11 = vmor %vm2113_vm10, %vm2114_vm9 }
 0x3ac   : > { %v3007_v8 = vmul.f32 %v2786_v56, %v6199_v14  ;;  %v2109_v53 = vmul.f32 %v6577_v49, %v2108_v21  ;;  %v3078_v14 = vadd.f32 %v6186_v28, %v3043_v17 }
 0x3ad   : > { %v2555_v18 = vpop.xlane.xlu0 %2554  ;;  %v2571_v50 = vsel %vm1477_vm3, %v2503_v6, 0.0  ;;  %v2218_v45 = vmul.f32 %v6169_v57, %v2183_v52 }
 0x3ae   : > { %v2625_v39 = vmul.f32 %v2555_v18, %v5388_v23  ;;  %v2110_v13 = vmul.f32 0.5, %v2109_v53  ;;  %2572 = vadd.xlane.f32.xlu1 %v2571_v50  ;;  %v3042_v35 = vmul.f32 %v6157_v58, %v3007_v8  ;;  %v1766_v12 = vpop.xlane.xlu2 %1765 }
 0x3af   : > { %v1802_v38 = vmul.f32 %v1766_v12, %v5388_v23  ;;  %v2253_v55 = vadd.f32 %v6193_v32, %v2218_v45 }
 0x3b0   : > { %v6602_v44 = vadd.f32 1e-05, %v2625_v39  ;;  %v2111_v16 = vsub.f32 1.5, %v2110_v13  ;;  %v3077_v62 = vadd.f32 %v6186_v28, %v3042_v35  ;;  %v4771_v54 = vpop.eup %4770 }
 0x3b1   : > { %v6611_v30 = vadd.f32 1e-05, %v1802_v38  ;;  %v2808_v43 = vmul.f32 %v4771_v54, %v2658_v11  ;;  %vm2814_vm12 = vweird.f32 %v4771_v54  ;;  %v6639_v59 = vadd.f32 %v2285_v22, %v2253_v55  ;;  %v6679_v55 = vld [vmem:[%s5116_s30] ss:$0 sm:$0xff] }
 0x3b2   : > { %4772 = vrsqrt.f32 %v6602_v44  ;;  %v3104_v58 = vpack.c.bf16 %v3078_v14, %v3077_v62  ;;  %v2112_v41 = vmul.f32 %v6577_v49, %v2111_v16  ;;  %vm6646_vm14 = vmor %vm2813_vm13, %vm2814_vm12  ;;  %vm2803_vm15 = vweird.f32 %v6602_v44 }
 0x3b3   : > { %4774 = vrsqrt.f32 %v6611_v30  ;;  %v2809_v61 = vmul.f32 %v4771_v54, %v2808_v43  ;;  %v2403_v62 = vsel %vm1477_vm3, %v6639_v59, 0.0  ;;  %vm2133_vm7 = vweird.f32 %v6611_v30 }
 0x3b4   : > { %4519 = vmatmul.msk.bf16.gmra.mxu1 %vm1477_vm3, %v3104_v58  ;;  %v2116_v8 = vsel %vm6624_vm11, %v6577_v49, %v2112_v41 }
 0x3b5   : > { %v1763_v28 = vpop.xlane.xlu1 %1762  ;;  %v2384_v31 = vpop.xlane.xlu0 %2383  ;;  %v2810_v21 = vmul.f32 0.5, %v2809_v61  ;;  %v2184_v49 = vmul.f32 %v2116_v8, %v6229_v24 }
 0x3b6   : > { %v1801_v46 = vmul.f32 %v1763_v28, %v5388_v23  ;;  %v2440_v63 = vmul.f32 %v2384_v31, %v5388_v23  ;;  %2401 = vadd.xlane.f32.xlu1 %v2400_v42  ;;  %v2387_v6 = vpop.xlane.xlu2 %2386 }
 0x3b7   : > { %v2441_v53 = vmul.f32 %v2387_v6, %v5388_v23  ;;  %v2811_v18 = vsub.f32 1.5, %v2810_v21  ;;  %v2219_v28 = vmul.f32 %v6169_v57, %v2184_v49 }
 0x3b8   : > { %v4773_v48 = vpop.eup %4772  ;;  %v6628_v56 = vadd.f32 1e-05, %v1801_v46  ;;  %v6631_v17 = vsub.f32 %v6332_v3, %v2440_v63  ;;  %v6673_v46 = vpop.f32.mrf.mxu1 }
 0x3b9   : > { %v2798_v36 = vmul.f32 %v4773_v48, %v6602_v44  ;;  %v6641_v50 = vpop.eup %4774  ;;  %v2812_v10 = vmul.f32 %v4771_v54, %v2811_v18  ;;  %v6653_v12 = vsub.f32 %v6390_v4, %v2441_v53  ;;  %vm2804_vm4 = vweird.f32 %v4773_v48  ;;  %v2286_v18 = vld [vmem:[%s7464_s17 + $0xd8] sm:$0xff] }
 0x3ba   : > { %4776 = vrsqrt.f32 %v6628_v56  ;;  %v2504_v3 = vmul.f32 %v6631_v17, %v6631_v17  ;;  %v2128_v13 = vmul.f32 %v6641_v50, %v6611_v30  ;;  %vm2805_vm2 = vmor %vm2803_vm15, %vm2804_vm4  ;;  %vm2123_vm1 = vweird.f32 %v6628_v56 }
 0x3bb   : > { %v2799_v39 = vmul.f32 %v4773_v48, %v2798_v36  ;;  %v2816_v11 = vsel %vm6646_vm14, %v4771_v54, %v2812_v10  ;;  %v2505_v44 = vmul.f32 %v6653_v12, %v6653_v12  ;;  %v2254_v36 = vadd.f32 %v6193_v32, %v2219_v28  ;;  %v6692_v10 = vld [vmem:[%s7468_s6] ss:$0 sm:$0xff] }
 0x3bc   : > { %v2574_v16 = vsel %vm1477_vm3, %v2504_v3, 0.0  ;;  %v3010_v43 = vmul.f32 %v2816_v11, %v6277_v60  ;;  %v2129_v42 = vmul.f32 %v6641_v50, %v2128_v13  ;;  %vm2134_vm6 = vweird.f32 %v6641_v50 }
 0x3bd   : > { %v2800_v35 = vmul.f32 0.5, %v2799_v39  ;;  %v2564_v14 = vpop.xlane.xlu1 %2563  ;;  %v2561_v38 = vpop.xlane.xlu0 %2560  ;;  %2575 = vadd.xlane.f32.xlu2 %v2574_v16  ;;  %v2577_v6 = vsel %vm1477_vm3, %v2505_v44, 0.0  ;;  %v6697_v16 = vadd.f32 %v2286_v18, %v2254_v36  ;;  %vm6727_vm10 = vmor %vm2133_vm7, %vm2134_vm6 }
 0x3be   : > { %v2628_v24 = vmul.f32 %v2564_v14, %v5388_v23  ;;  %v2627_v45 = vmul.f32 %v2561_v38, %v5388_v23  ;;  %2404 = vadd.xlane.f32.xlu1 %v2403_v62  ;;  %v3045_v22 = vmul.f32 %v6679_v55, %v3010_v43  ;;  %v2130_v40 = vmul.f32 0.5, %v2129_v42 }
 0x3bf   : > { %v2801_v58 = vsub.f32 1.5, %v2800_v35 }
 0x3c0   : > { %v4777_v4 = vpop.eup %4776  ;;  %v6664_v41 = vadd.f32 1e-05, %v2628_v24  ;;  %v6666_v54 = vadd.f32 1e-05, %v2627_v45  ;;  %v3080_v32 = vadd.f32 %v6692_v10, %v3045_v22  ;;  %v2131_v13 = vsub.f32 1.5, %v2130_v40  ;;  %v6702_v62 = vpop.f32.mrf.mxu1 }
 0x3c1   : > { %v2802_v31 = vmul.f32 %v4773_v48, %v2801_v58  ;;  %v2118_v61 = vmul.f32 %v4777_v4, %v6628_v56  ;;  %vm2124_vm0 = vweird.f32 %v4777_v4 }
 0x3c2   : > { %4778 = vrsqrt.f32 %v6664_v41  ;;  %vm2125_vm5 = vmor %vm2123_vm1, %vm2124_vm0  ;;  %v2132_v28 = vmul.f32 %v6641_v50, %v2131_v13  ;;  %vm2833_vm11 = vweird.f32 %v6664_v41  ;;  %vm2823_vm13 = vweird.f32 %v6666_v54 }
 0x3c3   : > { %v2806_v60 = vsel %vm2805_vm2, %v4773_v48, %v2802_v31  ;;  %v2119_v63 = vmul.f32 %v4777_v4, %v2118_v61  ;;  %4780 = vrsqrt.f32 %v6666_v54 }
 0x3c4   : > { %v3009_v57 = vmul.f32 %v2806_v60, %v6322_v37  ;;  %v2136_v30 = vsel %vm6727_vm10, %v6641_v50, %v2132_v28 }
 0x3c5   : > { %v2120_v21 = vmul.f32 0.5, %v2119_v63  ;;  %v2390_v8 = vpop.xlane.xlu0 %2389  ;;  %2578 = vadd.xlane.f32.xlu2 %v2577_v6 }
 0x3c6   : > { %v2442_v48 = vmul.f32 %v2390_v8, %v5388_v23  ;;  %v3044_v53 = vmul.f32 %v6679_v55, %v3009_v57  ;;  %v6721_v8 = vld [vmem:[%s5111_s24] ss:$0 sm:$0xff] }
 0x3c7   : > { %v2121_v39 = vsub.f32 1.5, %v2120_v21 }
 0x3c8   : > { %v4779_v37 = vpop.eup %4778  ;;  %v6689_v3 = vsub.f32 %v6463_v51, %v2442_v48  ;;  %v3079_v49 = vadd.f32 %v6692_v10, %v3044_v53  ;;  %v2287_v48 = vld [vmem:[%s7464_s17 + $0xe0] sm:$0xff] }
 0x3c9   : > { %v4781_v52 = vpop.eup %4780  ;;  %v2122_v35 = vmul.f32 %v4777_v4, %v2121_v39  ;;  %v2828_v14 = vmul.f32 %v4779_v37, %v6664_v41  ;;  %vm2834_vm8 = vweird.f32 %v4779_v37 }
 0x3ca   : > { %v2818_v38 = vmul.f32 %v4781_v52, %v6666_v54  ;;  %v3105_v56 = vpack.c.bf16 %v3080_v32, %v3079_v49  ;;  %v2506_v51 = vmul.f32 %v6689_v3, %v6689_v3  ;;  %vm2824_vm9 = vweird.f32 %v4781_v52  ;;  %vm2835_vm12 = vmor %vm2833_vm11, %vm2834_vm8 }
 0x3cb   : > { %v2126_v11 = vsel %vm2125_vm5, %v4777_v4, %v2122_v35  ;;  %v2829_v24 = vmul.f32 %v4779_v37, %v2828_v14  ;;  %v2406_v4 = vsel %vm1477_vm3, %v6697_v16, 0.0  ;;  %vm2825_vm14 = vmor %vm2823_vm13, %vm2824_vm9  ;;  %v2186_v54 = vmul.f32 %v2136_v30, %v6346_v27 }
 0x3cc   : > { %v2819_v45 = vmul.f32 %v4781_v52, %v2818_v38  ;;  %4520 = vmatmul.msk.bf16.gmra.mxu1 %vm1477_vm3, %v3105_v56  ;;  %v2580_v58 = vsel %vm1477_vm3, %v2506_v51, 0.0  ;;  %v2185_v43 = vmul.f32 %v2126_v11, %v6377_v26  ;;  %v6714_v26 = vld [vmem:[%s7463_s19] ss:$0 sm:$0xff]  ;;  %v6749_v51 = vpop.f32.mrf.mxu1 }
 0x3cd   : > { %v2830_v42 = vmul.f32 0.5, %v2829_v24  ;;  %v1769_v31 = vpop.xlane.xlu1 %1768  ;;  %v1772_v61 = vpop.xlane.xlu2 %1771  ;;  %2581 = vadd.xlane.f32.xlu0 %v2580_v58  ;;  %2407 = vadd.xlane.f32.xlu2 %v2406_v4  ;;  %v2221_v58 = vmul.f32 %v6714_v26, %v2186_v54 }
 0x3ce   : > { %v2820_v44 = vmul.f32 0.5, %v2819_v45  ;;  %v1803_v60 = vmul.f32 %v1769_v31, %v5388_v23  ;;  %v1804_v63 = vmul.f32 %v1772_v61, %v5388_v23  ;;  %v2220_v57 = vmul.f32 %v6714_v26, %v2185_v43 }
 0x3cf   : > { %v2831_v22 = vsub.f32 1.5, %v2830_v42 }
 0x3d0   : > { %v2821_v40 = vsub.f32 1.5, %v2820_v44  ;;  %v1835_v21 = vadd.f32 1e-05, %v1803_v60  ;;  %v6718_v6 = vadd.f32 1e-05, %v1804_v63  ;;  %v2255_v36 = vadd.f32 %v6721_v8, %v2220_v57 }
 0x3d1   : > { %v2832_v18 = vmul.f32 %v4779_v37, %v2831_v22  ;;  %v2256_v60 = vadd.f32 %v6721_v8, %v2221_v58  ;;  %v2288_v22 = vld [vmem:[%s7464_s17 + $0xe8] sm:$0xff] }
 0x3d2   : > { %v2822_v39 = vmul.f32 %v4781_v52, %v2821_v40  ;;  %4782 = vrsqrt.f32 %v1835_v21  ;;  %v6738_v32 = vadd.f32 %v2287_v48, %v2255_v36  ;;  %vm2143_vm2 = vweird.f32 %v1835_v21 }
 0x3d3   : > { %v2836_v49 = vsel %vm2835_vm12, %v4779_v37, %v2832_v18  ;;  %4784 = vrsqrt.f32 %v6718_v6  ;;  %v6771_v30 = vadd.f32 %v2288_v22, %v2256_v60  ;;  %vm2153_vm1 = vweird.f32 %v6718_v6 }
 0x3d4   : > { %v3012_v13 = vmul.f32 %v2836_v49, %v6416_v25  ;;  %v2826_v35 = vsel %vm2825_vm14, %v4781_v52, %v2822_v39  ;;  %v2409_v50 = vsel %vm1477_vm3, %v6738_v32, 0.0  ;;  %v6769_v53 = vpop.f32.mrf.mxu1 }
 0x3d5   : > { %v3011_v41 = vmul.f32 %v2826_v35, %v6396_v29  ;;  %v2393_v14 = vpop.xlane.xlu2 %2392  ;;  %v6744_v38 = vpop.xlane.xlu0 %2566  ;;  %2410 = vadd.xlane.f32.xlu2 %v2409_v50 }
 0x3d6   : > { %v2443_v37 = vmul.f32 %v2393_v14, %v5388_v23  ;;  %v3047_v56 = vmul.f32 %v6679_v55, %v3012_v13 }
 0x3d7   : > { %v3046_v25 = vmul.f32 %v6679_v55, %v3011_v41 }
 0x3d8   : > { %v4783_v52 = vpop.eup %4782  ;;  %v6753_v29 = vsub.f32 %v6517_v0, %v2443_v37  ;;  %v3082_v11 = vadd.f32 %v6692_v10, %v3047_v56  ;;  %v2289_v37 = vld [vmem:[%s7464_s17 + $0xf0] sm:$0xff] }
 0x3d9   : > { %v4785_v24 = vpop.eup %4784  ;;  %v2138_v45 = vmul.f32 %v4783_v52, %v1835_v21  ;;  %v3081_v27 = vadd.f32 %v6692_v10, %v3046_v25  ;;  %vm2144_vm15 = vweird.f32 %v4783_v52  ;;  %v2412_v21 = vsel %vm1477_vm3, %v6771_v30, 0.0 }
 0x3da   : > { %v2148_v43 = vmul.f32 %v4785_v24, %v6718_v6  ;;  %v2507_v31 = vmul.f32 %v6753_v29, %v6753_v29  ;;  %vm2154_vm4 = vweird.f32 %v4785_v24  ;;  %vm2145_vm0 = vmor %vm2143_vm2, %vm2144_vm15 }
 0x3db   : > { %v2139_v28 = vmul.f32 %v4783_v52, %v2138_v45  ;;  %v3106_v42 = vpack.c.bf16 %v3082_v11, %v3081_v27  ;;  %vm2155_vm5 = vmor %vm2153_vm1, %vm2154_vm4 }
 0x3dc   : > { %v2149_v61 = vmul.f32 %v4785_v24, %v2148_v43  ;;  %v2583_v0 = vsel %vm1477_vm3, %v2507_v31, 0.0 }
 0x3dd   : > { %v2140_v4 = vmul.f32 0.5, %v2139_v28  ;;  %4521 = vmatmul.msk.bf16.gmra.mxu1 %vm1477_vm3, %v3106_v42  ;;  %v2396_v44 = vpop.xlane.xlu0 %2395  ;;  %2584 = vadd.xlane.f32.xlu0 %v2583_v0  ;;  %v2629_v42 = vmul.f32 %v6744_v38, %v5388_v23 }
 0x3de   : > { %v2150_v63 = vmul.f32 0.5, %v2149_v61  ;;  %v2444_v57 = vmul.f32 %v2396_v44, %v5388_v23 }
 0x3df   : > { %v2141_v40 = vsub.f32 1.5, %v2140_v4  ;;  %v2661_v61 = vadd.f32 1e-05, %v2629_v42 }
 0x3e0   : > { %v2151_v36 = vsub.f32 1.5, %v2150_v63  ;;  %v6767_v48 = vsub.f32 %v6537_v33, %v2444_v57 }
 0x3e1   : > { %v2142_v18 = vmul.f32 %v4783_v52, %v2141_v40  ;;  %4786 = vrsqrt.f32 %v2661_v61  ;;  %vm2843_vm7 = vweird.f32 %v2661_v61 }
 0x3e2   : > { %v2152_v39 = vmul.f32 %v4785_v24, %v2151_v36  ;;  %v2508_v49 = vmul.f32 %v6767_v48, %v6767_v48 }
 0x3e3   : > { %v2146_v13 = vsel %vm2145_vm0, %v4783_v52, %v2142_v18 }
 0x3e4   : > { %v2156_v35 = vsel %vm2155_vm5, %v4785_v24, %v2152_v39  ;;  %v2586_v33 = vsel %vm1477_vm3, %v2508_v49, 0.0  ;;  %v2187_v41 = vmul.f32 %v2146_v13, %v6493_v47  ;;  %v6793_v24 = vpop.f32.mrf.mxu1 }
 0x3e5   : > { %2587 = vadd.xlane.f32.xlu1 %v2586_v33  ;;  %v2399_v14 = vpop.xlane.xlu0 %2398  ;;  %v2188_v50 = vmul.f32 %v2156_v35, %v6489_v9  ;;  %2413 = vadd.xlane.f32.xlu0 %v2412_v21 }
 0x3e6   : > { %v2445_v6 = vmul.f32 %v2399_v14, %v5388_v23  ;;  %v2222_v54 = vmul.f32 %v6714_v26, %v2187_v41 }
 0x3e7   : > { %v2223_v47 = vmul.f32 %v6714_v26, %v2188_v50  ;;  %v4787_v4 = vpop.eup %4786 }
 0x3e8   : > { %v6785_v56 = vsub.f32 %v6547_v5, %v2445_v6  ;;  %v2257_v25 = vadd.f32 %v6721_v8, %v2222_v54  ;;  %v2290_v5 = vld [vmem:[%s7464_s17 + $0xf8] sm:$0xff]  ;;  %v2838_v0 = vmul.f32 %v4787_v4, %v2661_v61  ;;  %vm2844_vm6 = vweird.f32 %v4787_v4 }
 0x3e9   : > { %v2258_v27 = vadd.f32 %v6721_v8, %v2223_v47  ;;  %vm2845_vm8 = vmor %vm2843_vm7, %vm2844_vm6 }
 0x3ea   : > { %v6789_v52 = vadd.f32 %v2289_v37, %v2257_v25  ;;  %v2509_v11 = vmul.f32 %v6785_v56, %v6785_v56  ;;  %v2839_v44 = vmul.f32 %v4787_v4, %v2838_v0 }
 0x3eb   : > { %v6800_v58 = vadd.f32 %v2290_v5, %v2258_v27 }
 0x3ec   : > { %v2415_v9 = vsel %vm1477_vm3, %v6789_v52, 0.0  ;;  %v2589_v45 = vsel %vm1477_vm3, %v2509_v11, 0.0  ;;  %v6804_v43 = vpop.f32.mrf.mxu1  ;;  %v2840_v40 = vmul.f32 0.5, %v2839_v44 }
 0x3ed   : > { %2590 = vadd.xlane.f32.xlu1 %v2589_v45  ;;  %2416 = vadd.xlane.f32.xlu0 %v2415_v9  ;;  %v2418_v26 = vsel %vm1477_vm3, %v6800_v58, 0.0 }
 0x3ee   : > { %v2841_v36 = vsub.f32 1.5, %v2840_v40 }
 0x3f0   : > { %v2842_v49 = vmul.f32 %v4787_v4, %v2841_v36 }
 0x3f2   : > { %v2846_v21 = vsel %vm2845_vm8, %v4787_v4, %v2842_v49 }
 0x3f3   : > { %v3013_v37 = vmul.f32 %v2846_v21, %v6520_v34 }
 0x3f4   : > { %v6806_v28 = vpop.f32.mrf.mxu1 }
 0x3f5   : > { %2419 = vadd.xlane.f32.xlu1 %v2418_v26  ;;  %v3048_v42 = vmul.f32 %v6679_v55, %v3013_v37 }
 0x3fc   : > { %v6810_v31 = vpop.f32.mrf.mxu1 }
 0x404   : > { %v6812_v8 = vpop.f32.mrf.mxu1 }
 0x40c   : > { %v6815_v57 = vpop.f32.mrf.mxu1 }
 0x414   : > { %v6818_v13 = vpop.f32.mrf.mxu1 }
 0x418   : > { %v2570_v60 = vpop.xlane.xlu1 %2569 }
 0x419   : > { %v2630_v63 = vmul.f32 %v2570_v60, %v5388_v23 }
 0x41b   : > { %v2662_v22 = vadd.f32 1e-05, %v2630_v63 }
 0x41c   : > { %v6825_v45 = vpop.f32.mrf.mxu1 }
 0x41d   : > { %4788 = vrsqrt.f32 %v2662_v22  ;;  %vm2853_vm10 = vweird.f32 %v2662_v22 }
 0x421   : > { %v2573_v18 = vpop.xlane.xlu1 %2572 }
 0x422   : > { %v2631_v38 = vmul.f32 %v2573_v18, %v5388_v23 }
 0x423   : > { %v4789_v39 = vpop.eup %4788 }
 0x424   : > { %v2848_v35 = vmul.f32 %v4789_v39, %v2662_v22  ;;  %v2663_v33 = vadd.f32 1e-05, %v2631_v38  ;;  %vm2854_vm9 = vweird.f32 %v4789_v39  ;;  %v3083_v22 = vadd.f32 %v6692_v10, %v3048_v42 }
 0x425   : > { %vm2855_vm11 = vmor %vm2853_vm10, %vm2854_vm9  ;;  %vm3287_vm9 = vcmask 60416  }
 0x426   : > { %v2849_v41 = vmul.f32 %v4789_v39, %v2848_v35  ;;  %4790 = vrsqrt.f32 %v2663_v33  ;;  %vm2863_vm13 = vweird.f32 %v2663_v33 }
 0x428   : > { %v2850_v14 = vmul.f32 0.5, %v2849_v41 }
 0x429   : > { %v2402_v50 = vpop.xlane.xlu1 %2401 }
 0x42a   : > { %v2851_v6 = vsub.f32 1.5, %v2850_v14  ;;  %v2446_v54 = vmul.f32 %v2402_v50, %v5388_v23 }
 0x42c   : > { %v4791_v25 = vpop.eup %4790  ;;  %v2852_v47 = vmul.f32 %v4789_v39, %v2851_v6  ;;  %v6823_v11 = vsub.f32 %v6607_v2, %v2446_v54 }
 0x42d   : > { %v2858_v9 = vmul.f32 %v4791_v25, %v2663_v33  ;;  %vm2864_vm12 = vweird.f32 %v4791_v25 }
 0x42e   : > { %v2856_v27 = vsel %vm2855_vm11, %v4789_v39, %v2852_v47  ;;  %v2510_v5 = vmul.f32 %v6823_v11, %v6823_v11  ;;  %vm2865_vm14 = vmor %vm2863_vm13, %vm2864_vm12  ;;  %vm3327_vm11 = vcmask 64512  }
 0x42f   : > { %v3014_v26 = vmul.f32 %v2856_v27, %v6562_v15  ;;  %v2859_v61 = vmul.f32 %v4791_v25, %v2858_v9 }
 0x430   : > { %v2592_v34 = vsel %vm1477_vm3, %v2510_v5, 0.0  ;;  %v2576_v4 = vpop.xlane.xlu2 %2575 }
 0x431   : > { %v2405_v0 = vpop.xlane.xlu1 %2404  ;;  %2593 = vadd.xlane.f32.xlu2 %v2592_v34  ;;  %v2632_v2 = vmul.f32 %v2576_v4, %v5388_v23  ;;  %v3049_v44 = vmul.f32 %v6679_v55, %v3014_v26  ;;  %v2860_v15 = vmul.f32 0.5, %v2859_v61  ;;  %v6840_v38 = vpop.f32.mrf.mxu1 }
 0x432   : > { %v2447_v60 = vmul.f32 %v2405_v0, %v5388_v23 }
 0x433   : > { %v2664_v63 = vadd.f32 1e-05, %v2632_v2  ;;  %v3084_v40 = vadd.f32 %v6692_v10, %v3049_v44  ;;  %v2861_v49 = vsub.f32 1.5, %v2860_v15 }
 0x434   : > { %v6838_v36 = vsub.f32 %v6639_v59, %v2447_v60 }
 0x435   : > { %4792 = vrsqrt.f32 %v2664_v63  ;;  %v3107_v18 = vpack.c.bf16 %v3084_v40, %v3083_v22  ;;  %v2862_v59 = vmul.f32 %v4791_v25, %v2861_v49  ;;  %vm2873_vm4 = vweird.f32 %v2664_v63 }
 0x436   : > { %v2511_v39 = vmul.f32 %v6838_v36, %v6838_v36 }
 0x437   : > { %4522 = vmatmul.msk.bf16.gmra.mxu1 %vm1477_vm3, %v3107_v18  ;;  %v2866_v47 = vsel %vm2865_vm14, %v4791_v25, %v2862_v59 }
 0x438   : > { %v2595_v35 = vsel %vm1477_vm3, %v2511_v39, 0.0  ;;  %v2579_v41 = vpop.xlane.xlu2 %2578  ;;  %v3015_v0 = vmul.f32 %v2866_v47, %v6584_v7 }
 0x439   : > { %2596 = vadd.xlane.f32.xlu2 %v2595_v35  ;;  %v2633_v21 = vmul.f32 %v2579_v41, %v5388_v23  ;;  %v6847_v27 = vpop.f32.mrf.mxu1 }
 0x43a   : > { %v3050_v18 = vmul.f32 %v6679_v55, %v3015_v0 }
 0x43b   : > { %v4793_v14 = vpop.eup %4792  ;;  %v2665_v50 = vadd.f32 1e-05, %v2633_v21 }
 0x43c   : > { %v2868_v6 = vmul.f32 %v4793_v14, %v2664_v63  ;;  %vm2874_vm15 = vweird.f32 %v4793_v14 }
 0x43d   : > { %4794 = vrsqrt.f32 %v2665_v50  ;;  %vm2875_vm2 = vmor %vm2873_vm4, %vm2874_vm15  ;;  %vm2883_vm1 = vweird.f32 %v2665_v50 }
 0x43e   : > { %v2869_v54 = vmul.f32 %v4793_v14, %v2868_v6 }
 0x440   : > { %v2582_v37 = vpop.xlane.xlu0 %2581  ;;  %v2870_v9 = vmul.f32 0.5, %v2869_v54  ;;  %v2408_v5 = vpop.xlane.xlu2 %2407 }
 0x441   : > { %v2634_v26 = vmul.f32 %v2582_v37, %v5388_v23  ;;  %v2448_v42 = vmul.f32 %v2408_v5, %v5388_v23 }
 0x442   : > { %v2871_v61 = vsub.f32 1.5, %v2870_v9 }
 0x443   : > { %v2666_v34 = vadd.f32 1e-05, %v2634_v26  ;;  %v4795_v4 = vpop.eup %4794  ;;  %v6853_v33 = vsub.f32 %v6697_v16, %v2448_v42 }
 0x444   : > { %v2872_v2 = vmul.f32 %v4793_v14, %v2871_v61  ;;  %v2878_v25 = vmul.f32 %v4795_v4, %v2665_v50  ;;  %vm2884_vm0 = vweird.f32 %v4795_v4 }
 0x445   : > { %4796 = vrsqrt.f32 %v2666_v34  ;;  %v2512_v44 = vmul.f32 %v6853_v33, %v6853_v33  ;;  %vm2885_vm5 = vmor %vm2883_vm1, %vm2884_vm0  ;;  %vm2893_vm7 = vweird.f32 %v2666_v34 }
 0x446   : > { %v2876_v60 = vsel %vm2875_vm2, %v4793_v14, %v2872_v2  ;;  %v2879_v22 = vmul.f32 %v4795_v4, %v2878_v25 }
 0x447   : > { %v3016_v40 = vmul.f32 %v2876_v60, %v6631_v17  ;;  %v2598_v15 = vsel %vm1477_vm3, %v2512_v44, 0.0  ;;  %v3085_v17 = vadd.f32 %v6692_v10, %v3050_v18 }
 0x448   : > { %v2880_v7 = vmul.f32 0.5, %v2879_v22  ;;  %v2411_v39 = vpop.xlane.xlu2 %2410  ;;  %2599 = vadd.xlane.f32.xlu0 %v2598_v15 }
 0x449   : > { %v6860_v16 = vpop.f32.mrf.mxu1  ;;  %v2449_v63 = vmul.f32 %v2411_v39, %v5388_v23  ;;  %v3051_v49 = vmul.f32 %v6679_v55, %v3016_v40  ;;  %v5044_v40 = vmov 0  }
 0x44a   : > { %v2881_v41 = vsub.f32 1.5, %v2880_v7  ;;  %4675 = vset.pattern.permute.xlu0 %v5044_v40  ;;  %4676 = vset.pattern.permute.xlu1 %v5044_v40 }
 0x44b   : > { %v4797_v35 = vpop.eup %4796  ;;  %v6865_v14 = vsub.f32 %v6738_v32, %v2449_v63  ;;  %v3086_v59 = vadd.f32 %v6692_v10, %v3051_v49 }
 0x44c   : > { %v2888_v21 = vmul.f32 %v4797_v35, %v2666_v34  ;;  %v2882_v6 = vmul.f32 %v4795_v4, %v2881_v41  ;;  %vm2894_vm6 = vweird.f32 %v4797_v35 }
 0x44d   : > { %v3108_v37 = vpack.c.bf16 %v3086_v59, %v3085_v17  ;;  %v2513_v47 = vmul.f32 %v6865_v14, %v6865_v14  ;;  %vm2895_vm8 = vmor %vm2893_vm7, %vm2894_vm6 }
 0x44e   : > { %v2889_v54 = vmul.f32 %v4797_v35, %v2888_v21  ;;  %v2886_v32 = vsel %vm2885_vm5, %v4795_v4, %v2882_v6 }
 0x44f   : > { %4523 = vmatmul.msk.bf16.gmra.mxu1 %vm1477_vm3, %v3108_v37  ;;  %v2601_v5 = vsel %vm1477_vm3, %v2513_v47, 0.0  ;;  %v3017_v2 = vmul.f32 %v2886_v32, %v6653_v12 }
 0x450   : > { %v2890_v9 = vmul.f32 0.5, %v2889_v54  ;;  %2602 = vadd.xlane.f32.xlu1 %v2601_v5  ;;  %v2585_v26 = vpop.xlane.xlu0 %2584 }
 0x451   : > { %v3220_v42 = vpop.f32.mrf.mxu1  ;;  %v2635_v0 = vmul.f32 %v2585_v26, %v5388_v23  ;;  %v3052_v4 = vmul.f32 %v6679_v55, %v3017_v2 }
 0x452   : > { %v2891_v61 = vsub.f32 1.5, %v2890_v9 }
 0x453   : > { %v2667_v44 = vadd.f32 1e-05, %v2635_v0 }
 0x454   : > { %v2892_v25 = vmul.f32 %v4797_v35, %v2891_v61  ;;  %v6895_v61 = vld [vmem:[%s5176_s27] sm:$0xf] }
 0x455   : > { %4798 = vrsqrt.f32 %v2667_v44  ;;  %vm2903_vm12 = vweird.f32 %v2667_v44 }
 0x456   : > { %v2896_v50 = vsel %vm2895_vm8, %v4797_v35, %v2892_v25  ;;  %v3087_v35 = vadd.f32 %v6692_v10, %v3052_v4 }
 0x457   : > { %v3018_v60 = vmul.f32 %v2896_v50, %v6689_v3 }
 0x458   : > { %v2588_v22 = vpop.xlane.xlu1 %2587  ;;  %v2414_v18 = vpop.xlane.xlu0 %2413 }
 0x459   : > { %v2636_v15 = vmul.f32 %v2588_v22, %v5388_v23  ;;  %v3053_v7 = vmul.f32 %v6679_v55, %v3018_v60  ;;  %v2450_v12 = vmul.f32 %v2414_v18, %v5388_v23  ;;  %v3288_v22 = vsel %vm3287_vm9, %v6895_v61, 0.0 }
 0x45a   : > { %v3223_v34 = vpop.f32.mrf.mxu1 }
 0x45b   : > { %v2668_v39 = vadd.f32 1e-05, %v2636_v15  ;;  %v3088_v63 = vadd.f32 %v6692_v10, %v3053_v7  ;;  %v4799_v49 = vpop.eup %4798  ;;  %v6882_v3 = vsub.f32 %v6771_v30, %v2450_v12  ;;  %v6911_v7 = vpack.c.bf16 %v3220_v42, %v6860_v16 }
 0x45c   : > { %v2898_v41 = vmul.f32 %v4799_v49, %v2667_v44  ;;  %vm2904_vm10 = vweird.f32 %v4799_v49 }
 0x45d   : > { %4800 = vrsqrt.f32 %v2668_v39  ;;  %v3109_v21 = vpack.c.bf16 %v3088_v63, %v3087_v35  ;;  %v2514_v17 = vmul.f32 %v6882_v3, %v6882_v3  ;;  %vm2905_vm13 = vmor %vm2903_vm12, %vm2904_vm10  ;;  %vm2913_vm15 = vweird.f32 %v2668_v39 }
 0x45e   : > { %v2899_v59 = vmul.f32 %v4799_v49, %v2898_v41 }
 0x45f   : > { %4524 = vmatmul.msk.bf16.gmra.mxu1 %vm1477_vm3, %v3109_v21  ;;  %v2604_v54 = vsel %vm1477_vm3, %v2514_v17, 0.0 }
 0x460   : > { %v6888_v6 = vpop.xlane.xlu1 %2590  ;;  %v2900_v37 = vmul.f32 0.5, %v2899_v59  ;;  %2605 = vadd.xlane.f32.xlu2 %v2604_v54  ;;  %v2417_v30 = vpop.xlane.xlu0 %2416 }
 0x461   : > { %v2451_v47 = vmul.f32 %v2417_v30, %v5388_v23  ;;  %v987_v30 = vld [vmem:[%s5081_s25] sm:$0xff] }
 0x462   : > { %v3225_v9 = vpop.f32.mrf.mxu1  ;;  %v2901_v32 = vsub.f32 1.5, %v2900_v37 }
 0x463   : > { %v4801_v5 = vpop.eup %4800  ;;  %v6892_v26 = vpack.c.bf16 %v3225_v9, %v3223_v34  ;;  %v6898_v2 = vsub.f32 %v6789_v52, %v2451_v47 }
 0x464   : > { %v2908_v0 = vmul.f32 %v4801_v5, %v2668_v39  ;;  %v2902_v25 = vmul.f32 %v4799_v49, %v2901_v32  ;;  %vm2914_vm14 = vweird.f32 %v4801_v5  ;;  %v3273_v39 = vpack.c.bf16 %v6847_v27, %v6840_v38 }
 0x465   : > { %v6902_v50 = vsel %vm3327_vm11, %v6892_v26, 0  ;;  %v2515_v4 = vmul.f32 %v6898_v2, %v6898_v2  ;;  %vm2915_vm4 = vmor %vm2913_vm15, %vm2914_vm14  ;;  %v6947_v27 = vpack.c.bf16 %v6815_v57, %v6812_v8  ;;  %v2637_v8 = vmul.f32 %v6888_v6, %v5388_v23 }
 0x466   : > { %v2909_v60 = vmul.f32 %v4801_v5, %v2908_v0  ;;  %3908 = vmatpush.bf16.xpose.msra.mxu0 %v6902_v50  ;;  %v2906_v40 = vsel %vm2905_vm13, %v4799_v49, %v2902_v25  ;;  %v6920_v49 = vsel %vm3327_vm11, %v6911_v7, 0  ;;  %v6934_v54 = vsel %vm3327_vm11, %v3273_v39, 0 }
 0x467   : > { %v2607_v18 = vsel %vm1477_vm3, %v2515_v4, 0.0  ;;  %v3019_v34 = vmul.f32 %v2906_v40, %v6753_v29  ;;  %v6952_v47 = vsel %vm3327_vm11, %v6947_v27, 0  ;;  %v6969_v57 = vpack.c.bf16 %v6804_v43, %v6793_v24 }
 0x468   : > { %v2910_v52 = vmul.f32 0.5, %v2909_v60  ;;  %v2420_v15 = vpop.xlane.xlu1 %2419  ;;  %3289 = vadd.xlane.f32.xlu2 %v3288_v22  ;;  %2608 = vadd.xlane.f32.xlu0 %v2607_v18 }
 0x469   : > { %v2452_v44 = vmul.f32 %v2420_v15, %v5388_v23 }
 0x46a   : > { %v2911_v12 = vsub.f32 1.5, %v2910_v52 }
 0x46b   : > { %v6916_v63 = vsub.f32 %v6800_v58, %v2452_v44  ;;  %v3054_v58 = vmul.f32 %v6679_v55, %v3019_v34 }
 0x46c   : > { %v2912_v35 = vmul.f32 %v4801_v5, %v2911_v12 }
 0x46d   : > { %v2516_v16 = vmul.f32 %v6916_v63, %v6916_v63  ;;  %v3089_v17 = vadd.f32 %v6692_v10, %v3054_v58 }
 0x46e   : > { %v2916_v42 = vsel %vm2915_vm4, %v4801_v5, %v2912_v35  ;;  %3909 = vmatpush.bf16.xpose.msra.mxu0 %v6920_v49  ;;  %v2669_v5 = vadd.f32 1e-05, %v2637_v8 }
 0x46f   : > { %v3020_v41 = vmul.f32 %v2916_v42, %v6767_v48  ;;  %v2610_v29 = vsel %vm1477_vm3, %v2516_v16, 0.0  ;;  %v3272_v48 = vpack.c.bf16 %v6825_v45, %v6818_v13  ;;  %v988_v13 = vld [vmem:[%s5081_s25 + $0x8] sm:$0xff]  ;;  %v6958_v45 = vpack.c.bf16 %v6810_v31, %v6806_v28 }
 0x470   : > { %2611 = vadd.xlane.f32.xlu1 %v2610_v29  ;;  %v6974_v28 = vsel %vm3327_vm11, %v6969_v57, 0  ;;  %4802 = vrsqrt.f32 %v2669_v5  ;;  %v6979_v31 = vpack.c.bf16 %v6769_v53, %v6749_v51  ;;  %vm2923_vm0 = vweird.f32 %v2669_v5 }
 0x471   : > { %v3055_v21 = vmul.f32 %v6679_v55, %v3020_v41  ;;  %v6942_v38 = vsel %vm3327_vm11, %v3272_v48, 0  ;;  %v6962_v9 = vsel %vm3327_vm11, %v6958_v45, 0 }
 0x472   : > { %v6983_v6 = vsel %vm3327_vm11, %v6979_v31, 0 }
 0x473   : > { %v3090_v59 = vadd.f32 %v6692_v10, %v3055_v21 }
 0x475   : > { %v3110_v37 = vpack.c.bf16 %v3090_v59, %v3089_v17 }
 0x476   : > { %3910 = vmatpush.bf16.xpose.msra.mxu0 %v6934_v54  ;;  %v4803_v24 = vpop.eup %4802 }
 0x477   : > { %4525 = vmatmul.msk.bf16.gmra.mxu1 %vm1477_vm3, %v3110_v37  ;;  %v2918_v43 = vmul.f32 %v4803_v24, %v2669_v5  ;;  %vm2924_vm2 = vweird.f32 %v4803_v24 }
 0x478   : > { %vm2925_vm1 = vmor %vm2923_vm0, %vm2924_vm2 }
 0x479   : > { %v2919_v32 = vmul.f32 %v4803_v24, %v2918_v43 }
 0x47b   : > { %v2920_v22 = vmul.f32 0.5, %v2919_v32  ;;  %v5046_v32 = vmov 8.0  }
 0x47c   : > { %991 = vperm.xlu0 %4675, %v987_v30  }
 0x47d   : > { %v2921_v4 = vsub.f32 1.5, %v2920_v22 }
 0x47e   : > { %3911 = vmatpush.bf16.xpose.msra.mxu0 %v6942_v38 }
 0x47f   : > { %v2922_v15 = vmul.f32 %v4803_v24, %v2921_v4 }
 0x481   : > { %v2926_v12 = vsel %vm2925_vm1, %v4803_v24, %v2922_v15 }
 0x482   : > { %v3021_v41 = vmul.f32 %v2926_v12, %v6785_v56 }
 0x484   : > { %3502 = vrot.lane.b32.xlu0 %v3273_v39, %s5045_s22  ;;  %v3056_v37 = vmul.f32 %v6679_v55, %v3021_v41 }
 0x486   : > { %3912 = vmatpush.bf16.xpose.msra.mxu0 %v6952_v47  ;;  %v3091_v24 = vadd.f32 %v6692_v10, %v3056_v37 }
 0x489   : > { %996 = vperm.xlu1 %4676, %v988_v13  }
 0x48e   : > { %3913 = vmatpush.bf16.xpose.msra.mxu0 %v6962_v9 }
 0x491   : > { %3500 = vrot.lane.b32.xlu1 %v3272_v48, %s5045_s22 }
 0x496   : > { %3914 = vmatpush.bf16.xpose.msra.mxu0 %v6974_v28 }
 0x49e   : > { %3915 = vmatpush.bf16.xpose.msra.mxu0 %v6983_v6 }
 0x4a4   : > { %v2594_v0 = vpop.xlane.xlu2 %2593 }
 0x4a5   : > { %v2638_v25 = vmul.f32 %v2594_v0, %v5388_v23 }
 0x4a7   : > { %v2670_v60 = vadd.f32 1e-05, %v2638_v25 }
 0x4a9   : > { %4804 = vrsqrt.f32 %v2670_v60  ;;  %vm2933_vm6 = vweird.f32 %v2670_v60 }
 0x4ac   : > { %v2597_v40 = vpop.xlane.xlu2 %2596 }
 0x4ad   : > { %v2639_v51 = vmul.f32 %v2597_v40, %v5388_v23 }
 0x4af   : > { %v4805_v53 = vpop.eup %4804  ;;  %v2671_v52 = vadd.f32 1e-05, %v2639_v51 }
 0x4b0   : > { %v2928_v18 = vmul.f32 %v4805_v53, %v2670_v60  ;;  %vm2934_vm5 = vweird.f32 %v4805_v53 }
 0x4b1   : > { %4806 = vrsqrt.f32 %v2671_v52  ;;  %vm2935_vm7 = vmor %vm2933_vm6, %vm2934_vm5  ;;  %vm2943_vm10 = vweird.f32 %v2671_v52 }
 0x4b2   : > { %v2929_v44 = vmul.f32 %v4805_v53, %v2928_v18  ;;  %4808 = vrcp.f32 %v5046_v32 }
 0x4b4   : > { %v2930_v34 = vmul.f32 0.5, %v2929_v44  ;;  %v3228_v35 = vpop.f32.mrf.mxu1 }
 0x4b6   : > { %v2931_v16 = vsub.f32 1.5, %v2930_v34 }
 0x4b7   : > { %v4807_v42 = vpop.eup %4806 }
 0x4b8   : > { %v2932_v29 = vmul.f32 %v4805_v53, %v2931_v16  ;;  %v2938_v58 = vmul.f32 %v4807_v42, %v2671_v52  ;;  %v4809_v22 = vpop.eup %4808  ;;  %vm2944_vm8 = vweird.f32 %v4807_v42 }
 0x4b9   : > { %v3292_v18 = vmul.f32 8.0, %v4809_v22  ;;  %vm2945_vm12 = vmor %vm2943_vm10, %vm2944_vm8  ;;  %vm3296_vm4 = vweird.f32 %v4809_v22 }
 0x4ba   : > { %v2936_v39 = vsel %vm2935_vm7, %v4805_v53, %v2932_v29  ;;  %v2939_v17 = vmul.f32 %v4807_v42, %v2938_v58 }
 0x4bb   : > { %v3022_v21 = vmul.f32 %v2936_v39, %v6823_v11  ;;  %v2600_v59 = vpop.xlane.xlu0 %2599  ;;  %v3293_v16 = vsub.f32 1.0, %v3292_v18 }
 0x4bc   : > { %v2640_v48 = vmul.f32 %v2600_v59, %v5388_v23  ;;  %v3230_v30 = vpop.f32.mrf.mxu1  ;;  %v2940_v56 = vmul.f32 0.5, %v2939_v17 }
 0x4bd   : > { %v6992_v13 = vpack.c.bf16 %v3230_v30, %v3228_v35  ;;  %v3057_v8 = vmul.f32 %v6679_v55, %v3022_v21  ;;  %v3294_v17 = vmul.f32 %v4809_v22, %v3293_v16 }
 0x4be   : > { %v2672_v5 = vadd.f32 1e-05, %v2640_v48  ;;  %v2941_v0 = vsub.f32 1.5, %v2940_v56 }
 0x4bf   : > { %v3092_v43 = vadd.f32 %v6692_v10, %v3057_v8 }
 0x4c0   : > { %4810 = vrsqrt.f32 %v2672_v5  ;;  %v2942_v51 = vmul.f32 %v4807_v42, %v2941_v0  ;;  %vm2953_vm14 = vweird.f32 %v2672_v5 }
 0x4c1   : > { %v3111_v11 = vpack.c.bf16 %v3092_v43, %v3091_v24 }
 0x4c2   : > { %v2946_v44 = vsel %vm2945_vm12, %v4807_v42, %v2942_v51 }
 0x4c3   : > { %4526 = vmatmul.msk.bf16.gmra.mxu1 %vm1477_vm3, %v3111_v11  ;;  %v2603_v25 = vpop.xlane.xlu1 %2602  ;;  %v3023_v29 = vmul.f32 %v2946_v44, %v6838_v36  ;;  %v3295_v36 = vadd.f32 %v4809_v22, %v3294_v17 }
 0x4c4   : > { %v2641_v60 = vmul.f32 %v2603_v25, %v5388_v23 }
 0x4c5   : > { %v3058_v59 = vmul.f32 %v6679_v55, %v3023_v29  ;;  %v7008_v11 = vsel %vm3296_vm4, %v4809_v22, %v3295_v36  ;;  %vm1143_vm4 = vcmask 1043456  }
 0x4c6   : > { %v4811_v4 = vpop.eup %4810  ;;  %v2673_v40 = vadd.f32 1e-05, %v2641_v60 }
 0x4c7   : > { %v2948_v53 = vmul.f32 %v4811_v4, %v2672_v5  ;;  %vm2954_vm13 = vweird.f32 %v4811_v4  ;;  %v3093_v5 = vadd.f32 %v6692_v10, %v3058_v59 }
 0x4c8   : > { %4812 = vrsqrt.f32 %v2673_v40  ;;  %vm2955_vm15 = vmor %vm2953_vm14, %vm2954_vm13  ;;  %vm2963_vm0 = vweird.f32 %v2673_v40 }
 0x4c9   : > { %v2949_v15 = vmul.f32 %v4811_v4, %v2948_v53 }
 0x4cb   : > { %v2950_v12 = vmul.f32 0.5, %v2949_v15 }
 0x4cc   : > { %v3233_v34 = vpop.f32.mrf.mxu1 }
 0x4cd   : > { %v2951_v35 = vsub.f32 1.5, %v2950_v12 }
 0x4ce   : > { %v4813_v41 = vpop.eup %4812 }
 0x4cf   : > { %v2952_v58 = vmul.f32 %v4811_v4, %v2951_v35  ;;  %v2958_v39 = vmul.f32 %v4813_v41, %v2673_v40  ;;  %vm2964_vm2 = vweird.f32 %v4813_v41 }
 0x4d0   : > { %vm2965_vm1 = vmor %vm2963_vm0, %vm2964_vm2 }
 0x4d1   : > { %v2956_v21 = vsel %vm2955_vm15, %v4811_v4, %v2952_v58  ;;  %v2959_v37 = vmul.f32 %v4813_v41, %v2958_v39 }
 0x4d2   : > { %v3024_v52 = vmul.f32 %v2956_v21, %v6853_v33 }
 0x4d3   : > { %v2606_v42 = vpop.xlane.xlu2 %2605  ;;  %v2960_v32 = vmul.f32 0.5, %v2959_v37 }
 0x4d4   : > { %v2642_v48 = vmul.f32 %v2606_v42, %v5388_v23  ;;  %v3235_v30 = vpop.f32.mrf.mxu1  ;;  %v3059_v8 = vmul.f32 %v6679_v55, %v3024_v52 }
 0x4d5   : > { %v7004_v56 = vpack.c.bf16 %v3235_v30, %v3233_v34  ;;  %v2961_v0 = vsub.f32 1.5, %v2960_v32  ;;  %v4888_v30 = vld [vmem:[%s5116_s30] ss:$0 sm:$0xff] }
 0x4d6   : > { %v2674_v24 = vadd.f32 1e-05, %v2642_v48  ;;  %v3094_v43 = vadd.f32 %v6692_v10, %v3059_v8 }
 0x4d7   : > { %v2962_v44 = vmul.f32 %v4813_v41, %v2961_v0 }
 0x4d8   : > { %4814 = vrsqrt.f32 %v2674_v24  ;;  %v3112_v33 = vpack.c.bf16 %v3094_v43, %v3093_v5  ;;  %vm2973_vm6 = vweird.f32 %v2674_v24 }
 0x4d9   : > { %v2966_v29 = vsel %vm2965_vm1, %v4813_v41, %v2962_v44 }
 0x4da   : > { %4527 = vmatmul.msk.bf16.gmra.mxu1 %vm1477_vm3, %v3112_v33  ;;  %v3025_v40 = vmul.f32 %v2966_v29, %v6865_v14 }
 0x4db   : > { %v3290_v25 = vpop.xlane.xlu2 %3289  ;;  %v2609_v60 = vpop.xlane.xlu0 %2608 }
 0x4dc   : > { %v3298_v55 = vmul.f32 %v7008_v11, %v3290_v25  ;;  %v2643_v4 = vmul.f32 %v2609_v60, %v5388_v23  ;;  %v3238_v51 = vpop.f32.mrf.mxu1  ;;  %v3060_v8 = vmul.f32 %v4888_v30, %v3025_v40  ;;  %v4889_v40 = vld [vmem:[%s7468_s6] ss:$0 sm:$0xff] }
 0x4de   : > { %v4815_v53 = vpop.eup %4814  ;;  %v7014_v15 = vsub.f32 %v6895_v61, %v3298_v55  ;;  %v2675_v18 = vadd.f32 1e-05, %v2643_v4  ;;  %v3095_v14 = vadd.f32 %v6692_v10, %v3060_v8 }
 0x4df   : > { %v2968_v12 = vmul.f32 %v4815_v53, %v2674_v24  ;;  %vm2974_vm5 = vweird.f32 %v4815_v53 }
 0x4e0   : > { %4816 = vrsqrt.f32 %v2675_v18  ;;  %v3300_v22 = vmul.f32 %v7014_v15, %v7014_v15  ;;  %vm2975_vm7 = vmor %vm2973_vm6, %vm2974_vm5  ;;  %vm2983_vm10 = vweird.f32 %v2675_v18 }
 0x4e1   : > { %v2969_v34 = vmul.f32 %v4815_v53, %v2968_v12 }
 0x4e2   : > { %v3301_v16 = vsel %vm3287_vm9, %v3300_v22, 0.0 }
 0x4e3   : > { %v2612_v35 = vpop.xlane.xlu1 %2611  ;;  %v2970_v58 = vmul.f32 0.5, %v2969_v34  ;;  %3302 = vadd.xlane.f32.xlu2 %v3301_v16  ;;  %v1044_v34 = vld [vmem:[%s963_s16 + $0x8] sm:$0xff] }
 0x4e4   : > { %v2644_v39 = vmul.f32 %v2612_v35, %v5388_v23  ;;  %v3240_v61 = vpop.f32.mrf.mxu1 }
 0x4e5   : > { %v2971_v21 = vsub.f32 1.5, %v2970_v58  ;;  %v7020_v52 = vpack.c.bf16 %v3240_v61, %v3238_v51  ;;  %v1045_v58 = vld [vmem:[%s963_s16 + $0x10] sm:$0xff] }
 0x4e6   : > { %v2676_v17 = vadd.f32 1e-05, %v2644_v39  ;;  %v4817_v59 = vpop.eup %4816  ;;  %v1046_v39 = vld [vmem:[%s963_s16 + $0x18] sm:$0xff] }
 0x4e7   : > { %v2972_v37 = vmul.f32 %v4815_v53, %v2971_v21  ;;  %v2978_v42 = vmul.f32 %v4817_v59, %v2675_v18  ;;  %vm2984_vm8 = vweird.f32 %v4817_v59  ;;  %v1043_v18 = vld [vmem:[%s963_s16] sm:$0xff]  ;;  %s7509_s16 = sld [smem:[#allocation13_spill]] }
 0x4e8   : > { %4818 = vrsqrt.f32 %v2676_v17  ;;  %vm2985_vm12 = vmor %vm2983_vm10, %vm2984_vm8  ;;  %vm2993_vm14 = vweird.f32 %v2676_v17 }
 0x4e9   : > { %v2976_v41 = vsel %vm2975_vm7, %v4815_v53, %v2972_v37  ;;  %v2979_v48 = vmul.f32 %v4817_v59, %v2978_v42 }
 0x4ea   : > { %v3026_v23 = vmul.f32 %v2976_v41, %v6882_v3 }
 0x4eb   : > { %v2980_v36 = vmul.f32 0.5, %v2979_v48 }
 0x4ec   : > { %v3061_v5 = vmul.f32 %v4888_v30, %v3026_v23 }
 0x4ed   : > { %v2981_v32 = vsub.f32 1.5, %v2980_v36 }
 0x4ee   : > { %v4819_v43 = vpop.eup %4818  ;;  %v3096_v24 = vadd.f32 %v6692_v10, %v3061_v5  ;;  %v992_v4 = vpop.permute.xlu0 %991 }
 0x4ef   : > { %v2988_v33 = vmul.f32 %v4819_v43, %v2676_v17  ;;  %v2982_v0 = vmul.f32 %v4817_v59, %v2981_v32  ;;  %vm2994_vm13 = vweird.f32 %v4819_v43  ;;  %v1025_v10 = vadd.f32 %v5288_v19, %v992_v4 }
 0x4f0   : > { %v3113_v60 = vpack.c.bf16 %v3096_v24, %v3095_v14  ;;  %vm2995_vm15 = vmor %vm2993_vm14, %vm2994_vm13  ;;  %v1039_v12 = vadd.f32 %v6673_v46, %v992_v4 }
 0x4f1   : > { %v2989_v25 = vmul.f32 %v4819_v43, %v2988_v33  ;;  %v2986_v3 = vsel %vm2985_vm12, %v4817_v59, %v2982_v0  ;;  %v1047_v29 = vadd.f32 %v1043_v18, %v1025_v10 }
 0x4f2   : > { %4528 = vmatmul.msk.bf16.gmra.mxu1 %vm1477_vm3, %v3113_v60  ;;  %v3027_v53 = vmul.f32 %v2986_v3, %v6898_v2  ;;  %v1048_v21 = vadd.f32 %v1044_v34, %v1039_v12 }
 0x4f3   : > { %v2990_v55 = vmul.f32 0.5, %v2989_v25 }
 0x4f4   : > { %v3062_v16 = vmul.f32 %v4888_v30, %v3027_v53  ;;  %v1052_v41 = vmul.f32 10.0, %v1048_v21 }
 0x4f5   : > { %v2991_v51 = vsub.f32 1.5, %v2990_v55 }
 0x4f6   : > { %v3097_v37 = vadd.f32 %v4889_v40, %v3062_v16 }
 0x4f7   : > { %v2992_v44 = vmul.f32 %v4819_v43, %v2991_v51 }
 0x4f9   : > { %v2996_v22 = vsel %vm2995_vm15, %v4819_v43, %v2992_v44 }
 0x4fa   : > { %v3028_v35 = vmul.f32 %v2996_v22, %v6916_v63  ;;  %v1051_v63 = vmul.f32 10.0, %v1047_v29 }
 0x4fb   : > { %v997_v61 = vpop.permute.xlu1 %996  ;;  %3498 = vrot.lane.b32.xlu2 %v6947_v27, %s5045_s22 }
 0x4fc   : > { %v1027_v2 = vadd.f32 %v5291_v20, %v997_v61  ;;  %v1041_v17 = vadd.f32 %v6702_v62, %v997_v61  ;;  %v3063_v19 = vmul.f32 %v4888_v30, %v3028_v35 }
 0x4fe   : > { %v1049_v46 = vadd.f32 %v1045_v58, %v1027_v2  ;;  %v1050_v59 = vadd.f32 %v1046_v39, %v1041_v17  ;;  %v3098_v42 = vadd.f32 %v4889_v40, %v3063_v19 }
 0x500   : > { %v1053_v48 = vmul.f32 10.0, %v1049_v46  ;;  %v1054_v23 = vmul.f32 10.0, %v1050_v59  ;;  %v3114_v8 = vpack.c.bf16 %v3098_v42, %v3097_v37  ;;  %v7044_v37 = vpop.f32.mrf.mxu1 }
 0x502   : > { %v1055_v36 = vmax.f32 %v1051_v63, %v1053_v48  ;;  %v1062_v5 = vmax.f32 %v1052_v41, %v1054_v23  ;;  %4529 = vmatmul.msk.bf16.gmra.mxu1 %vm1477_vm3, %v3114_v8  ;;  %vm1110_vm3 = vcmask 130048  }
 0x503   : > { %3504 = vrot.lane.b32.xlu2 %v6911_v7, %s5045_s22 }
 0x504   : > { %v1056_v20 = vrot.slane %v1055_v36, 4  ;;  %v1063_v62 = vrot.slane %v1062_v5, 4 }
 0x506   : > { %v1057_v27 = vmax.f32 %v1055_v36, %v1056_v20  ;;  %v1064_v30 = vmax.f32 %v1062_v5, %v1063_v62 }
 0x508   : > { %v1058_v43 = vrot.slane %v1057_v27, 2  ;;  %v1065_v32 = vrot.slane %v1064_v30, 2  ;;  %v7047_v20 = vpop.f32.mrf.mxu1 }
 0x50a   : > { %v1059_v33 = vmax.f32 %v1057_v27, %v1058_v43  ;;  %v1066_v14 = vmax.f32 %v1064_v30, %v1065_v32  ;;  %v1101_v27 = vld [vmem:[%s7509_s16] sm:$0x3]  ;;  %s7511_s16 = sld [smem:[#allocation21_spill]] }
 0x50b   : > { %3506 = vrot.lane.b32.xlu2 %v6892_v26, %s5045_s22  ;;  %v3326_v32 = vld [vmem:[%s7510_s23] sm:$0xf]  ;;  %s7512_s23 = sld [smem:[#allocation22_spill]] }
 0x50c   : > { %v1060_v24 = vrot.slane %v1059_v33, 1  ;;  %v1067_v0 = vrot.slane %v1066_v14, 1 }
 0x50e   : > { %v1061_v25 = vmax.f32 %v1059_v33, %v1060_v24  ;;  %v1068_v60 = vmax.f32 %v1066_v14, %v1067_v0  ;;  %v7060_v33 = vsel %vm1143_vm4, %v3326_v32, 0 }
 0x510   : > { %v1071_v3 = vsub.f32 %v1053_v48, %v1061_v25  ;;  %v1072_v55 = vsub.f32 %v1054_v23, %v1068_v60  ;;  %v1069_v4 = vsub.f32 %v1051_v63, %v1061_v25  ;;  %v1070_v51 = vsub.f32 %v1052_v41, %v1068_v60 }
 0x512   : > { %v1077_v53 = vmul.f32 1.442695, %v1071_v3  ;;  %v1079_v44 = vmul.f32 1.442695, %v1072_v55  ;;  %v1073_v7 = vmul.f32 1.442695, %v1069_v4 }
 0x513   : > { %v1075_v10 = vmul.f32 1.442695, %v1070_v51 }
 0x514   : > { %4820 = vpow2.f32 %v1077_v53 }
 0x515   : > { %4822 = vpow2.f32 %v1079_v44 }
 0x516   : > { %4824 = vpow2.f32 %v1073_v7 }
 0x517   : > { %4826 = vpow2.f32 %v1075_v10 }
 0x51a   : > { %v4821_v18 = vpop.eup %4820 }
 0x51b   : > { %v4823_v12 = vpop.eup %4822 }
 0x51c   : > { %v4825_v22 = vpop.eup %4824 }
 0x51d   : > { %v4827_v34 = vpop.eup %4826  ;;  %v1081_v35 = vadd.f32 %v4825_v22, %v4821_v18 }
 0x51e   : > { %v1088_v26 = vadd.f32 %v4827_v34, %v4823_v12 }
 0x51f   : > { %v1082_v16 = vrot.slane %v1081_v35, 4 }
 0x520   : > { %v1089_v29 = vrot.slane %v1088_v26, 4 }
 0x521   : > { %v1083_v58 = vadd.f32 %v1082_v16, %v1081_v35  ;;  %v7080_v35 = vld [vmem:[%s7512_s23] ss:$0 sm:$0xff]  ;;  %s7515_s23 = sld [smem:[#allocation23_spill]] }
 0x522   : > { %v1090_v39 = vadd.f32 %v1089_v29, %v1088_v26 }
 0x523   : > { %v1084_v61 = vrot.slane %v1083_v58, 2 }
 0x524   : > { %v1091_v21 = vrot.slane %v1090_v39, 2 }
 0x525   : > { %v1085_v2 = vadd.f32 %v1084_v61, %v1083_v58 }
 0x526   : > { %v1092_v17 = vadd.f32 %v1091_v21, %v1090_v39  ;;  %v7098_v21 = vpop.permute.xlu1 %3500 }
 0x527   : > { %v1086_v19 = vrot.slane %v1085_v2, 1 }
 0x528   : > { %v1093_v46 = vrot.slane %v1092_v17, 1 }
 0x529   : > { %v1087_v59 = vadd.f32 %v1086_v19, %v1085_v2 }
 0x52a   : > { %v1094_v40 = vadd.f32 %v1093_v46, %v1092_v17 }
 0x52b   : > { %4828 = vrcp.f32 %v1087_v59 }
 0x52c   : > { %4830 = vrcp.f32 %v1094_v40 }
 0x531   : > { %v4829_v42 = vpop.eup %4828 }
 0x532   : > { %v4831_v63 = vpop.eup %4830  ;;  %v1097_v41 = vmul.f32 %v4829_v42, %v4825_v22  ;;  %v1099_v48 = vmul.f32 %v4829_v42, %v4821_v18  ;;  %v7140_v42 = vsel %vm3327_vm11, %v7020_v52, 0 }
 0x533   : > { %v1098_v23 = vmul.f32 %v4831_v63, %v4827_v34  ;;  %v1100_v8 = vmul.f32 %v4831_v63, %v4823_v12  ;;  %v7076_v12 = vld [vmem:[%s7511_s16] ss:$0 sm:$0xff]  ;;  %v7146_v63 = vsel %vm3327_vm11, %v7004_v56, 0  ;;  %s7514_s16 = sld [smem:[#allocation25_spill]] }
 0x534   : > { %v1102_v36 = vpack.c.bf16 %v1099_v48, %v1097_v41  ;;  %v7154_v48 = vsel %vm3327_vm11, %v6992_v13, 0 }
 0x535   : > { %v1103_v5 = vpack.c.bf16 %v1100_v8, %v1098_v23 }
 0x536   : > { %1121 = vmatpush.bf16.msra.mxu2 %v1102_v36 }
 0x537   : > { %1134 = vmatpush.bf16.msra.mxu3 %v1103_v5 }
 0x539   : > { %4416 = vmatmul.msk.bf16.vlgmr.msra.gmra.mxu2 %vm1110_vm3, %v1101_v27 }
 0x53a   : > { %4417 = vmatmul.msk.bf16.vlgmr.msra.gmra.mxu3 %vm1110_vm3, %v1101_v27  ;;  %3341 = vmatpush.bf16.msrb.mxu2 %v7060_v33 }
 0x53b   : > { %3400 = vmatpush.bf16.xpose.msrb.mxu3 %v6902_v50 }
 0x540   : > { %v3248_v62 = vpop.f32.mrf.mxu1 }
 0x543   : > { %3401 = vmatpush.bf16.xpose.msrb.mxu3 %v6920_v49 }
 0x548   : > { %v3250_v30 = vpop.f32.mrf.mxu1 }
 0x549   : > { %v7054_v43 = vpack.c.bf16 %v3250_v30, %v3248_v62 }
 0x54b   : > { %3402 = vmatpush.bf16.xpose.msrb.mxu3 %v6934_v54  ;;  %3516 = vrot.lane.b32.xlu0 %v7054_v43, %s5045_s22  ;;  %v7127_v40 = vsel %vm3327_vm11, %v7054_v43, 0 }
 0x553   : > { %3403 = vmatpush.bf16.xpose.msrb.mxu3 %v6942_v38 }
 0x556   : > { %v3303_v14 = vpop.xlane.xlu2 %3302 }
 0x557   : > { %v3304_v24 = vmul.f32 %v3303_v14, %v7008_v11  ;;  %v3253_v0 = vpop.f32.mrf.mxu1 }
 0x559   : > { %v3305_v25 = vadd.f32 1e-05, %v3304_v24 }
 0x55b   : > { %3404 = vmatpush.bf16.xpose.msrb.mxu3 %v6952_v47  ;;  %4832 = vrsqrt.f32 %v3305_v25  ;;  %vm3312_vm0 = vweird.f32 %v3305_v25 }
 0x55e   : > { %v7066_v60 = vpop.permute.xlu2 %3498 }
 0x55f   : > { %v3255_v3 = vpop.f32.mrf.mxu1 }
 0x560   : > { %v3281_v55 = vpack.c.bf16 %v3255_v3, %v3253_v0 }
 0x561   : > { %v4833_v4 = vpop.eup %4832 }
 0x562   : > { %v3307_v51 = vmul.f32 %v4833_v4, %v3305_v25  ;;  %3518 = vrot.lane.b32.xlu2 %v3281_v55, %s5045_s22  ;;  %vm3313_vm2 = vweird.f32 %v4833_v4  ;;  %v7119_v59 = vsel %vm3327_vm11, %v3281_v55, 0 }
 0x563   : > { %3405 = vmatpush.bf16.xpose.msrb.mxu3 %v6962_v9  ;;  %vm3314_vm1 = vmor %vm3312_vm0, %vm3313_vm2 }
 0x564   : > { %v3308_v53 = vmul.f32 %v4833_v4, %v3307_v51 }
 0x566   : > { %v3309_v44 = vmul.f32 0.5, %v3308_v53  ;;  %v7070_v7 = vpop.permute.xlu2 %3504 }
 0x568   : > { %v3310_v10 = vsub.f32 1.5, %v3309_v44 }
 0x56a   : > { %v3311_v18 = vmul.f32 %v4833_v4, %v3310_v10  ;;  %3496 = vrot.lane.b32.xlu2 %v6958_v45, %s5045_s22 }
 0x56b   : > { %3406 = vmatpush.bf16.xpose.msrb.mxu3 %v6974_v28 }
 0x56c   : > { %v3315_v22 = vsel %vm3314_vm1, %v4833_v4, %v3311_v18 }
 0x56d   : > { %v3316_v34 = vmul.f32 %v3315_v22, %v7014_v15  ;;  %v7092_v15 = vpop.permute.xlu0 %3502 }
 0x56e   : > { %v7082_v26 = vpop.permute.xlu2 %3506 }
 0x56f   : > { %v3258_v16 = vpop.f32.mrf.mxu1  ;;  %v3320_v29 = vmul.f32 %v7076_v12, %v3316_v34 }
 0x571   : > { %v3324_v58 = vadd.f32 %v7080_v35, %v3320_v29 }
 0x572   : > { %3494 = vrot.lane.b32.xlu2 %v6969_v57, %s5045_s22 }
 0x573   : > { %3407 = vmatpush.bf16.xpose.msrb.mxu3 %v6983_v6  ;;  %v3325_v45 = vpack.c.bf16 %v3324_v58, %v3324_v58 }
 0x575   : > { %4530 = vmatmul.msk.bf16.vlgmr.msrb.gmra.mxu2 %vm3327_vm11, %v3325_v45 }
 0x577   : > { %v3260_v39 = vpop.f32.mrf.mxu1 }
 0x578   : > { %v3282_v61 = vpack.c.bf16 %v3260_v39, %v3258_v16 }
 0x57a   : > { %3492 = vrot.lane.b32.xlu2 %v6979_v31, %s5045_s22  ;;  %3520 = vrot.lane.b32.xlu1 %v3282_v61, %s5045_s22  ;;  %v3279_v31 = vpack.c.bf16 %v7047_v20, %v7044_v37  ;;  %v7112_v46 = vsel %vm3327_vm11, %v3282_v61, 0 }
 0x57b   : > { %3540 = vmatpush.bf16.msra.mxu3 %v7082_v26 }
 0x57c   : > { %v7134_v37 = vsel %vm3327_vm11, %v3279_v31, 0 }
 0x57f   : > { %3541 = vmatpush.bf16.msra.mxu3 %v7070_v7  ;;  %v3263_v57 = vpop.f32.mrf.mxu1 }
 0x583   : > { %3542 = vmatpush.bf16.msra.mxu3 %v7092_v15 }
 0x587   : > { %3543 = vmatpush.bf16.msra.mxu3 %v7098_v21  ;;  %v3265_v2 = vpop.f32.mrf.mxu1 }
 0x588   : > { %v3283_v17 = vpack.c.bf16 %v3265_v2, %v3263_v57 }
 0x58a   : > { %v7103_v19 = vsel %vm3327_vm11, %v3283_v17, 0  ;;  %3522 = vrot.lane.b32.xlu1 %v3283_v17, %s5045_s22 }
 0x58b   : > { %3544 = vmatpush.bf16.msra.mxu3 %v7066_v60  ;;  %3413 = vmatpush.bf16.xpose.msra.mxu2 %v7103_v19 }
 0x58c   : > { %3921 = vmatpush.bf16.xpose.msra.mxu1 %v7103_v19 }
 0x592   : > { %3514 = vrot.lane.b32.xlu1 %v3279_v31, %s5045_s22 }
 0x593   : > { %3414 = vmatpush.bf16.xpose.msra.mxu2 %v7112_v46 }
 0x594   : > { %3922 = vmatpush.bf16.xpose.msra.mxu1 %v7112_v46 }
 0x59a   : > { %3512 = vrot.lane.b32.xlu1 %v7020_v52, %s5045_s22 }
 0x59b   : > { %3415 = vmatpush.bf16.xpose.msra.mxu2 %v7119_v59 }
 0x59c   : > { %3923 = vmatpush.bf16.xpose.msra.mxu1 %v7119_v59 }
 0x5a2   : > { %3510 = vrot.lane.b32.xlu1 %v7004_v56, %s5045_s22 }
 0x5a3   : > { %3416 = vmatpush.bf16.xpose.msra.mxu2 %v7127_v40 }
 0x5a4   : > { %3924 = vmatpush.bf16.xpose.msra.mxu1 %v7127_v40 }
 0x5aa   : > { %3508 = vrot.lane.b32.xlu1 %v6992_v13, %s5045_s22  ;;  %s7513_s22 = sld [smem:[#allocation27_spill]] }
 0x5ab   : > { %3417 = vmatpush.bf16.xpose.msra.mxu2 %v7134_v37 }
 0x5ac   : > { %3925 = vmatpush.bf16.xpose.msra.mxu1 %v7134_v37 }
 0x5b3   : > { %3418 = vmatpush.bf16.xpose.msra.mxu2 %v7140_v42 }
 0x5b4   : > { %3926 = vmatpush.bf16.xpose.msra.mxu1 %v7140_v42 }
 0x5bb   : > { %3419 = vmatpush.bf16.xpose.msra.mxu2 %v7146_v63 }
 0x5bc   : > { %3927 = vmatpush.bf16.xpose.msra.mxu1 %v7146_v63  ;;  %v7150_v41 = vpop.permute.xlu2 %3518  ;;  %v7161_v56 = vpop.f32.mrf.mxu2 }
 0x5bd   : > { %v7175_v30 = vpop.f32.mrf.mxu3  ;;  %v7182_v24 = vpop.permute.xlu0 %3516 }
 0x5c3   : > { %3420 = vmatpush.bf16.xpose.msra.mxu2 %v7154_v48 }
 0x5c4   : > { %3928 = vmatpush.bf16.xpose.msra.mxu1 %v7154_v48  ;;  %v7158_v52 = vpop.permute.xlu2 %3496  ;;  %v1125_v8 = vpop.f32.mrf.mxu2 }
 0x5c5   : > { %3545 = vmatpush.bf16.msra.mxu3 %v7158_v52  ;;  %v1138_v14 = vpop.f32.mrf.mxu3 }
 0x5cc   : > { %v7163_v23 = vpop.permute.xlu2 %3494 }
 0x5cd   : > { %3546 = vmatpush.bf16.msra.mxu3 %v7163_v23 }
 0x5d4   : > { %v7166_v36 = vpop.permute.xlu2 %3492 }
 0x5d5   : > { %3547 = vmatpush.bf16.msra.mxu3 %v7166_v36 }
 0x5ec   : > { %v7169_v13 = vpop.permute.xlu1 %3520 }
 0x5f8   : > { %v3343_v5 = vpop.f32.mrf.mxu2 }
 0x5f9   : > { %v3347_v20 = vmul.f32 0.35355338, %v3343_v5 }
 0x5fb   : > { %v3348_v62 = vpack.c.bf16 %v3347_v20, %v3347_v20 }
 0x5fc   : > { %v7171_v27 = vpop.permute.xlu1 %3522 }
 0x5fd   : > { %4531 = vmatmul.msk.bf16.vlgmr.msrb.gmra.mxu3 %vm3327_vm11, %v3348_v62  ;;  %4532 = vmatmul.msk.bf16.vlgmr.msra.gmra.mxu2 %vm3327_vm11, %v3348_v62 }
 0x5fe   : > { %3553 = vmatpush.bf16.msrb.mxu2 %v7171_v27 }
 0x600   : > { %v3345_v43 = vpop.f32.mrf.mxu2 }
 0x602   : > { %3554 = vmatpush.bf16.msrb.mxu2 %v7169_v13 }
 0x604   : > { %v7179_v32 = vpop.permute.xlu1 %3514 }
 0x606   : > { %3555 = vmatpush.bf16.msrb.mxu2 %v7150_v41 }
 0x60a   : > { %3556 = vmatpush.bf16.msrb.mxu2 %v7182_v24 }
 0x60c   : > { %v7185_v0 = vpop.permute.xlu1 %3512 }
 0x60e   : > { %3557 = vmatpush.bf16.msrb.mxu2 %v7179_v32 }
 0x612   : > { %3558 = vmatpush.bf16.msrb.mxu2 %v7185_v0 }
 0x614   : > { %v7189_v25 = vpop.permute.xlu1 %3510 }
 0x616   : > { %3559 = vmatpush.bf16.msrb.mxu2 %v7189_v25 }
 0x61c   : > { %v7192_v3 = vpop.permute.xlu1 %3508 }
 0x61d   : > { %3560 = vmatpush.bf16.msrb.mxu2 %v7192_v3 }
 0x680   : > { %v3409_v55 = vpop.f32.mrf.mxu3  ;;  %v3422_v4 = vpop.f32.mrf.mxu2 }
 0x681   : > { %v3426_v51 = vsel %vm1143_vm4, %v3409_v55, -inf  ;;  %v3433_v53 = vsel %vm1143_vm4, %v3422_v4, -inf }
 0x682   : > { %v3427_v44 = vrot.slane %v3426_v51, 4  ;;  %v3434_v10 = vrot.slane %v3433_v53, 4 }
 0x684   : > { %v3428_v18 = vmax.f32 %v3426_v51, %v3427_v44  ;;  %v3435_v22 = vmax.f32 %v3433_v53, %v3434_v10 }
 0x686   : > { %v3429_v34 = vrot.slane %v3428_v18, 2  ;;  %v3436_v16 = vrot.slane %v3435_v22, 2 }
 0x688   : > { %v3430_v29 = vmax.f32 %v3428_v18, %v3429_v34  ;;  %v3437_v58 = vmax.f32 %v3435_v22, %v3436_v16  ;;  %v3411_v45 = vpop.f32.mrf.mxu3  ;;  %v3424_v39 = vpop.f32.mrf.mxu2 }
 0x68a   : > { %v3431_v61 = vrot.slane %v3430_v29, 1  ;;  %v3438_v57 = vrot.slane %v3437_v58, 1 }
 0x68c   : > { %v3432_v2 = vmax.f32 %v3430_v29, %v3431_v61  ;;  %v3439_v17 = vmax.f32 %v3437_v58, %v3438_v57 }
 0x68e   : > { %v3440_v31 = vsub.f32 %v3409_v55, %v3432_v2  ;;  %v3441_v8 = vsub.f32 %v3422_v4, %v3439_v17 }
 0x690   : > { %v3442_v5 = vmul.f32 1.442695, %v3440_v31  ;;  %v3444_v20 = vmul.f32 1.442695, %v3441_v8 }
 0x692   : > { %4834 = vpow2.f32 %v3442_v5 }
 0x693   : > { %4836 = vpow2.f32 %v3444_v20 }
 0x698   : > { %v4835_v62 = vpop.eup %4834 }
 0x699   : > { %v4837_v43 = vpop.eup %4836  ;;  %v3446_v14 = vsel %vm1143_vm4, %v4835_v62, 0.0 }
 0x69a   : > { %v3447_v51 = vrot.slane %v3446_v14, 4  ;;  %v3453_v53 = vsel %vm1143_vm4, %v4837_v43, 0.0 }
 0x69b   : > { %v3454_v44 = vrot.slane %v3453_v53, 4 }
 0x69c   : > { %v3448_v10 = vadd.f32 %v3447_v51, %v3446_v14  ;;  %v7202_v14 = vld [vmem:[%s7513_s22] sm:$0xff]  ;;  %s7516_s22 = sld [smem:[#allocation24_spill]] }
 0x69d   : > { %v3455_v18 = vadd.f32 %v3454_v44, %v3453_v53  ;;  %3647 = vmatpush.bf16.msra.mxu2 %v7202_v14  ;;  %4063 = vmatpush.bf16.msrb.mxu1 %v7202_v14 }
 0x69e   : > { %v3449_v22 = vrot.slane %v3448_v10, 2 }
 0x69f   : > { %v3456_v34 = vrot.slane %v3455_v18, 2 }
 0x6a0   : > { %v3450_v16 = vadd.f32 %v3449_v22, %v3448_v10 }
 0x6a1   : > { %v3457_v29 = vadd.f32 %v3456_v34, %v3455_v18 }
 0x6a2   : > { %v3451_v55 = vrot.slane %v3450_v16, 1 }
 0x6a3   : > { %v3458_v4 = vrot.slane %v3457_v29, 1 }
 0x6a4   : > { %v3452_v58 = vadd.f32 %v3451_v55, %v3450_v16 }
 0x6a5   : > { %v3459_v45 = vadd.f32 %v3458_v4, %v3457_v29 }
 0x6a6   : > { %4838 = vrcp.f32 %v3452_v58 }
 0x6a7   : > { %4840 = vrcp.f32 %v3459_v45 }
 0x6ac   : > { %v4839_v39 = vpop.eup %4838 }
 0x6ad   : > { %v4841_v61 = vpop.eup %4840  ;;  %v3462_v57 = vmul.f32 %v4839_v39, %v4835_v62 }
 0x6ae   : > { %v3463_v2 = vmul.f32 %v4841_v61, %v4837_v43 }
 0x6af   : > { %v3464_v17 = vadd.f32 1e-08, %v3462_v57 }
 0x6b0   : > { %v3465_v31 = vadd.f32 1e-08, %v3463_v2 }
 0x6b1   : > { %v3466_v8 = vsel %vm1143_vm4, %v3464_v17, 0.0 }
 0x6b2   : > { %v3467_v5 = vsel %vm1143_vm4, %v3465_v31, 0.0 }
 0x6b3   : > { %v3468_v20 = vadd.f32 %v3467_v5, %v3466_v8 }
 0x6b5   : > { %3469 = vadd.xlane.f32.xlu0 %v3468_v20  ;;  %v7233_v20 = vld [vmem:[%s7516_s22] ss:$0 sm:$0xff]  ;;  %s7330_s22 = sand.u32 1, %s5004_s10  }
 0x728   : > { %v3470_v51 = vpop.xlane.xlu0 %3469 }
 0x729   : > { %4842 = vrcp.f32 %v3470_v51 }
 0x72f   : > { %v4843_v53 = vpop.eup %4842 }
 0x730   : > { %v3472_v44 = vmul.f32 %v4843_v53, %v3464_v17  ;;  %v3473_v62 = vmul.f32 %v4843_v53, %v3465_v31  ;;  %v7230_v31 = vld [vmem:[%s7515_s23] ss:$0 sm:$0xff]  ;;  %s7518_s23 = sld [smem:[#allocation28_spill]] }
 0x732   : > { %v3474_v43 = vpack.c.bf16 %v3472_v44, %v3472_v44  ;;  %v3475_v10 = vpack.c.bf16 %v3473_v62, %v3473_v62 }
 0x734   : > { %3548 = vmatmul.bf16.vlgmr.msra.gmra.mxu3 %v3474_v43  ;;  %3561 = vmatmul.bf16.vlgmr.msrb.gmra.mxu2 %v3475_v10 }
 0x735   : > { %3700 = vmatpush.bf16.xpose.msrb.mxu2 %v6902_v50 }
 0x73d   : > { %3701 = vmatpush.bf16.xpose.msrb.mxu2 %v6920_v49 }
 0x745   : > { %3702 = vmatpush.bf16.xpose.msrb.mxu2 %v6934_v54 }
 0x74d   : > { %3703 = vmatpush.bf16.xpose.msrb.mxu2 %v6942_v38 }
 0x755   : > { %3704 = vmatpush.bf16.xpose.msrb.mxu2 %v6952_v47 }
 0x75d   : > { %3705 = vmatpush.bf16.xpose.msrb.mxu2 %v6962_v9 }
 0x765   : > { %3706 = vmatpush.bf16.xpose.msrb.mxu2 %v6974_v28 }
 0x76d   : > { %3707 = vmatpush.bf16.xpose.msrb.mxu2 %v6983_v6  ;;  %v3599_v6 = vld [vmem:[%s7514_s16] sm:$0xf]  ;;  %s7517_s16 = sld [smem:[#allocation26_spill]] }
 0x76e   : > { %v7223_v29 = vsel %vm1143_vm4, %v3599_v6, 0 }
 0x76f   : > { %3617 = vmatpush.bf16.msrb.mxu3 %v7223_v29  ;;  %4045 = vmatpush.bf16.msrb.mxu0 %v7223_v29 }
 0x773   : > { %3689 = vmatpush.bf16.msra.mxu3 %v7060_v33  ;;  %v7247_v62 = vld [vmem:[%s7517_s16] ss:$0 sm:$0xff]  ;;  %s4402_s16 = sshll.u32 %s7330_s22, 3 }
 0x774   : > { %s7338_s5 = scalar_lea.vmem [#allocation4], %s4402_s16 }
 0x775   : > { %s4160_s17 = sshll.u32 %s7338_s5, 4  ;;  %s4161_s17 = int_to_ptr.vmem [resolvable:$true] %s4160_s17 }
 0x7b7   : > { %v3549_v18 = vpop.f32.mrf.mxu3  ;;  %v3562_v22 = vpop.f32.mrf.mxu2 }
 0x7b8   : > { %v7214_v34 = vadd.f32 %v3562_v22, %v3549_v18 }
 0x7ba   : > { %v3568_v50 = vsel %vm3287_vm9, %v7214_v34, 0.0 }
 0x7bb   : > { %3569 = vadd.xlane.f32.xlu2 %v3568_v50 }
 0x7bf   : > { %v3551_v49 = vpop.f32.mrf.mxu3  ;;  %v3564_v54 = vpop.f32.mrf.mxu2 }
 0x82e   : > { %v3570_v38 = vpop.xlane.xlu2 %3569 }
 0x82f   : > { %v3571_v47 = vmul.f32 %v3570_v38, %v7008_v11 }
 0x831   : > { %v3572_v9 = vsub.f32 %v7214_v34, %v3571_v47 }
 0x833   : > { %v3573_v16 = vmul.f32 %v3572_v9, %v3572_v9 }
 0x835   : > { %v3574_v28 = vsel %vm3287_vm9, %v3573_v16, 0.0 }
 0x836   : > { %3575 = vadd.xlane.f32.xlu1 %v3574_v28 }
 0x8a9   : > { %v3576_v55 = vpop.xlane.xlu1 %3575 }
 0x8aa   : > { %v3577_v4 = vmul.f32 %v3576_v55, %v7008_v11 }
 0x8ac   : > { %v3578_v58 = vadd.f32 1e-05, %v3577_v4 }
 0x8ae   : > { %4844 = vrsqrt.f32 %v3578_v58  ;;  %vm3585_vm6 = vweird.f32 %v3578_v58 }
 0x8b4   : > { %v4845_v45 = vpop.eup %4844 }
 0x8b5   : > { %v3580_v39 = vmul.f32 %v4845_v45, %v3578_v58  ;;  %vm3586_vm5 = vweird.f32 %v4845_v45 }
 0x8b6   : > { %vm3587_vm7 = vmor %vm3585_vm6, %vm3586_vm5 }
 0x8b7   : > { %v3581_v61 = vmul.f32 %v4845_v45, %v3580_v39 }
 0x8b9   : > { %v3582_v57 = vmul.f32 0.5, %v3581_v61 }
 0x8bb   : > { %v3583_v2 = vsub.f32 1.5, %v3582_v57 }
 0x8bd   : > { %v3584_v17 = vmul.f32 %v4845_v45, %v3583_v2 }
 0x8bf   : > { %v3588_v8 = vsel %vm3587_vm7, %v4845_v45, %v3584_v17 }
 0x8c0   : > { %v3589_v5 = vmul.f32 %v3588_v8, %v3572_v9 }
 0x8c2   : > { %v3593_v51 = vmul.f32 %v7230_v31, %v3589_v5 }
 0x8c4   : > { %v3597_v53 = vadd.f32 %v7233_v20, %v3593_v51 }
 0x8c6   : > { %v3598_v44 = vpack.c.bf16 %v3597_v53, %v3597_v53 }
 0x8c8   : > { %4533 = vmatmul.msk.bf16.vlgmr.msrb.gmra.mxu3 %vm3327_vm11, %v3598_v44 }
 0x8c9   : > { %3713 = vmatpush.bf16.xpose.msrb.mxu3 %v7103_v19 }
 0x8d1   : > { %3714 = vmatpush.bf16.xpose.msrb.mxu3 %v7112_v46 }
 0x8d9   : > { %3715 = vmatpush.bf16.xpose.msrb.mxu3 %v7119_v59 }
 0x8e1   : > { %3716 = vmatpush.bf16.xpose.msrb.mxu3 %v7127_v40  ;;  %v7260_v40 = vld [vmem:[%s7518_s23] ss:$0 sm:$0xff]  ;;  %s7519_s23 = sld [smem:[#allocation14_spill]] }
 0x8e9   : > { %3717 = vmatpush.bf16.xpose.msrb.mxu3 %v7134_v37 }
 0x8f1   : > { %3718 = vmatpush.bf16.xpose.msrb.mxu3 %v7140_v42 }
 0x8f9   : > { %3719 = vmatpush.bf16.xpose.msrb.mxu3 %v7146_v63 }
 0x901   : > { %3720 = vmatpush.bf16.xpose.msrb.mxu3 %v7154_v48 }
 0x94b   : > { %v3619_v43 = vpop.f32.mrf.mxu3 }
 0x94c   : > { %v3620_v19 = vadd.f32 %v7247_v62, %v3619_v43 }
 0x94e   : > { %v3623_v10 = vmax.f32 %v3620_v19, 0.0 }
 0x950   : > { %v3624_v46 = vpack.c.bf16 %v3623_v10, %v3623_v10 }
 0x952   : > { %4538 = vmatmul.msk.bf16.vlgmr.msra.gmra.mxu2 %vm1110_vm3, %v3624_v46 }
 0x953   : > { %3776 = vmatpush.bf16.msra.mxu2 %v7082_v26  ;;  %v3621_v59 = vpop.f32.mrf.mxu3 }
 0x957   : > { %3777 = vmatpush.bf16.msra.mxu2 %v7070_v7 }
 0x95b   : > { %3778 = vmatpush.bf16.msra.mxu2 %v7092_v15 }
 0x95f   : > { %3779 = vmatpush.bf16.msra.mxu2 %v7098_v21 }
 0x963   : > { %3780 = vmatpush.bf16.msra.mxu2 %v7066_v60 }
 0x967   : > { %3781 = vmatpush.bf16.msra.mxu2 %v7158_v52 }
 0x96b   : > { %3782 = vmatpush.bf16.msra.mxu2 %v7163_v23 }
 0x96f   : > { %3783 = vmatpush.bf16.msra.mxu2 %v7166_v36 }
 0x9d5   : > { %v3649_v37 = vpop.f32.mrf.mxu2 }
 0x9d6   : > { %v3650_v42 = vadd.f32 %v7260_v40, %v3649_v37 }
 0x9d8   : > { %v3653_v63 = vadd.f32 %v3650_v42, %v7214_v34 }
 0x9da   : > { %v3654_v48 = vsel %vm3287_vm9, %v3653_v63, 0.0 }
 0x9db   : > { %3655 = vadd.xlane.f32.xlu0 %v3654_v48 }
 0x9dd   : > { %v3651_v18 = vpop.f32.mrf.mxu2 }
 0xa4e   : > { %v3656_v22 = vpop.xlane.xlu0 %3655 }
 0xa4f   : > { %v3657_v50 = vmul.f32 %v3656_v22, %v7008_v11 }
 0xa51   : > { %v3658_v49 = vsub.f32 %v3653_v63, %v3657_v50 }
 0xa53   : > { %v3659_v54 = vmul.f32 %v3658_v49, %v3658_v49 }
 0xa55   : > { %v3660_v38 = vsel %vm3287_vm9, %v3659_v54, 0.0 }
 0xa56   : > { %3661 = vadd.xlane.f32.xlu0 %v3660_v38 }
 0xac9   : > { %v3662_v47 = vpop.xlane.xlu0 %3661 }
 0xaca   : > { %v3663_v9 = vmul.f32 %v3662_v47, %v7008_v11 }
 0xacc   : > { %v3664_v16 = vadd.f32 1e-05, %v3663_v9 }
 0xace   : > { %4846 = vrsqrt.f32 %v3664_v16  ;;  %vm3671_vm10 = vweird.f32 %v3664_v16 }
 0xad4   : > { %v4847_v28 = vpop.eup %4846 }
 0xad5   : > { %v3666_v6 = vmul.f32 %v4847_v28, %v3664_v16  ;;  %vm3672_vm8 = vweird.f32 %v4847_v28 }
 0xad6   : > { %vm3673_vm12 = vmor %vm3671_vm10, %vm3672_vm8 }
 0xad7   : > { %v3667_v34 = vmul.f32 %v4847_v28, %v3666_v6 }
 0xad9   : > { %v3668_v55 = vmul.f32 0.5, %v3667_v34 }
 0xadb   : > { %v3669_v4 = vsub.f32 1.5, %v3668_v55 }
 0xadd   : > { %v3670_v58 = vmul.f32 %v4847_v28, %v3669_v4 }
 0xadf   : > { %v3674_v45 = vsel %vm3673_vm12, %v4847_v28, %v3670_v58 }
 0xae0   : > { %v3675_v39 = vmul.f32 %v3674_v45, %v3658_v49 }
 0xae2   : > { %v3676_v61 = vmul.f32 %v7076_v12, %v3675_v39 }
 0xae4   : > { %v3677_v57 = vadd.f32 %v7080_v35, %v3676_v61 }
 0xae6   : > { %v3678_v2 = vpack.c.bf16 %v3677_v57, %v3677_v57 }
 0xae8   : > { %4539 = vmatmul.msk.bf16.vlgmr.msra.gmra.mxu3 %vm3327_vm11, %v3678_v2 }
 0xae9   : > { %3789 = vmatpush.bf16.msra.mxu3 %v7171_v27 }
 0xaed   : > { %3790 = vmatpush.bf16.msra.mxu3 %v7169_v13 }
 0xaf1   : > { %3791 = vmatpush.bf16.msra.mxu3 %v7150_v41 }
 0xaf5   : > { %3792 = vmatpush.bf16.msra.mxu3 %v7182_v24 }
 0xaf9   : > { %3793 = vmatpush.bf16.msra.mxu3 %v7179_v32 }
 0xafd   : > { %3794 = vmatpush.bf16.msra.mxu3 %v7185_v0 }
 0xb01   : > { %3795 = vmatpush.bf16.msra.mxu3 %v7189_v25 }
 0xb05   : > { %3796 = vmatpush.bf16.msra.mxu3 %v7192_v3 }
 0xb6b   : > { %v3691_v17 = vpop.f32.mrf.mxu3 }
 0xb6c   : > { %v3695_v8 = vmul.f32 0.35355338, %v3691_v17 }
 0xb6e   : > { %v3696_v5 = vpack.c.bf16 %v3695_v8, %v3695_v8 }
 0xb70   : > { %4540 = vmatmul.msk.bf16.vlgmr.msrb.gmra.mxu2 %vm3327_vm11, %v3696_v5  ;;  %4541 = vmatmul.msk.bf16.vlgmr.msrb.gmra.mxu3 %vm3327_vm11, %v3696_v5 }
 0xb71   : > { %3855 = vmatpush.bf16.msrb.mxu3 %v7202_v14  ;;  %3837 = vmatpush.bf16.msrb.mxu2 %v7223_v29 }
 0xb73   : > { %v3693_v51 = vpop.f32.mrf.mxu3 }
 0xbf3   : > { %v3709_v53 = vpop.f32.mrf.mxu2  ;;  %v3722_v44 = vpop.f32.mrf.mxu3 }
 0xbf4   : > { %v3726_v43 = vsel %vm1143_vm4, %v3709_v53, -inf  ;;  %v3733_v19 = vsel %vm1143_vm4, %v3722_v44, -inf }
 0xbf5   : > { %v3727_v10 = vrot.slane %v3726_v43, 4  ;;  %v3734_v46 = vrot.slane %v3733_v19, 4 }
 0xbf7   : > { %v3728_v59 = vmax.f32 %v3726_v43, %v3727_v10  ;;  %v3735_v37 = vmax.f32 %v3733_v19, %v3734_v46 }
 0xbf9   : > { %v3729_v42 = vrot.slane %v3728_v59, 2  ;;  %v3736_v63 = vrot.slane %v3735_v37, 2 }
 0xbfb   : > { %v3730_v48 = vmax.f32 %v3728_v59, %v3729_v42  ;;  %v3737_v18 = vmax.f32 %v3735_v37, %v3736_v63  ;;  %v3711_v22 = vpop.f32.mrf.mxu2  ;;  %v3724_v50 = vpop.f32.mrf.mxu3 }
 0xbfd   : > { %v3731_v14 = vrot.slane %v3730_v48, 1  ;;  %v3738_v49 = vrot.slane %v3737_v18, 1 }
 0xbff   : > { %v3732_v29 = vmax.f32 %v3730_v48, %v3731_v14  ;;  %v3739_v54 = vmax.f32 %v3737_v18, %v3738_v49 }
 0xc01   : > { %v3740_v38 = vsub.f32 %v3709_v53, %v3732_v29  ;;  %v3741_v47 = vsub.f32 %v3722_v44, %v3739_v54 }
 0xc03   : > { %v3742_v9 = vmul.f32 1.442695, %v3740_v38  ;;  %v3744_v16 = vmul.f32 1.442695, %v3741_v47 }
 0xc05   : > { %4848 = vpow2.f32 %v3742_v9 }
 0xc06   : > { %4850 = vpow2.f32 %v3744_v16 }
 0xc0b   : > { %v4849_v28 = vpop.eup %4848 }
 0xc0c   : > { %v4851_v6 = vpop.eup %4850  ;;  %v3746_v34 = vsel %vm1143_vm4, %v4849_v28, 0.0 }
 0xc0d   : > { %v3747_v55 = vrot.slane %v3746_v34, 4  ;;  %v3753_v4 = vsel %vm1143_vm4, %v4851_v6, 0.0 }
 0xc0e   : > { %v3754_v58 = vrot.slane %v3753_v4, 4 }
 0xc0f   : > { %v3748_v45 = vadd.f32 %v3747_v55, %v3746_v34 }
 0xc10   : > { %v3755_v39 = vadd.f32 %v3754_v58, %v3753_v4 }
 0xc11   : > { %v3749_v61 = vrot.slane %v3748_v45, 2 }
 0xc12   : > { %v3756_v57 = vrot.slane %v3755_v39, 2 }
 0xc13   : > { %v3750_v2 = vadd.f32 %v3749_v61, %v3748_v45 }
 0xc14   : > { %v3757_v17 = vadd.f32 %v3756_v57, %v3755_v39 }
 0xc15   : > { %v3751_v8 = vrot.slane %v3750_v2, 1 }
 0xc16   : > { %v3758_v5 = vrot.slane %v3757_v17, 1 }
 0xc17   : > { %v3752_v51 = vadd.f32 %v3751_v8, %v3750_v2 }
 0xc18   : > { %v3759_v53 = vadd.f32 %v3758_v5, %v3757_v17 }
 0xc19   : > { %4852 = vrcp.f32 %v3752_v51 }
 0xc1a   : > { %4854 = vrcp.f32 %v3759_v53 }
 0xc1f   : > { %v4853_v44 = vpop.eup %4852 }
 0xc20   : > { %v4855_v43 = vpop.eup %4854  ;;  %v3762_v19 = vmul.f32 %v4853_v44, %v4849_v28 }
 0xc21   : > { %v3763_v10 = vmul.f32 %v4855_v43, %v4851_v6 }
 0xc22   : > { %v3764_v46 = vadd.f32 1e-08, %v3762_v19 }
 0xc23   : > { %v3765_v59 = vadd.f32 1e-08, %v3763_v10 }
 0xc24   : > { %v3766_v37 = vsel %vm1143_vm4, %v3764_v46, 0.0 }
 0xc25   : > { %v3767_v42 = vsel %vm1143_vm4, %v3765_v59, 0.0 }
 0xc26   : > { %v3768_v63 = vadd.f32 %v3767_v42, %v3766_v37 }
 0xc28   : > { %3769 = vadd.xlane.f32.xlu0 %v3768_v63 }
 0xc9b   : > { %v3770_v48 = vpop.xlane.xlu0 %3769 }
 0xc9c   : > { %4856 = vrcp.f32 %v3770_v48 }
 0xca2   : > { %v4857_v18 = vpop.eup %4856 }
 0xca3   : > { %v3772_v22 = vmul.f32 %v4857_v18, %v3764_v46  ;;  %v3773_v50 = vmul.f32 %v4857_v18, %v3765_v59 }
 0xca5   : > { %v3774_v14 = vpack.c.bf16 %v3772_v22, %v3772_v22  ;;  %v3775_v49 = vpack.c.bf16 %v3773_v50, %v3773_v50 }
 0xca7   : > { %3784 = vmatmul.bf16.vlgmr.msra.gmra.mxu2 %v3774_v14  ;;  %3797 = vmatmul.bf16.vlgmr.msra.gmra.mxu3 %v3775_v49 }
 0xca8   : > { %3984 = vmatpush.bf16.msra.mxu3 %v7082_v26  ;;  %3897 = vmatpush.bf16.msra.mxu2 %v7060_v33 }
 0xcac   : > { %3985 = vmatpush.bf16.msra.mxu3 %v7070_v7 }
 0xcb0   : > { %3986 = vmatpush.bf16.msra.mxu3 %v7092_v15 }
 0xcb4   : > { %3987 = vmatpush.bf16.msra.mxu3 %v7098_v21 }
 0xcb8   : > { %3988 = vmatpush.bf16.msra.mxu3 %v7066_v60 }
 0xcbc   : > { %3989 = vmatpush.bf16.msra.mxu3 %v7158_v52 }
 0xcc0   : > { %3990 = vmatpush.bf16.msra.mxu3 %v7163_v23 }
 0xcc4   : > { %3991 = vmatpush.bf16.msra.mxu3 %v7166_v36 }
 0xd2a   : > { %v3785_v29 = vpop.f32.mrf.mxu2  ;;  %v3798_v54 = vpop.f32.mrf.mxu3 }
 0xd2b   : > { %v3799_v38 = vadd.f32 %v3798_v54, %v3785_v29 }
 0xd2d   : > { %v3802_v26 = vsel %vm3287_vm9, %v3799_v38, 0.0 }
 0xd2e   : > { %3803 = vadd.xlane.f32.xlu2 %v3802_v26 }
 0xd32   : > { %v3787_v33 = vpop.f32.mrf.mxu2  ;;  %v3800_v7 = vpop.f32.mrf.mxu3 }
 0xda1   : > { %v3804_v47 = vpop.xlane.xlu2 %3803 }
 0xda2   : > { %v3805_v15 = vmul.f32 %v3804_v47, %v7008_v11 }
 0xda4   : > { %v3806_v21 = vsub.f32 %v3799_v38, %v3805_v15 }
 0xda6   : > { %v3807_v9 = vmul.f32 %v3806_v21, %v3806_v21 }
 0xda8   : > { %v3808_v60 = vsel %vm3287_vm9, %v3807_v9, 0.0 }
 0xda9   : > { %3809 = vadd.xlane.f32.xlu0 %v3808_v60 }
 0xe1c   : > { %v3810_v52 = vpop.xlane.xlu0 %3809 }
 0xe1d   : > { %v3811_v23 = vmul.f32 %v3810_v52, %v7008_v11 }
 0xe1f   : > { %v3812_v36 = vadd.f32 1e-05, %v3811_v23 }
 0xe21   : > { %4858 = vrsqrt.f32 %v3812_v36  ;;  %vm3819_vm14 = vweird.f32 %v3812_v36 }
 0xe27   : > { %v4859_v16 = vpop.eup %4858 }
 0xe28   : > { %v3814_v28 = vmul.f32 %v4859_v16, %v3812_v36  ;;  %vm3820_vm13 = vweird.f32 %v4859_v16 }
 0xe29   : > { %vm3821_vm15 = vmor %vm3819_vm14, %vm3820_vm13 }
 0xe2a   : > { %v3815_v6 = vmul.f32 %v4859_v16, %v3814_v28 }
 0xe2c   : > { %v3816_v34 = vmul.f32 0.5, %v3815_v6 }
 0xe2e   : > { %v3817_v55 = vsub.f32 1.5, %v3816_v34 }
 0xe30   : > { %v3818_v4 = vmul.f32 %v4859_v16, %v3817_v55 }
 0xe32   : > { %v3822_v58 = vsel %vm3821_vm15, %v4859_v16, %v3818_v4 }
 0xe33   : > { %v3823_v45 = vmul.f32 %v3822_v58, %v3806_v21 }
 0xe35   : > { %v3824_v39 = vmul.f32 %v7230_v31, %v3823_v45 }
 0xe37   : > { %v3825_v61 = vadd.f32 %v7233_v20, %v3824_v39 }
 0xe39   : > { %v3826_v57 = vpack.c.bf16 %v3825_v61, %v3825_v61 }
 0xe3b   : > { %4542 = vmatmul.msk.bf16.vlgmr.msrb.gmra.mxu2 %vm3327_vm11, %v3826_v57 }
 0xe3c   : > { %3997 = vmatpush.bf16.msrb.mxu2 %v7171_v27 }
 0xe40   : > { %3998 = vmatpush.bf16.msrb.mxu2 %v7169_v13 }
 0xe44   : > { %3999 = vmatpush.bf16.msrb.mxu2 %v7150_v41 }
 0xe48   : > { %4000 = vmatpush.bf16.msrb.mxu2 %v7182_v24 }
 0xe4c   : > { %4001 = vmatpush.bf16.msrb.mxu2 %v7179_v32 }
 0xe50   : > { %4002 = vmatpush.bf16.msrb.mxu2 %v7185_v0 }
 0xe54   : > { %4003 = vmatpush.bf16.msrb.mxu2 %v7189_v25 }
 0xe58   : > { %4004 = vmatpush.bf16.msrb.mxu2 %v7192_v3 }
 0xebe   : > { %v3839_v2 = vpop.f32.mrf.mxu2 }
 0xebf   : > { %v3840_v17 = vadd.f32 %v7247_v62, %v3839_v2 }
 0xec1   : > { %v3843_v8 = vmax.f32 %v3840_v17, 0.0 }
 0xec3   : > { %v3844_v5 = vpack.c.bf16 %v3843_v8, %v3843_v8 }
 0xec5   : > { %4543 = vmatmul.msk.bf16.vlgmr.msrb.gmra.mxu3 %vm1110_vm3, %v3844_v5 }
 0xec6   : > { %v3841_v13 = vpop.f32.mrf.mxu2 }
 0xf48   : > { %v3857_v27 = vpop.f32.mrf.mxu3 }
 0xf49   : > { %v3858_v41 = vadd.f32 %v7260_v40, %v3857_v27 }
 0xf4b   : > { %v3861_v24 = vadd.f32 %v3858_v41, %v3799_v38 }
 0xf4d   : > { %v3862_v32 = vsel %vm3287_vm9, %v3861_v24, 0.0 }
 0xf4e   : > { %3863 = vadd.xlane.f32.xlu1 %v3862_v32 }
 0xf50   : > { %v3859_v0 = vpop.f32.mrf.mxu3 }
 0xfc1   : > { %v3864_v51 = vpop.xlane.xlu1 %3863 }
 0xfc2   : > { %v3865_v25 = vmul.f32 %v3864_v51, %v7008_v11 }
 0xfc4   : > { %v3866_v3 = vsub.f32 %v3861_v24, %v3865_v25 }
 0xfc6   : > { %v3867_v53 = vmul.f32 %v3866_v3, %v3866_v3 }
 0xfc8   : > { %v3868_v44 = vsel %vm3287_vm9, %v3867_v53, 0.0 }
 0xfc9   : > { %3869 = vadd.xlane.f32.xlu2 %v3868_v44 }
0x103c   : > { %v3870_v43 = vpop.xlane.xlu2 %3869 }
0x103d   : > { %v3871_v19 = vmul.f32 %v3870_v43, %v7008_v11 }
0x103f   : > { %v3872_v10 = vadd.f32 1e-05, %v3871_v19 }
0x1041   : > { %4860 = vrsqrt.f32 %v3872_v10  ;;  %vm3879_vm0 = vweird.f32 %v3872_v10 }
0x1047   : > { %v4861_v46 = vpop.eup %4860 }
0x1048   : > { %v3874_v59 = vmul.f32 %v4861_v46, %v3872_v10  ;;  %vm3880_vm2 = vweird.f32 %v4861_v46 }
0x1049   : > { %vm3881_vm1 = vmor %vm3879_vm0, %vm3880_vm2 }
0x104a   : > { %v3875_v37 = vmul.f32 %v4861_v46, %v3874_v59 }
0x104c   : > { %v3876_v42 = vmul.f32 0.5, %v3875_v37 }
0x104e   : > { %v3877_v63 = vsub.f32 1.5, %v3876_v42 }
0x1050   : > { %v3878_v48 = vmul.f32 %v4861_v46, %v3877_v63 }
0x1052   : > { %v3882_v18 = vsel %vm3881_vm1, %v4861_v46, %v3878_v48 }
0x1053   : > { %v3883_v22 = vmul.f32 %v3882_v18, %v3866_v3 }
0x1055   : > { %v3884_v50 = vmul.f32 %v7076_v12, %v3883_v22 }
0x1057   : > { %v3885_v14 = vadd.f32 %v7080_v35, %v3884_v50 }
0x1059   : > { %v3886_v49 = vpack.c.bf16 %v3885_v14, %v3885_v14 }
0x105b   : > { %4544 = vmatmul.msk.bf16.vlgmr.msra.gmra.mxu2 %vm3327_vm11, %v3886_v49 }
0x10de   : > { %v3899_v29 = vpop.f32.mrf.mxu2 }
0x10df   : > { %v3903_v54 = vmul.f32 0.35355338, %v3899_v29 }
0x10e1   : > { %v3904_v38 = vpack.c.bf16 %v3903_v54, %v3903_v54 }
0x10e3   : > { %4545 = vmatmul.msk.bf16.vlgmr.msra.gmra.mxu0 %vm3327_vm11, %v3904_v38  ;;  %4546 = vmatmul.msk.bf16.vlgmr.msra.gmra.mxu1 %vm3327_vm11, %v3904_v38 }
0x10e6   : > { %v3901_v26 = vpop.f32.mrf.mxu2 }
0x1160   : > { %v3917_v33 = vpop.f32.mrf.mxu0  ;;  %v3930_v7 = vpop.f32.mrf.mxu1 }
0x1161   : > { %v3934_v47 = vsel %vm1143_vm4, %v3917_v33, -inf  ;;  %v3941_v15 = vsel %vm1143_vm4, %v3930_v7, -inf }
0x1162   : > { %v3935_v12 = vrot.slane %v3934_v47, 4  ;;  %v3942_v21 = vrot.slane %v3941_v15, 4 }
0x1164   : > { %v3936_v35 = vmax.f32 %v3934_v47, %v3935_v12  ;;  %v3943_v9 = vmax.f32 %v3941_v15, %v3942_v21 }
0x1166   : > { %v3937_v60 = vrot.slane %v3936_v35, 2  ;;  %v3944_v52 = vrot.slane %v3943_v9, 2 }
0x1168   : > { %v3938_v23 = vmax.f32 %v3936_v35, %v3937_v60  ;;  %v3945_v36 = vmax.f32 %v3943_v9, %v3944_v52  ;;  %v3919_v16 = vpop.f32.mrf.mxu0  ;;  %v3932_v28 = vpop.f32.mrf.mxu1  ;;  %v1104_v60 = vld [vmem:[%s7519_s23] sm:$0xf]  ;;  %s7350_s23 = scalar_lea.vmem [#allocation6], %s4402_s16  ;;  %s974_s16 = scalar_lea.vmem %s5196_s29, %s5255_s2 }
0x1169   : > { %s4162_s2 = sshll.u32 %s4158_s14, 4  ;;  %s4163_s2 = int_to_ptr.hbm [resolvable:$true] %s4162_s2 }
0x116a   : > { %v3939_v6 = vrot.slane %v3938_v23, 1  ;;  %v3946_v34 = vrot.slane %v3945_v36, 1 }
0x116c   : > { %v3940_v55 = vmax.f32 %v3938_v23, %v3939_v6  ;;  %v3947_v4 = vmax.f32 %v3945_v36, %v3946_v34 }
0x116e   : > { %v3948_v58 = vsub.f32 %v3917_v33, %v3940_v55  ;;  %v3949_v45 = vsub.f32 %v3930_v7, %v3947_v4 }
0x1170   : > { %v3950_v39 = vmul.f32 1.442695, %v3948_v58  ;;  %v3952_v61 = vmul.f32 1.442695, %v3949_v45 }
0x1172   : > { %4862 = vpow2.f32 %v3950_v39 }
0x1173   : > { %4864 = vpow2.f32 %v3952_v61 }
0x1178   : > { %v4863_v57 = vpop.eup %4862 }
0x1179   : > { %v4865_v2 = vpop.eup %4864  ;;  %v3954_v17 = vsel %vm1143_vm4, %v4863_v57, 0.0 }
0x117a   : > { %v3955_v8 = vrot.slane %v3954_v17, 4  ;;  %v3961_v5 = vsel %vm1143_vm4, %v4865_v2, 0.0 }
0x117b   : > { %v3962_v13 = vrot.slane %v3961_v5, 4 }
0x117c   : > { %v3956_v27 = vadd.f32 %v3955_v8, %v3954_v17 }
0x117d   : > { %v3963_v41 = vadd.f32 %v3962_v13, %v3961_v5 }
0x117e   : > { %v3957_v24 = vrot.slane %v3956_v27, 2 }
0x117f   : > { %v3964_v32 = vrot.slane %v3963_v41, 2 }
0x1180   : > { %v3958_v0 = vadd.f32 %v3957_v24, %v3956_v27 }
0x1181   : > { %v3965_v51 = vadd.f32 %v3964_v32, %v3963_v41 }
0x1182   : > { %v3959_v25 = vrot.slane %v3958_v0, 1 }
0x1183   : > { %v3966_v3 = vrot.slane %v3965_v51, 1 }
0x1184   : > { %v3960_v53 = vadd.f32 %v3959_v25, %v3958_v0 }
0x1185   : > { %v3967_v44 = vadd.f32 %v3966_v3, %v3965_v51 }
0x1186   : > { %4866 = vrcp.f32 %v3960_v53 }
0x1187   : > { %4868 = vrcp.f32 %v3967_v44 }
0x118c   : > { %v4867_v43 = vpop.eup %4866 }
0x118d   : > { %v4869_v19 = vpop.eup %4868  ;;  %v3970_v10 = vmul.f32 %v4867_v43, %v4863_v57 }
0x118e   : > { %v3971_v46 = vmul.f32 %v4869_v19, %v4865_v2 }
0x118f   : > { %v3972_v59 = vadd.f32 1e-08, %v3970_v10  ;;  %v4070_v37 = vmax.f32 %v3970_v10, 1e-20 }
0x1190   : > { %v3973_v42 = vadd.f32 1e-08, %v3971_v46  ;;  %v4071_v63 = vmax.f32 %v3971_v46, 1e-20  ;;  %v4106_v48 = vrot.slane %v3971_v46, 4 }
0x1191   : > { %v3974_v18 = vsel %vm1143_vm4, %v3972_v59, 0.0  ;;  %v4072_v22 = vmin.f32 %v4070_v37, 1.0  ;;  %v5047_v37 = vmov 1024.0  }
0x1192   : > { %v3975_v50 = vsel %vm1143_vm4, %v3973_v42, 0.0  ;;  %v4073_v14 = vmin.f32 %v4071_v63, 1.0  ;;  %v4107_v49 = vsel %vm1143_vm4, %v3970_v10, %v4106_v48 }
0x1193   : > { %v3976_v29 = vadd.f32 %v3975_v50, %v3974_v18  ;;  %4870 = vlog2.f32 %v4072_v22  ;;  %4109 = vst [vmem:[%s7338_s5] sm:$0xff] %v4107_v49  ;;  %v4074_v26 = vsub.f32 0.0, %v4072_v22 }
0x1194   : > { %4872 = vlog2.f32 %v4073_v14  ;;  %v4075_v7 = vsub.f32 0.0, %v4073_v14 }
0x1195   : > { %3977 = vadd.xlane.f32.xlu0 %v3976_v29 }
0x1199   : > { %v4871_v54 = vpop.eup %4870 }
0x119a   : > { %v4873_v38 = vpop.eup %4872  ;;  %v4077_v33 = vmul.f32 0.6931472, %v4871_v54 }
0x119b   : > { %v4079_v47 = vmul.f32 0.6931472, %v4873_v38 }
0x119c   : > { %v4080_v15 = vmul.f32 %v4077_v33, %v4074_v26 }
0x119d   : > { %v4081_v12 = vmul.f32 %v4079_v47, %v4075_v7 }
0x119e   : > { %v4082_v21 = vsel %vm1143_vm4, %v4080_v15, 0.0 }
0x119f   : > { %v4083_v35 = vsel %vm1143_vm4, %v4081_v12, 0.0 }
0x11a0   : > { %v4084_v9 = vadd.f32 %v4083_v35, %v4082_v21 }
0x11a9   : > { %1107 = vperm.xlu0 %4675, %v1104_v60  }
0x1208   : > { %v3978_v52 = vpop.xlane.xlu0 %3977 }
0x1209   : > { %4874 = vrcp.f32 %v3978_v52 }
0x120a   : > { %4876 = vrcp.f32 %v5047_v37 }
0x120f   : > { %v4875_v23 = vpop.eup %4874 }
0x1210   : > { %v3980_v36 = vmul.f32 %v4875_v23, %v3972_v59  ;;  %v3981_v16 = vmul.f32 %v4875_v23, %v3973_v42  ;;  %v4877_v42 = vpop.eup %4876 }
0x1211   : > { %v4095_v22 = vmul.f32 1024.0, %v4877_v42  ;;  %vm4099_vm5 = vweird.f32 %v4877_v42 }
0x1212   : > { %v3982_v28 = vpack.c.bf16 %v3980_v36, %v3980_v36  ;;  %v3983_v6 = vpack.c.bf16 %v3981_v16, %v3981_v16 }
0x1213   : > { %v4096_v50 = vsub.f32 1.0, %v4095_v22 }
0x1214   : > { %3992 = vmatmul.bf16.vlgmr.msra.gmra.mxu3 %v3982_v28  ;;  %4005 = vmatmul.bf16.vlgmr.msrb.gmra.mxu2 %v3983_v6 }
0x1215   : > { %v4097_v38 = vmul.f32 %v4877_v42, %v4096_v50 }
0x1217   : > { %v4098_v15 = vadd.f32 %v4877_v42, %v4097_v38 }
0x121b   : > { %v1108_v34 = vpop.permute.xlu0 %1107 }
0x121c   : > { %v1137_v55 = vadd.f32 %v7175_v30, %v1108_v34  ;;  %v1124_v4 = vadd.f32 %v7161_v56, %v1108_v34 }
0x121e   : > { %v1142_v58 = vrot.slane %v1137_v55, 4 }
0x1220   : > { %v1144_v45 = vsel %vm1143_vm4, %v1124_v4, %v1142_v58 }
0x1221   : > { %v1146_v39 = vsub.f32 %v5260_v1, %v1144_v45  ;;  %4115 = vst [vmem:[%s7350_s23] sm:$0xff] %v1144_v45 }
0x1223   : > { %v1147_v61 = vmul.f32 %v1146_v39, %v1146_v39 }
0x1225   : > { %1149 = vst [vmem:[#allocation1] ss:$2 sm:$0xff] %v1147_v61 }
0x122c   : > { %v1150_v56 = vld.sshfl [vmem:[#allocation1] sm:$0xff pattern:$0x75316420]  ;;  %v1151_v8 = vld.sshfl [vmem:[#allocation1 + $0x8] sm:$0xff pattern:$0x75316420] }
0x122d   : > { %v1154_v5 = vsel %vm1143_vm4, %v1150_v56, 0.0  ;;  %v1155_v1 = vsel %vm1143_vm4, %v1151_v8, 0.0  ;;  %vm4111_vm4 = vcmask 0  }
0x122e   : > { %v1156_v41 = vadd.f32 %v1155_v1, %v1154_v5 }
0x1297   : > { %v3993_v57 = vpop.f32.mrf.mxu3  ;;  %v4006_v2 = vpop.f32.mrf.mxu2 }
0x1298   : > { %v7353_v17 = vadd.f32 %v4006_v2, %v3993_v57 }
0x129a   : > { %v4010_v30 = vsel %vm3287_vm9, %v7353_v17, 0.0 }
0x129b   : > { %4011 = vadd.xlane.f32.xlu1 %v4010_v30 }
0x129f   : > { %v3995_v13 = vpop.f32.mrf.mxu3  ;;  %v4008_v27 = vpop.f32.mrf.mxu2 }
0x12a3   : > { %1157 = vadd.xlane.f32.xlu1 %v1156_v41 }
0x130e   : > { %v4012_v24 = vpop.xlane.xlu1 %4011 }
0x130f   : > { %v4013_v32 = vmul.f32 %v4012_v24, %v7008_v11 }
0x1311   : > { %v4014_v0 = vsub.f32 %v7353_v17, %v4013_v32 }
0x1313   : > { %v4015_v51 = vmul.f32 %v4014_v0, %v4014_v0 }
0x1315   : > { %v4016_v25 = vsel %vm3287_vm9, %v4015_v51, 0.0 }
0x1316   : > { %4017 = vadd.xlane.f32.xlu2 %v4016_v25  ;;  %v1158_v3 = vpop.xlane.xlu1 %1157 }
0x1317   : > { %v1159_v53 = vrot.slane %v1158_v3, 4 }
0x1319   : > { %v1160_v44 = vadd.f32 %v1159_v53, %v1158_v3 }
0x131b   : > { %v1161_v43 = vrot.slane %v1160_v44, 2 }
0x131d   : > { %v1162_v19 = vadd.f32 %v1161_v43, %v1160_v44 }
0x131e   : > { %4085 = vadd.xlane.f32.xlu2 %v4084_v9  ;;  %v4100_v9 = vsel %vm4099_vm5, %v4877_v42, %v4098_v15 }
0x131f   : > { %v1163_v10 = vrot.slane %v1162_v19, 1 }
0x1321   : > { %v1164_v46 = vadd.f32 %v1163_v10, %v1162_v19 }
0x1323   : > { %4586 = vpush %v1164_v46 }
0x1354   : > { %s4587_s6 = spop %4586 }
0x1355   : > { %v4113_v59 = vstv %s4587_s6 }
0x1356   : > { %4114 = vst.msk [vmem:[%s974_s16] sm:$0x1] %vm4111_vm4, %v4113_v59 }
0x1389   : > { %v4018_v63 = vpop.xlane.xlu2 %4017 }
0x138a   : > { %v4019_v48 = vmul.f32 %v4018_v63, %v7008_v11 }
0x138c   : > { %v4020_v18 = vadd.f32 1e-05, %v4019_v48 }
0x138e   : > { %4878 = vrsqrt.f32 %v4020_v18  ;;  %vm4027_vm7 = vweird.f32 %v4020_v18 }
0x1391   : > { %v4086_v14 = vpop.xlane.xlu2 %4085 }
0x1392   : > { %v4087_v49 = vrot.slane %v4086_v14, 4 }
0x1394   : > { %v4879_v29 = vpop.eup %4878  ;;  %v4088_v54 = vadd.f32 %v4087_v49, %v4086_v14 }
0x1395   : > { %v4022_v26 = vmul.f32 %v4879_v29, %v4020_v18  ;;  %vm4028_vm6 = vweird.f32 %v4879_v29 }
0x1396   : > { %v4089_v33 = vrot.slane %v4088_v54, 2  ;;  %vm4029_vm8 = vmor %vm4027_vm7, %vm4028_vm6 }
0x1397   : > { %v4023_v7 = vmul.f32 %v4879_v29, %v4022_v26 }
0x1398   : > { %v4090_v47 = vadd.f32 %v4089_v33, %v4088_v54 }
0x1399   : > { %v4024_v12 = vmul.f32 0.5, %v4023_v7 }
0x139a   : > { %v4091_v21 = vrot.slane %v4090_v47, 1 }
0x139b   : > { %v4025_v35 = vsub.f32 1.5, %v4024_v12 }
0x139c   : > { %v4092_v11 = vadd.f32 %v4091_v21, %v4090_v47 }
0x139d   : > { %v4026_v60 = vmul.f32 %v4879_v29, %v4025_v35 }
0x139e   : > { %4588 = vpush %v4092_v11 }
0x139f   : > { %v4030_v52 = vsel %vm4029_vm8, %v4879_v29, %v4026_v60  ;;  %4590 = vpush %v4100_v9 }
0x13a0   : > { %v4031_v23 = vmul.f32 %v4030_v52, %v4014_v0 }
0x13a2   : > { %v4032_v36 = vmul.f32 %v7230_v31, %v4031_v23 }
0x13a4   : > { %v4033_v16 = vadd.f32 %v7233_v20, %v4032_v36 }
0x13a6   : > { %v4034_v28 = vpack.c.bf16 %v4033_v16, %v4033_v16 }
0x13a8   : > { %4547 = vmatmul.msk.bf16.vlgmr.msrb.gmra.mxu0 %vm3327_vm11, %v4034_v28 }
0x13cf   : > { %s4589_s6 = spop %4588 }
0x13d0   : > { %s4591_s16 = spop %4590 }
0x13d1   : > { %s4102_s9 = smul.f32 %s4591_s16, %s4589_s6  ;;  %s4910_s16 = scalar_lea.hbm %s5186_s3, 16 }
0x13d3   : > { %v4110_v6 = vstv %s4102_s9  ;;  %s7378_s9 = scalar_lea.sflag [#allocation5], %s4121_s12 }
0x13d4   : > { %4112 = vst.msk [vmem:[%s971_s8] sm:$0x1] %vm4111_vm4, %v4110_v6  ;;  %s4904_s8 = sshra.s32 %s4163_s2, 4  ;;  %s4905_s8 = int_to_ptr.hbm [resolvable:$true] %s4904_s8 }
0x13d5   : > { %s4906_s6 = scalar_lea.hbm %s4905_s8, 8  ;;  %p4911_p0 = scmp.lt.s32.totalorder %s4905_s8, %s5186_s3 }
0x13d6   : > { %p4907_p11 = scmp.ne.s32.totalorder %s4905_s8, %s4906_s6  ;;  %p4912_p1 = scmp.lt.s32.totalorder %s4910_s16, %s4906_s6 }
0x13d8   : > { %p4908_p12 = pnand %p4907_p11, %p5243_p5  ;;  %p4913_p2 = por %p4912_p1, %p4911_p0 }
0x13da   : > { %p4909_p13 = pneg %p4908_p12 }
0x13dc   : > { %p4914_p3 = pnand %p4913_p2, %p4909_p13 }
0x1425   : > { %v4047_v34 = vpop.f32.mrf.mxu0 }
0x1426   : > { %v4048_v55 = vadd.f32 %v7247_v62, %v4047_v34 }
0x1428   : > { %v4051_v4 = vmax.f32 %v4048_v55, 0.0 }
0x142a   : > { %v4052_v31 = vpack.c.bf16 %v4051_v4, %v4051_v4 }
0x142c   : > { %4548 = vmatmul.msk.bf16.vlgmr.msrb.gmra.mxu1 %vm1110_vm3, %v4052_v31 }
0x142d   : > { %v4049_v20 = vpop.f32.mrf.mxu0 }
0x142e   : > { %4917 = shalt.err (!%p4914_p3)
}
0x142f   : > { %4593 = dma.vmem_to_hbm [thread:$0]  (%p5243_p5), %s4161_s17, 128, %s4163_s2, %s7378_s9  }
0x1430   : > { %s4179_s5 = scalar_lea.hbm %s5201_s4, %s4584_s13  ;;  %s4181_s14 = sshll.u32 %s7350_s23, 4  ;;  %s4182_s14 = int_to_ptr.vmem [resolvable:$true] %s4181_s14 }
0x1431   : > { %s4183_s12 = sshll.u32 %s4179_s5, 4  ;;  %s4938_s6 = scalar_lea.hbm %s5201_s4, 16  ;;  %s4184_s12 = int_to_ptr.hbm [resolvable:$true] %s4183_s12 }
0x1432   : > { %s4932_s19 = sshra.s32 %s4184_s12, 4  ;;  %s4933_s19 = int_to_ptr.hbm [resolvable:$true] %s4932_s19 }
0x1433   : > { %s4934_s8 = scalar_lea.hbm %s4933_s19, 8  ;;  %p4939_p9 = scmp.lt.s32.totalorder %s4933_s19, %s5201_s4 }
0x1434   : > { %p4935_p4 = scmp.ne.s32.totalorder %s4933_s19, %s4934_s8  ;;  %p4940_p10 = scmp.lt.s32.totalorder %s4938_s6, %s4934_s8 }
0x1436   : > { %p4936_p7 = pnand %p4935_p4, %p5243_p5  ;;  %p4941_p11 = por %p4940_p10, %p4939_p9 }
0x1438   : > { %p4937_p8 = pneg %p4936_p7 }
0x143a   : > { %p4942_p12 = pnand %p4941_p11, %p4937_p8 }
0x143c   : > { %4945 = shalt.err (!%p4942_p12)
}
0x143d   : > { %s7520_s13 = sld [smem:[#allocation29_spill]]  ;;  %s4401_s17 = sshll.u32 %s7330_s22, 2 }
0x143e   : > { %4594 = dma.vmem_to_hbm [thread:$0]  (%p5243_p5), %s4182_s14, 128, %s4184_s12, %s7378_s9  }
0x143f   : > { %s4552_s23 = sshll.u32 %s5224_s0, 2  ;;  %s929_s16 = scalar_lea.vmem [#allocation2], %s4401_s17 }
0x1440   : > { %s4145_s19 = sshll.u32 %s929_s16, 4  ;;  %s4117_s8 = scalar_lea.sflag [#allocation3], %s7330_s22  ;;  %s4146_s19 = int_to_ptr.vmem [resolvable:$true] %s4145_s19 }
0x1443   : > { %s4143_s2 = scalar_lea.hbm %s7520_s13, %s4552_s23  ;;  %s4966_s14 = scalar_lea.hbm %s7520_s13, 8 }
0x1444   : > { %s4147_s5 = sshll.u32 %s4143_s2, 4  ;;  %s4148_s5 = int_to_ptr.hbm [resolvable:$true] %s4147_s5 }
0x1445   : > { %s4960_s9 = sshra.s32 %s4148_s5, 4  ;;  %s4961_s9 = int_to_ptr.hbm [resolvable:$true] %s4960_s9 }
0x1446   : > { %s4962_s0 = scalar_lea.hbm %s4961_s9, 4  ;;  %p4967_p2 = scmp.lt.s32.totalorder %s4961_s9, %s7520_s13 }
0x1447   : > { %p4963_p13 = scmp.ne.s32.totalorder %s4961_s9, %s4962_s0  ;;  %p4968_p3 = scmp.lt.s32.totalorder %s4966_s14, %s4962_s0 }
0x1449   : > { %p4964_p0 = pnand %p4963_p13, %p5243_p5  ;;  %p4969_p4 = por %p4968_p3, %p4967_p2 }
0x144b   : > { %p4965_p1 = pneg %p4964_p0 }
0x144d   : > { %p4970_p7 = pnand %p4969_p4, %p4965_p1 }
0x14a9   : > { %v4065_v62 = vpop.f32.mrf.mxu1 }
0x14aa   : > { %v4066_v58 = vadd.f32 %v7260_v40, %v4065_v62 }
0x14ac   : > { %v4069_v45 = vadd.f32 %v4066_v58, %v7353_v17 }
0x14ae   : > { %4103 = vst.msk [vmem:[%s929_s16] sm:$0xf] %vm3287_vm9, %v4069_v45 }
0x14af   : > { %4973 = shalt.err (!%p4970_p7)
}
0x14b0   : > { %4592 = dma.vmem_to_hbm [thread:$0]  (%p5243_p5), %s4146_s19, 64, %s4148_s5, %s4117_s8  }
0x14b1   : > { %v4067_v40 = vpop.f32.mrf.mxu1 }
0x14b2 PF: > { %p4608_p8 = scmp.ge.s32.totalorder %s5012_s15, 2  ;;  %s4195_s22 = sand.u32 1, %s5000_s7  }
0x14b3   : > { %s4196_s12 = scalar_lea.sflag [#allocation3], %s4195_s22 }
0x14b4   : > { %p4599_p9 = pnand %p4608_p8, %p5247_p6 }
0x14b6   : > { %p4600_p10 = pneg %p4599_p9 }
0x14b8   : > { %4991 = dma.done.wait (%p4600_p10), %s4196_s12, 64  }
0x14b9   : > { %4993 = vsyncadd (%p4600_p10), %s4196_s12, 4294967232  ;;  %s7521_s6 = sadd.s32 4294967294, %s5012_s15  }
0x14ba   : > { %s4205_s17 = sand.u32 1, %s7521_s6  }
0x14bb   : > { %s4206_s23 = scalar_lea.sflag [#allocation5], %s4205_s17 }
0x14bc   : > { %4995 = dma.done.wait (%p4600_p10), %s4206_s23, 256  }
0x14bd   : > { %4997 = vsyncadd (%p4600_p10), %s4206_s23, 4294967040  ;;  %p73_p5 = scmp.ge.s32.totalorder %s5228_s18, 4   ;;  %s7522_s7 = smov %s5004_s10 }
0x14be   : > { %s7523_s10 = smov %s5008_s11  ;;  %s7524_s11 = smov %s5241_s26 }
0x14bf   : > { %s7525_s15 = smov %s5228_s18  ;;  %75 = sbr.rel (!%p73_p5) target bundleno = 60 (0x3c), region = 246 }
0x14c4   :  { %4234 = vsyncpa [#allocation3], 1 }
0x14c5   :  { %4236 = vsyncpa [#allocation3 + $0x1], 1 }
0x14c6   :  { %4237 = vsyncpa [#allocation5], 1 }
0x14c7   :  { %4239 = vsyncpa [#allocation5 + $0x1], 1 }

</bundles_post_ra>
